<compile_context>
chip_gen: v5e
topology: v5e:2x2
jax: 0.10.0
libtpu: 0.0.40
codegen_flags: <defaults>
</compile_context>

<pallas_src>
import functools

import jax
import jax.numpy as jnp
from jax.experimental import pallas as pl
from jax.experimental.pallas import tpu as pltpu


# ---------------------------------------------------------------------------
# Conv 4x4 / stride 2 / pad 1  with fused bias + activation.
#
# Input is pre-relaid (XLA glue, ~1x traffic) as
#   Z[n, i, j, a*2C + b*C + c] = x_pad[n, 2i + a, 2j + b, c]
# so that every conv tap inside the kernel is a contiguous slice and the whole
# conv is 4 matmuls (2x2 taps over the space-to-depth channels).
# ---------------------------------------------------------------------------
def _conv_rows_kernel(z_ref, w_ref, b_ref, o_ref, *, rows_per_block, wo, act):
    """One grid step = one batch element x `rows_per_block` output rows."""
    rb = pl.program_id(1)
    cout = w_ref.shape[-1]
    wz = wo + 1
    for r in range(rows_per_block):                    # static unroll (<= 8)
        oh = rb * rows_per_block + r
        # acc0 accumulates even-column taps (q=0), acc1 odd-column taps (q=1);
        # keeping them full-width avoids slicing bf16 operands.
        acc0 = jnp.zeros((wz, cout), jnp.float32)
        acc1 = jnp.zeros((wz, cout), jnp.float32)
        for p in range(2):
            row = z_ref[0, oh + p]                     # (Wz, 4*Cin), bf16
            acc0 = acc0 + jnp.dot(row, w_ref[2 * p + 0],
                                  preferred_element_type=jnp.float32)
            acc1 = acc1 + jnp.dot(row, w_ref[2 * p + 1],
                                  preferred_element_type=jnp.float32)
        acc = acc0[0:wo, :] + acc1[1:wo + 1, :] + b_ref[...]   # (Wo, Cout) f32
        if act == "leaky_relu":
            acc = jnp.where(acc >= 0.0, acc, 0.2 * acc)
        else:  # "sigmoid"
            acc = jax.nn.sigmoid(acc)
        o_ref[0, r] = acc.astype(o_ref.dtype)


def conv4x4_s2(x_nhwc, w_oihw, b, act):
    N, H, W, Cin = x_nhwc.shape
    Cout = w_oihw.shape[0]
    Ho, Wo = H // 2, W // 2
    Hz, Wz = Ho + 1, Wo + 1

    # --- XLA glue: pad=1 + space-to-depth(2) relayout (no im2col blow-up) ---
    xp = jnp.pad(x_nhwc, ((0, 0), (1, 1), (1, 1), (0, 0)))
    z = xp.reshape(N, Hz, 2, Wz, 2, Cin)               # (n, i, a, j, b, c)
    z = jnp.transpose(z, (0, 1, 3, 2, 4, 5))           # (n, i, j, a, b, c)
    z = z.reshape(N, Hz, Wz, 4 * Cin).astype(jnp.bfloat16)

    # Weights: (Cout, Cin, 4, 4) -> (4 taps t=2p+q, 4*Cin packed (a,b,c), Cout)
    wr = w_oihw.reshape(Cout, Cin, 2, 2, 2, 2)          # (o, c, p, a, q, b)
    wz = jnp.transpose(wr, (2, 4, 3, 5, 1, 0))          # (p, q, a, b, c, o)
    wz = wz.reshape(4, 4 * Cin, Cout).astype(jnp.bfloat16)
    b2 = jnp.reshape(b, (1, Cout)).astype(jnp.float32)

    rows_per_block = Ho if Ho <= 8 else 8               # Ho is a power of two
    assert Ho % rows_per_block == 0
    grid = (N, Ho // rows_per_block)

    kernel = functools.partial(_conv_rows_kernel,
                               rows_per_block=rows_per_block, wo=Wo, act=act)
    return pl.pallas_call(
        kernel,
        out_shape=jax.ShapeDtypeStruct((N, Ho, Wo, Cout), jnp.bfloat16),
        grid=grid,
        in_specs=[
            # whole Z for one batch element stays VMEM-resident across rows
            pl.BlockSpec((1, Hz, Wz, 4 * Cin), lambda n, rb: (n, 0, 0, 0)),
            pl.BlockSpec((4, 4 * Cin, Cout), lambda n, rb: (0, 0, 0)),
            pl.BlockSpec((1, Cout), lambda n, rb: (0, 0)),
        ],
        out_specs=pl.BlockSpec((1, rows_per_block, Wo, Cout),
                               lambda n, rb: (n, rb, 0, 0)),
        compiler_params=pltpu.CompilerParams(
            dimension_semantics=("parallel", "parallel")),
    )(z, wz, b2)


# ---------------------------------------------------------------------------
# Final Linear(output_size, 1) + Sigmoid as multiply + reductions (VPU/XLU),
# with the NCHW flatten permutation folded into the weight.
# ---------------------------------------------------------------------------
def _linear_sigmoid_kernel(x_ref, w_ref, b_ref, o_ref):
    x = x_ref[...].astype(jnp.float32)                 # (N, H4, W4, C4)
    w = w_ref[...]                                     # (1, H4, W4, C4) f32
    s = jnp.sum(x * w, axis=-1, keepdims=True)         # (N, H4, W4, 1)
    s = jnp.sum(s, axis=2, keepdims=True)              # (N, H4, 1, 1)
    s = jnp.sum(s, axis=1, keepdims=True)              # (N, 1, 1, 1)
    o_ref[...] = jax.nn.sigmoid(s + b_ref[...])


def linear_sigmoid(feat_nhwc, wl_nhwc, bl):
    N, H4, W4, C4 = feat_nhwc.shape
    out = pl.pallas_call(
        _linear_sigmoid_kernel,
        out_shape=jax.ShapeDtypeStruct((N, 1, 1, 1), jnp.float32),
        grid=(1,),
        in_specs=[
            pl.BlockSpec((N, H4, W4, C4), lambda i: (0, 0, 0, 0)),
            pl.BlockSpec((1, H4, W4, C4), lambda i: (0, 0, 0, 0)),
            pl.BlockSpec((1, 1, 1, 1), lambda i: (0, 0, 0, 0)),
        ],
        out_specs=pl.BlockSpec((N, 1, 1, 1), lambda i: (0, 0, 0, 0)),
    )(feat_nhwc, wl_nhwc, bl)
    return out.reshape(N, 1)


# ---------------------------------------------------------------------------
# Full Discriminator forward (PyTorch-facing I/O is NCHW fp32).
# ---------------------------------------------------------------------------
def discriminator_forward(params, x_nchw):
    x = jnp.transpose(x_nchw, (0, 2, 3, 1))            # NCHW -> NHWC
    x = conv4x4_s2(x, params["w1"], params["b1"], "leaky_relu")
    x = conv4x4_s2(x, params["w2"], params["b2"], "leaky_relu")
    x = conv4x4_s2(x, params["w3"], params["b3"], "leaky_relu")
    x = conv4x4_s2(x, params["w4"], params["b4"], "sigmoid")
    N, H4, W4, C4 = x.shape
    # PyTorch flattens the conv output in NCHW order; fold that permutation
    # into the (1, C4*H4*W4) linear weight instead of transposing activations.
    wl_nhwc = (params["wl"].reshape(C4, H4, W4)
               .transpose(1, 2, 0).reshape(1, H4, W4, C4).astype(jnp.float32))
    bl = params["bl"].reshape(1, 1, 1, 1).astype(jnp.float32)
    return linear_sigmoid(x, wl_nhwc, bl)


# ---------------------------------------------------------------------------
# Deterministic parameter init (PyTorch shapes: conv (Cout,Cin,4,4), lin (1,K))
# ---------------------------------------------------------------------------
def init_params(key, img_size, dim):
    H, W, C = img_size
    ks = jax.random.split(key, 10)

    def conv_p(kw_key, kb_key, cin, cout):
        w = jax.random.normal(kw_key, (cout, cin, 4, 4), jnp.float32) * 0.05
        b = jax.random.normal(kb_key, (cout,), jnp.float32) * 0.05
        return w, b

    w1, b1 = conv_p(ks[0], ks[1], C, dim)
    w2, b2 = conv_p(ks[2], ks[3], dim, 2 * dim)
    w3, b3 = conv_p(ks[4], ks[5], 2 * dim, 4 * dim)
    w4, b4 = conv_p(ks[6], ks[7], 4 * dim, 8 * dim)
    output_size = 8 * dim * (H // 16) * (W // 16)
    wl = jax.random.normal(ks[8], (1, output_size), jnp.float32) * 0.05
    bl = jax.random.normal(ks[9], (1,), jnp.float32) * 0.05
    return dict(w1=w1, b1=b1, w2=w2, b2=b2, w3=w3, b3=b3, w4=w4, b4=b4,
                wl=wl, bl=bl)


if __name__ == "__main__":
    img_size = (16, 16, 1)   # H, W must be powers of 2 (>= 16)
    dim = 16                 # PyTorch module default
    batch = 2

    key = jax.random.PRNGKey(0)
    k_param, k_x = jax.random.split(key)
    params = init_params(k_param, img_size, dim)
    x = jax.random.normal(
        k_x, (batch, img_size[2], img_size[0], img_size[1]), jnp.float32)

    fwd = jax.jit(discriminator_forward)
    out = fwd(params, x)
    out = jax.block_until_ready(out)

    assert out.shape == (batch, 1)
    assert bool(jnp.all((out >= 0.0) & (out <= 1.0)))
    print("KERNEL_OK")
</pallas_src>

<mosaic_0001>
module attributes {stable_mosaic.version = 11 : i64} {
  func.func @_conv_rows_kernel(%arg0: i32, %arg1: i32, %arg2: memref<1x9x9x4xbf16, #tpu.memory_space<vmem>>, %arg3: memref<4x4x16xbf16, #tpu.memory_space<vmem>>, %arg4: memref<1x16xf32, #tpu.memory_space<vmem>>, %arg5: memref<1x8x8x16xbf16, #tpu.memory_space<vmem>>) attributes {dimension_semantics = [#tpu.dimension_semantics<parallel>, #tpu.dimension_semantics<parallel>], iteration_bounds = array<i64: 2, 1>, scalar_prefetch = 0 : i64, scratch_operands = 0 : i64, tpu.core_type = #tpu.core_type<tc>, window_params = [{transform_indices = @transform_0, window_bounds = array<i64: 1, 9, 9, 4>}, {pipeline_mode = #tpu.pipeline_mode<synchronous>, transform_indices = @transform_1, window_bounds = array<i64: 4, 4, 16>}, {pipeline_mode = #tpu.pipeline_mode<synchronous>, transform_indices = @transform_2, window_bounds = array<i64: 1, 16>}, {transform_indices = @transform_3, window_bounds = array<i64: 1, 8, 8, 16>}]} {
    %c8_i32 = arith.constant 8 : i32
    %0 = arith.muli %arg1, %c8_i32 : i32
    %c0_i32 = arith.constant 0 : i32
    %1 = arith.addi %0, %c0_i32 : i32
    %cst = arith.constant 0.000000e+00 : f32
    %2 = vector.broadcast %cst : f32 to vector<9x16xf32>
    %cst_0 = arith.constant 0.000000e+00 : f32
    %3 = vector.broadcast %cst_0 : f32 to vector<9x16xf32>
    %c0_i32_1 = arith.constant 0 : i32
    %4 = arith.addi %1, %c0_i32_1 : i32
    %c0 = arith.constant 0 : index
    %5 = arith.index_cast %4 : i32 to index
    %c0_2 = arith.constant 0 : index
    %c0_3 = arith.constant 0 : index
    %6 = vector.load %arg2[%c0, %5, %c0_2, %c0_3] : memref<1x9x9x4xbf16, #tpu.memory_space<vmem>>, vector<1x1x9x4xbf16>
    %7 = vector.shape_cast %6 : vector<1x1x9x4xbf16> to vector<9x4xbf16>
    %c0_4 = arith.constant 0 : index
    %c0_5 = arith.constant 0 : index
    %c0_6 = arith.constant 0 : index
    %8 = vector.load %arg3[%c0_4, %c0_5, %c0_6] : memref<4x4x16xbf16, #tpu.memory_space<vmem>>, vector<1x4x16xbf16>
    %9 = vector.shape_cast %8 : vector<1x4x16xbf16> to vector<4x16xbf16>
    %cst_7 = arith.constant dense<0.000000e+00> : vector<9x16xf32>
    %10 = tpu.matmul %7, %9, %cst_7 {dimension_numbers = #tpu.dot_dimension_numbers<[1], [0], [0], [1], [0, 0, 1, 1], [], []>} : vector<9x4xbf16>, vector<4x16xbf16>, vector<9x16xf32> -> vector<9x16xf32>
    %11 = arith.addf %2, %10 : vector<9x16xf32>
    %c1 = arith.constant 1 : index
    %c0_8 = arith.constant 0 : index
    %c0_9 = arith.constant 0 : index
    %12 = vector.load %arg3[%c1, %c0_8, %c0_9] : memref<4x4x16xbf16, #tpu.memory_space<vmem>>, vector<1x4x16xbf16>
    %13 = vector.shape_cast %12 : vector<1x4x16xbf16> to vector<4x16xbf16>
    %cst_10 = arith.constant dense<0.000000e+00> : vector<9x16xf32>
    %14 = tpu.matmul %7, %13, %cst_10 {dimension_numbers = #tpu.dot_dimension_numbers<[1], [0], [0], [1], [0, 0, 1, 1], [], []>} : vector<9x4xbf16>, vector<4x16xbf16>, vector<9x16xf32> -> vector<9x16xf32>
    %15 = arith.addf %3, %14 : vector<9x16xf32>
    %c1_i32 = arith.constant 1 : i32
    %16 = arith.addi %1, %c1_i32 : i32
    %c0_11 = arith.constant 0 : index
    %17 = arith.index_cast %16 : i32 to index
    %c0_12 = arith.constant 0 : index
    %c0_13 = arith.constant 0 : index
    %18 = vector.load %arg2[%c0_11, %17, %c0_12, %c0_13] : memref<1x9x9x4xbf16, #tpu.memory_space<vmem>>, vector<1x1x9x4xbf16>
    %19 = vector.shape_cast %18 : vector<1x1x9x4xbf16> to vector<9x4xbf16>
    %c2 = arith.constant 2 : index
    %c0_14 = arith.constant 0 : index
    %c0_15 = arith.constant 0 : index
    %20 = vector.load %arg3[%c2, %c0_14, %c0_15] : memref<4x4x16xbf16, #tpu.memory_space<vmem>>, vector<1x4x16xbf16>
    %21 = vector.shape_cast %20 : vector<1x4x16xbf16> to vector<4x16xbf16>
    %cst_16 = arith.constant dense<0.000000e+00> : vector<9x16xf32>
    %22 = tpu.matmul %19, %21, %cst_16 {dimension_numbers = #tpu.dot_dimension_numbers<[1], [0], [0], [1], [0, 0, 1, 1], [], []>} : vector<9x4xbf16>, vector<4x16xbf16>, vector<9x16xf32> -> vector<9x16xf32>
    %23 = arith.addf %11, %22 : vector<9x16xf32>
    %c3 = arith.constant 3 : index
    %c0_17 = arith.constant 0 : index
    %c0_18 = arith.constant 0 : index
    %24 = vector.load %arg3[%c3, %c0_17, %c0_18] : memref<4x4x16xbf16, #tpu.memory_space<vmem>>, vector<1x4x16xbf16>
    %25 = vector.shape_cast %24 : vector<1x4x16xbf16> to vector<4x16xbf16>
    %cst_19 = arith.constant dense<0.000000e+00> : vector<9x16xf32>
    %26 = tpu.matmul %19, %25, %cst_19 {dimension_numbers = #tpu.dot_dimension_numbers<[1], [0], [0], [1], [0, 0, 1, 1], [], []>} : vector<9x4xbf16>, vector<4x16xbf16>, vector<9x16xf32> -> vector<9x16xf32>
    %27 = arith.addf %15, %26 : vector<9x16xf32>
    %28 = vector.extract_strided_slice %23 {offsets = [0, 0], sizes = [8, 16], strides = [1, 1]} : vector<9x16xf32> to vector<8x16xf32>
    %29 = vector.extract_strided_slice %27 {offsets = [1, 0], sizes = [8, 16], strides = [1, 1]} : vector<9x16xf32> to vector<8x16xf32>
    %30 = arith.addf %28, %29 : vector<8x16xf32>
    %c0_20 = arith.constant 0 : index
    %c0_21 = arith.constant 0 : index
    %31 = vector.load %arg4[%c0_20, %c0_21] : memref<1x16xf32, #tpu.memory_space<vmem>>, vector<1x16xf32>
    %32 = vector.broadcast %31 : vector<1x16xf32> to vector<8x16xf32>
    %33 = arith.addf %30, %32 : vector<8x16xf32>
    %cst_22 = arith.constant 0.000000e+00 : f32
    %34 = vector.broadcast %cst_22 : f32 to vector<8x16xf32>
    %35 = arith.cmpf oge, %33, %34 : vector<8x16xf32>
    %cst_23 = arith.constant 2.000000e-01 : f32
    %36 = vector.broadcast %cst_23 : f32 to vector<8x16xf32>
    %37 = arith.mulf %36, %33 : vector<8x16xf32>
    %38 = arith.select %35, %33, %37 : vector<8x16xi1>, vector<8x16xf32>
    %39 = arith.truncf %38 : vector<8x16xf32> to vector<8x16xbf16>
    %c0_24 = arith.constant 0 : index
    %c0_25 = arith.constant 0 : index
    %c0_26 = arith.constant 0 : index
    %c0_27 = arith.constant 0 : index
    %40 = vector.load %arg5[%c0_24, %c0_25, %c0_26, %c0_27] : memref<1x8x8x16xbf16, #tpu.memory_space<vmem>>, vector<1x1x8x16xbf16>
    %41 = vector.shape_cast %40 : vector<1x1x8x16xbf16> to vector<8x16xbf16>
    %42 = vector.shape_cast %39 : vector<8x16xbf16> to vector<1x1x8x16xbf16>
    tpu.vector_store %arg5[%c0_24, %c0_25, %c0_26, %c0_27], %42 {strides = array<i32>} : memref<1x8x8x16xbf16, #tpu.memory_space<vmem>>, vector<1x1x8x16xbf16>,
    %c8_i32_28 = arith.constant 8 : i32
    %43 = arith.muli %arg1, %c8_i32_28 : i32
    %c1_i32_29 = arith.constant 1 : i32
    %44 = arith.addi %43, %c1_i32_29 : i32
    %cst_30 = arith.constant 0.000000e+00 : f32
    %45 = vector.broadcast %cst_30 : f32 to vector<9x16xf32>
    %cst_31 = arith.constant 0.000000e+00 : f32
    %46 = vector.broadcast %cst_31 : f32 to vector<9x16xf32>
    %c0_i32_32 = arith.constant 0 : i32
    %47 = arith.addi %44, %c0_i32_32 : i32
    %c0_33 = arith.constant 0 : index
    %48 = arith.index_cast %47 : i32 to index
    %c0_34 = arith.constant 0 : index
    %c0_35 = arith.constant 0 : index
    %49 = vector.load %arg2[%c0_33, %48, %c0_34, %c0_35] : memref<1x9x9x4xbf16, #tpu.memory_space<vmem>>, vector<1x1x9x4xbf16>
    %50 = vector.shape_cast %49 : vector<1x1x9x4xbf16> to vector<9x4xbf16>
    %c0_36 = arith.constant 0 : index
    %c0_37 = arith.constant 0 : index
    %c0_38 = arith.constant 0 : index
    %51 = vector.load %arg3[%c0_36, %c0_37, %c0_38] : memref<4x4x16xbf16, #tpu.memory_space<vmem>>, vector<1x4x16xbf16>
    %52 = vector.shape_cast %51 : vector<1x4x16xbf16> to vector<4x16xbf16>
    %cst_39 = arith.constant dense<0.000000e+00> : vector<9x16xf32>
    %53 = tpu.matmul %50, %52, %cst_39 {dimension_numbers = #tpu.dot_dimension_numbers<[1], [0], [0], [1], [0, 0, 1, 1], [], []>} : vector<9x4xbf16>, vector<4x16xbf16>, vector<9x16xf32> -> vector<9x16xf32>
    %54 = arith.addf %45, %53 : vector<9x16xf32>
    %c1_40 = arith.constant 1 : index
    %c0_41 = arith.constant 0 : index
    %c0_42 = arith.constant 0 : index
    %55 = vector.load %arg3[%c1_40, %c0_41, %c0_42] : memref<4x4x16xbf16, #tpu.memory_space<vmem>>, vector<1x4x16xbf16>
    %56 = vector.shape_cast %55 : vector<1x4x16xbf16> to vector<4x16xbf16>
    %cst_43 = arith.constant dense<0.000000e+00> : vector<9x16xf32>
    %57 = tpu.matmul %50, %56, %cst_43 {dimension_numbers = #tpu.dot_dimension_numbers<[1], [0], [0], [1], [0, 0, 1, 1], [], []>} : vector<9x4xbf16>, vector<4x16xbf16>, vector<9x16xf32> -> vector<9x16xf32>
    %58 = arith.addf %46, %57 : vector<9x16xf32>
    %c1_i32_44 = arith.constant 1 : i32
    %59 = arith.addi %44, %c1_i32_44 : i32
    %c0_45 = arith.constant 0 : index
    %60 = arith.index_cast %59 : i32 to index
    %c0_46 = arith.constant 0 : index
    %c0_47 = arith.constant 0 : index
    %61 = vector.load %arg2[%c0_45, %60, %c0_46, %c0_47] : memref<1x9x9x4xbf16, #tpu.memory_space<vmem>>, vector<1x1x9x4xbf16>
    %62 = vector.shape_cast %61 : vector<1x1x9x4xbf16> to vector<9x4xbf16>
    %c2_48 = arith.constant 2 : index
    %c0_49 = arith.constant 0 : index
    %c0_50 = arith.constant 0 : index
    %63 = vector.load %arg3[%c2_48, %c0_49, %c0_50] : memref<4x4x16xbf16, #tpu.memory_space<vmem>>, vector<1x4x16xbf16>
    %64 = vector.shape_cast %63 : vector<1x4x16xbf16> to vector<4x16xbf16>
    %cst_51 = arith.constant dense<0.000000e+00> : vector<9x16xf32>
    %65 = tpu.matmul %62, %64, %cst_51 {dimension_numbers = #tpu.dot_dimension_numbers<[1], [0], [0], [1], [0, 0, 1, 1], [], []>} : vector<9x4xbf16>, vector<4x16xbf16>, vector<9x16xf32> -> vector<9x16xf32>
    %66 = arith.addf %54, %65 : vector<9x16xf32>
    %c3_52 = arith.constant 3 : index
    %c0_53 = arith.constant 0 : index
    %c0_54 = arith.constant 0 : index
    %67 = vector.load %arg3[%c3_52, %c0_53, %c0_54] : memref<4x4x16xbf16, #tpu.memory_space<vmem>>, vector<1x4x16xbf16>
    %68 = vector.shape_cast %67 : vector<1x4x16xbf16> to vector<4x16xbf16>
    %cst_55 = arith.constant dense<0.000000e+00> : vector<9x16xf32>
    %69 = tpu.matmul %62, %68, %cst_55 {dimension_numbers = #tpu.dot_dimension_numbers<[1], [0], [0], [1], [0, 0, 1, 1], [], []>} : vector<9x4xbf16>, vector<4x16xbf16>, vector<9x16xf32> -> vector<9x16xf32>
    %70 = arith.addf %58, %69 : vector<9x16xf32>
    %71 = vector.extract_strided_slice %66 {offsets = [0, 0], sizes = [8, 16], strides = [1, 1]} : vector<9x16xf32> to vector<8x16xf32>
    %72 = vector.extract_strided_slice %70 {offsets = [1, 0], sizes = [8, 16], strides = [1, 1]} : vector<9x16xf32> to vector<8x16xf32>
    %73 = arith.addf %71, %72 : vector<8x16xf32>
    %c0_56 = arith.constant 0 : index
    %c0_57 = arith.constant 0 : index
    %74 = vector.load %arg4[%c0_56, %c0_57] : memref<1x16xf32, #tpu.memory_space<vmem>>, vector<1x16xf32>
    %75 = vector.broadcast %74 : vector<1x16xf32> to vector<8x16xf32>
    %76 = arith.addf %73, %75 : vector<8x16xf32>
    %cst_58 = arith.constant 0.000000e+00 : f32
    %77 = vector.broadcast %cst_58 : f32 to vector<8x16xf32>
    %78 = arith.cmpf oge, %76, %77 : vector<8x16xf32>
    %cst_59 = arith.constant 2.000000e-01 : f32
    %79 = vector.broadcast %cst_59 : f32 to vector<8x16xf32>
    %80 = arith.mulf %79, %76 : vector<8x16xf32>
    %81 = arith.select %78, %76, %80 : vector<8x16xi1>, vector<8x16xf32>
    %82 = arith.truncf %81 : vector<8x16xf32> to vector<8x16xbf16>
    %c0_60 = arith.constant 0 : index
    %c1_61 = arith.constant 1 : index
    %c0_62 = arith.constant 0 : index
    %c0_63 = arith.constant 0 : index
    %83 = vector.load %arg5[%c0_60, %c1_61, %c0_62, %c0_63] : memref<1x8x8x16xbf16, #tpu.memory_space<vmem>>, vector<1x1x8x16xbf16>
    %84 = vector.shape_cast %83 : vector<1x1x8x16xbf16> to vector<8x16xbf16>
    %85 = vector.shape_cast %82 : vector<8x16xbf16> to vector<1x1x8x16xbf16>
    tpu.vector_store %arg5[%c0_60, %c1_61, %c0_62, %c0_63], %85 {strides = array<i32>} : memref<1x8x8x16xbf16, #tpu.memory_space<vmem>>, vector<1x1x8x16xbf16>,
    %c8_i32_64 = arith.constant 8 : i32
    %86 = arith.muli %arg1, %c8_i32_64 : i32
    %c2_i32 = arith.constant 2 : i32
    %87 = arith.addi %86, %c2_i32 : i32
    %cst_65 = arith.constant 0.000000e+00 : f32
    %88 = vector.broadcast %cst_65 : f32 to vector<9x16xf32>
    %cst_66 = arith.constant 0.000000e+00 : f32
    %89 = vector.broadcast %cst_66 : f32 to vector<9x16xf32>
    %c0_i32_67 = arith.constant 0 : i32
    %90 = arith.addi %87, %c0_i32_67 : i32
    %c0_68 = arith.constant 0 : index
    %91 = arith.index_cast %90 : i32 to index
    %c0_69 = arith.constant 0 : index
    %c0_70 = arith.constant 0 : index
    %92 = vector.load %arg2[%c0_68, %91, %c0_69, %c0_70] : memref<1x9x9x4xbf16, #tpu.memory_space<vmem>>, vector<1x1x9x4xbf16>
    %93 = vector.shape_cast %92 : vector<1x1x9x4xbf16> to vector<9x4xbf16>
    %c0_71 = arith.constant 0 : index
    %c0_72 = arith.constant 0 : index
    %c0_73 = arith.constant 0 : index
    %94 = vector.load %arg3[%c0_71, %c0_72, %c0_73] : memref<4x4x16xbf16, #tpu.memory_space<vmem>>, vector<1x4x16xbf16>
    %95 = vector.shape_cast %94 : vector<1x4x16xbf16> to vector<4x16xbf16>
    %cst_74 = arith.constant dense<0.000000e+00> : vector<9x16xf32>
    %96 = tpu.matmul %93, %95, %cst_74 {dimension_numbers = #tpu.dot_dimension_numbers<[1], [0], [0], [1], [0, 0, 1, 1], [], []>} : vector<9x4xbf16>, vector<4x16xbf16>, vector<9x16xf32> -> vector<9x16xf32>
    %97 = arith.addf %88, %96 : vector<9x16xf32>
    %c1_75 = arith.constant 1 : index
    %c0_76 = arith.constant 0 : index
    %c0_77 = arith.constant 0 : index
    %98 = vector.load %arg3[%c1_75, %c0_76, %c0_77] : memref<4x4x16xbf16, #tpu.memory_space<vmem>>, vector<1x4x16xbf16>
    %99 = vector.shape_cast %98 : vector<1x4x16xbf16> to vector<4x16xbf16>
    %cst_78 = arith.constant dense<0.000000e+00> : vector<9x16xf32>
    %100 = tpu.matmul %93, %99, %cst_78 {dimension_numbers = #tpu.dot_dimension_numbers<[1], [0], [0], [1], [0, 0, 1, 1], [], []>} : vector<9x4xbf16>, vector<4x16xbf16>, vector<9x16xf32> -> vector<9x16xf32>
    %101 = arith.addf %89, %100 : vector<9x16xf32>
    %c1_i32_79 = arith.constant 1 : i32
    %102 = arith.addi %87, %c1_i32_79 : i32
    %c0_80 = arith.constant 0 : index
    %103 = arith.index_cast %102 : i32 to index
    %c0_81 = arith.constant 0 : index
    %c0_82 = arith.constant 0 : index
    %104 = vector.load %arg2[%c0_80, %103, %c0_81, %c0_82] : memref<1x9x9x4xbf16, #tpu.memory_space<vmem>>, vector<1x1x9x4xbf16>
    %105 = vector.shape_cast %104 : vector<1x1x9x4xbf16> to vector<9x4xbf16>
    %c2_83 = arith.constant 2 : index
    %c0_84 = arith.constant 0 : index
    %c0_85 = arith.constant 0 : index
    %106 = vector.load %arg3[%c2_83, %c0_84, %c0_85] : memref<4x4x16xbf16, #tpu.memory_space<vmem>>, vector<1x4x16xbf16>
    %107 = vector.shape_cast %106 : vector<1x4x16xbf16> to vector<4x16xbf16>
    %cst_86 = arith.constant dense<0.000000e+00> : vector<9x16xf32>
    %108 = tpu.matmul %105, %107, %cst_86 {dimension_numbers = #tpu.dot_dimension_numbers<[1], [0], [0], [1], [0, 0, 1, 1], [], []>} : vector<9x4xbf16>, vector<4x16xbf16>, vector<9x16xf32> -> vector<9x16xf32>
    %109 = arith.addf %97, %108 : vector<9x16xf32>
    %c3_87 = arith.constant 3 : index
    %c0_88 = arith.constant 0 : index
    %c0_89 = arith.constant 0 : index
    %110 = vector.load %arg3[%c3_87, %c0_88, %c0_89] : memref<4x4x16xbf16, #tpu.memory_space<vmem>>, vector<1x4x16xbf16>
    %111 = vector.shape_cast %110 : vector<1x4x16xbf16> to vector<4x16xbf16>
    %cst_90 = arith.constant dense<0.000000e+00> : vector<9x16xf32>
    %112 = tpu.matmul %105, %111, %cst_90 {dimension_numbers = #tpu.dot_dimension_numbers<[1], [0], [0], [1], [0, 0, 1, 1], [], []>} : vector<9x4xbf16>, vector<4x16xbf16>, vector<9x16xf32> -> vector<9x16xf32>
    %113 = arith.addf %101, %112 : vector<9x16xf32>
    %114 = vector.extract_strided_slice %109 {offsets = [0, 0], sizes = [8, 16], strides = [1, 1]} : vector<9x16xf32> to vector<8x16xf32>
    %115 = vector.extract_strided_slice %113 {offsets = [1, 0], sizes = [8, 16], strides = [1, 1]} : vector<9x16xf32> to vector<8x16xf32>
    %116 = arith.addf %114, %115 : vector<8x16xf32>
    %c0_91 = arith.constant 0 : index
    %c0_92 = arith.constant 0 : index
    %117 = vector.load %arg4[%c0_91, %c0_92] : memref<1x16xf32, #tpu.memory_space<vmem>>, vector<1x16xf32>
    %118 = vector.broadcast %117 : vector<1x16xf32> to vector<8x16xf32>
    %119 = arith.addf %116, %118 : vector<8x16xf32>
    %cst_93 = arith.constant 0.000000e+00 : f32
    %120 = vector.broadcast %cst_93 : f32 to vector<8x16xf32>
    %121 = arith.cmpf oge, %119, %120 : vector<8x16xf32>
    %cst_94 = arith.constant 2.000000e-01 : f32
    %122 = vector.broadcast %cst_94 : f32 to vector<8x16xf32>
    %123 = arith.mulf %122, %119 : vector<8x16xf32>
    %124 = arith.select %121, %119, %123 : vector<8x16xi1>, vector<8x16xf32>
    %125 = arith.truncf %124 : vector<8x16xf32> to vector<8x16xbf16>
    %c0_95 = arith.constant 0 : index
    %c2_96 = arith.constant 2 : index
    %c0_97 = arith.constant 0 : index
    %c0_98 = arith.constant 0 : index
    %126 = vector.load %arg5[%c0_95, %c2_96, %c0_97, %c0_98] : memref<1x8x8x16xbf16, #tpu.memory_space<vmem>>, vector<1x1x8x16xbf16>
    %127 = vector.shape_cast %126 : vector<1x1x8x16xbf16> to vector<8x16xbf16>
    %128 = vector.shape_cast %125 : vector<8x16xbf16> to vector<1x1x8x16xbf16>
    tpu.vector_store %arg5[%c0_95, %c2_96, %c0_97, %c0_98], %128 {strides = array<i32>} : memref<1x8x8x16xbf16, #tpu.memory_space<vmem>>, vector<1x1x8x16xbf16>,
    %c8_i32_99 = arith.constant 8 : i32
    %129 = arith.muli %arg1, %c8_i32_99 : i32
    %c3_i32 = arith.constant 3 : i32
    %130 = arith.addi %129, %c3_i32 : i32
    %cst_100 = arith.constant 0.000000e+00 : f32
    %131 = vector.broadcast %cst_100 : f32 to vector<9x16xf32>
    %cst_101 = arith.constant 0.000000e+00 : f32
    %132 = vector.broadcast %cst_101 : f32 to vector<9x16xf32>
    %c0_i32_102 = arith.constant 0 : i32
    %133 = arith.addi %130, %c0_i32_102 : i32
    %c0_103 = arith.constant 0 : index
    %134 = arith.index_cast %133 : i32 to index
    %c0_104 = arith.constant 0 : index
    %c0_105 = arith.constant 0 : index
    %135 = vector.load %arg2[%c0_103, %134, %c0_104, %c0_105] : memref<1x9x9x4xbf16, #tpu.memory_space<vmem>>, vector<1x1x9x4xbf16>
    %136 = vector.shape_cast %135 : vector<1x1x9x4xbf16> to vector<9x4xbf16>
    %c0_106 = arith.constant 0 : index
    %c0_107 = arith.constant 0 : index
    %c0_108 = arith.constant 0 : index
    %137 = vector.load %arg3[%c0_106, %c0_107, %c0_108] : memref<4x4x16xbf16, #tpu.memory_space<vmem>>, vector<1x4x16xbf16>
    %138 = vector.shape_cast %137 : vector<1x4x16xbf16> to vector<4x16xbf16>
    %cst_109 = arith.constant dense<0.000000e+00> : vector<9x16xf32>
    %139 = tpu.matmul %136, %138, %cst_109 {dimension_numbers = #tpu.dot_dimension_numbers<[1], [0], [0], [1], [0, 0, 1, 1], [], []>} : vector<9x4xbf16>, vector<4x16xbf16>, vector<9x16xf32> -> vector<9x16xf32>
    %140 = arith.addf %131, %139 : vector<9x16xf32>
    %c1_110 = arith.constant 1 : index
    %c0_111 = arith.constant 0 : index
    %c0_112 = arith.constant 0 : index
    %141 = vector.load %arg3[%c1_110, %c0_111, %c0_112] : memref<4x4x16xbf16, #tpu.memory_space<vmem>>, vector<1x4x16xbf16>
    %142 = vector.shape_cast %141 : vector<1x4x16xbf16> to vector<4x16xbf16>
    %cst_113 = arith.constant dense<0.000000e+00> : vector<9x16xf32>
    %143 = tpu.matmul %136, %142, %cst_113 {dimension_numbers = #tpu.dot_dimension_numbers<[1], [0], [0], [1], [0, 0, 1, 1], [], []>} : vector<9x4xbf16>, vector<4x16xbf16>, vector<9x16xf32> -> vector<9x16xf32>
    %144 = arith.addf %132, %143 : vector<9x16xf32>
    %c1_i32_114 = arith.constant 1 : i32
    %145 = arith.addi %130, %c1_i32_114 : i32
    %c0_115 = arith.constant 0 : index
    %146 = arith.index_cast %145 : i32 to index
    %c0_116 = arith.constant 0 : index
    %c0_117 = arith.constant 0 : index
    %147 = vector.load %arg2[%c0_115, %146, %c0_116, %c0_117] : memref<1x9x9x4xbf16, #tpu.memory_space<vmem>>, vector<1x1x9x4xbf16>
    %148 = vector.shape_cast %147 : vector<1x1x9x4xbf16> to vector<9x4xbf16>
    %c2_118 = arith.constant 2 : index
    %c0_119 = arith.constant 0 : index
    %c0_120 = arith.constant 0 : index
    %149 = vector.load %arg3[%c2_118, %c0_119, %c0_120] : memref<4x4x16xbf16, #tpu.memory_space<vmem>>, vector<1x4x16xbf16>
    %150 = vector.shape_cast %149 : vector<1x4x16xbf16> to vector<4x16xbf16>
    %cst_121 = arith.constant dense<0.000000e+00> : vector<9x16xf32>
    %151 = tpu.matmul %148, %150, %cst_121 {dimension_numbers = #tpu.dot_dimension_numbers<[1], [0], [0], [1], [0, 0, 1, 1], [], []>} : vector<9x4xbf16>, vector<4x16xbf16>, vector<9x16xf32> -> vector<9x16xf32>
    %152 = arith.addf %140, %151 : vector<9x16xf32>
    %c3_122 = arith.constant 3 : index
    %c0_123 = arith.constant 0 : index
    %c0_124 = arith.constant 0 : index
    %153 = vector.load %arg3[%c3_122, %c0_123, %c0_124] : memref<4x4x16xbf16, #tpu.memory_space<vmem>>, vector<1x4x16xbf16>
    %154 = vector.shape_cast %153 : vector<1x4x16xbf16> to vector<4x16xbf16>
    %cst_125 = arith.constant dense<0.000000e+00> : vector<9x16xf32>
    %155 = tpu.matmul %148, %154, %cst_125 {dimension_numbers = #tpu.dot_dimension_numbers<[1], [0], [0], [1], [0, 0, 1, 1], [], []>} : vector<9x4xbf16>, vector<4x16xbf16>, vector<9x16xf32> -> vector<9x16xf32>
    %156 = arith.addf %144, %155 : vector<9x16xf32>
    %157 = vector.extract_strided_slice %152 {offsets = [0, 0], sizes = [8, 16], strides = [1, 1]} : vector<9x16xf32> to vector<8x16xf32>
    %158 = vector.extract_strided_slice %156 {offsets = [1, 0], sizes = [8, 16], strides = [1, 1]} : vector<9x16xf32> to vector<8x16xf32>
    %159 = arith.addf %157, %158 : vector<8x16xf32>
    %c0_126 = arith.constant 0 : index
    %c0_127 = arith.constant 0 : index
    %160 = vector.load %arg4[%c0_126, %c0_127] : memref<1x16xf32, #tpu.memory_space<vmem>>, vector<1x16xf32>
    %161 = vector.broadcast %160 : vector<1x16xf32> to vector<8x16xf32>
    %162 = arith.addf %159, %161 : vector<8x16xf32>
    %cst_128 = arith.constant 0.000000e+00 : f32
    %163 = vector.broadcast %cst_128 : f32 to vector<8x16xf32>
    %164 = arith.cmpf oge, %162, %163 : vector<8x16xf32>
    %cst_129 = arith.constant 2.000000e-01 : f32
    %165 = vector.broadcast %cst_129 : f32 to vector<8x16xf32>
    %166 = arith.mulf %165, %162 : vector<8x16xf32>
    %167 = arith.select %164, %162, %166 : vector<8x16xi1>, vector<8x16xf32>
    %168 = arith.truncf %167 : vector<8x16xf32> to vector<8x16xbf16>
    %c0_130 = arith.constant 0 : index
    %c3_131 = arith.constant 3 : index
    %c0_132 = arith.constant 0 : index
    %c0_133 = arith.constant 0 : index
    %169 = vector.load %arg5[%c0_130, %c3_131, %c0_132, %c0_133] : memref<1x8x8x16xbf16, #tpu.memory_space<vmem>>, vector<1x1x8x16xbf16>
    %170 = vector.shape_cast %169 : vector<1x1x8x16xbf16> to vector<8x16xbf16>
    %171 = vector.shape_cast %168 : vector<8x16xbf16> to vector<1x1x8x16xbf16>
    tpu.vector_store %arg5[%c0_130, %c3_131, %c0_132, %c0_133], %171 {strides = array<i32>} : memref<1x8x8x16xbf16, #tpu.memory_space<vmem>>, vector<1x1x8x16xbf16>,
    %c8_i32_134 = arith.constant 8 : i32
    %172 = arith.muli %arg1, %c8_i32_134 : i32
    %c4_i32 = arith.constant 4 : i32
    %173 = arith.addi %172, %c4_i32 : i32
    %cst_135 = arith.constant 0.000000e+00 : f32
    %174 = vector.broadcast %cst_135 : f32 to vector<9x16xf32>
    %cst_136 = arith.constant 0.000000e+00 : f32
    %175 = vector.broadcast %cst_136 : f32 to vector<9x16xf32>
    %c0_i32_137 = arith.constant 0 : i32
    %176 = arith.addi %173, %c0_i32_137 : i32
    %c0_138 = arith.constant 0 : index
    %177 = arith.index_cast %176 : i32 to index
    %c0_139 = arith.constant 0 : index
    %c0_140 = arith.constant 0 : index
    %178 = vector.load %arg2[%c0_138, %177, %c0_139, %c0_140] : memref<1x9x9x4xbf16, #tpu.memory_space<vmem>>, vector<1x1x9x4xbf16>
    %179 = vector.shape_cast %178 : vector<1x1x9x4xbf16> to vector<9x4xbf16>
    %c0_141 = arith.constant 0 : index
    %c0_142 = arith.constant 0 : index
    %c0_143 = arith.constant 0 : index
    %180 = vector.load %arg3[%c0_141, %c0_142, %c0_143] : memref<4x4x16xbf16, #tpu.memory_space<vmem>>, vector<1x4x16xbf16>
    %181 = vector.shape_cast %180 : vector<1x4x16xbf16> to vector<4x16xbf16>
    %cst_144 = arith.constant dense<0.000000e+00> : vector<9x16xf32>
    %182 = tpu.matmul %179, %181, %cst_144 {dimension_numbers = #tpu.dot_dimension_numbers<[1], [0], [0], [1], [0, 0, 1, 1], [], []>} : vector<9x4xbf16>, vector<4x16xbf16>, vector<9x16xf32> -> vector<9x16xf32>
    %183 = arith.addf %174, %182 : vector<9x16xf32>
    %c1_145 = arith.constant 1 : index
    %c0_146 = arith.constant 0 : index
    %c0_147 = arith.constant 0 : index
    %184 = vector.load %arg3[%c1_145, %c0_146, %c0_147] : memref<4x4x16xbf16, #tpu.memory_space<vmem>>, vector<1x4x16xbf16>
    %185 = vector.shape_cast %184 : vector<1x4x16xbf16> to vector<4x16xbf16>
    %cst_148 = arith.constant dense<0.000000e+00> : vector<9x16xf32>
    %186 = tpu.matmul %179, %185, %cst_148 {dimension_numbers = #tpu.dot_dimension_numbers<[1], [0], [0], [1], [0, 0, 1, 1], [], []>} : vector<9x4xbf16>, vector<4x16xbf16>, vector<9x16xf32> -> vector<9x16xf32>
    %187 = arith.addf %175, %186 : vector<9x16xf32>
    %c1_i32_149 = arith.constant 1 : i32
    %188 = arith.addi %173, %c1_i32_149 : i32
    %c0_150 = arith.constant 0 : index
    %189 = arith.index_cast %188 : i32 to index
    %c0_151 = arith.constant 0 : index
    %c0_152 = arith.constant 0 : index
    %190 = vector.load %arg2[%c0_150, %189, %c0_151, %c0_152] : memref<1x9x9x4xbf16, #tpu.memory_space<vmem>>, vector<1x1x9x4xbf16>
    %191 = vector.shape_cast %190 : vector<1x1x9x4xbf16> to vector<9x4xbf16>
    %c2_153 = arith.constant 2 : index
    %c0_154 = arith.constant 0 : index
    %c0_155 = arith.constant 0 : index
    %192 = vector.load %arg3[%c2_153, %c0_154, %c0_155] : memref<4x4x16xbf16, #tpu.memory_space<vmem>>, vector<1x4x16xbf16>
    %193 = vector.shape_cast %192 : vector<1x4x16xbf16> to vector<4x16xbf16>
    %cst_156 = arith.constant dense<0.000000e+00> : vector<9x16xf32>
    %194 = tpu.matmul %191, %193, %cst_156 {dimension_numbers = #tpu.dot_dimension_numbers<[1], [0], [0], [1], [0, 0, 1, 1], [], []>} : vector<9x4xbf16>, vector<4x16xbf16>, vector<9x16xf32> -> vector<9x16xf32>
    %195 = arith.addf %183, %194 : vector<9x16xf32>
    %c3_157 = arith.constant 3 : index
    %c0_158 = arith.constant 0 : index
    %c0_159 = arith.constant 0 : index
    %196 = vector.load %arg3[%c3_157, %c0_158, %c0_159] : memref<4x4x16xbf16, #tpu.memory_space<vmem>>, vector<1x4x16xbf16>
    %197 = vector.shape_cast %196 : vector<1x4x16xbf16> to vector<4x16xbf16>
    %cst_160 = arith.constant dense<0.000000e+00> : vector<9x16xf32>
    %198 = tpu.matmul %191, %197, %cst_160 {dimension_numbers = #tpu.dot_dimension_numbers<[1], [0], [0], [1], [0, 0, 1, 1], [], []>} : vector<9x4xbf16>, vector<4x16xbf16>, vector<9x16xf32> -> vector<9x16xf32>
    %199 = arith.addf %187, %198 : vector<9x16xf32>
    %200 = vector.extract_strided_slice %195 {offsets = [0, 0], sizes = [8, 16], strides = [1, 1]} : vector<9x16xf32> to vector<8x16xf32>
    %201 = vector.extract_strided_slice %199 {offsets = [1, 0], sizes = [8, 16], strides = [1, 1]} : vector<9x16xf32> to vector<8x16xf32>
    %202 = arith.addf %200, %201 : vector<8x16xf32>
    %c0_161 = arith.constant 0 : index
    %c0_162 = arith.constant 0 : index
    %203 = vector.load %arg4[%c0_161, %c0_162] : memref<1x16xf32, #tpu.memory_space<vmem>>, vector<1x16xf32>
    %204 = vector.broadcast %203 : vector<1x16xf32> to vector<8x16xf32>
    %205 = arith.addf %202, %204 : vector<8x16xf32>
    %cst_163 = arith.constant 0.000000e+00 : f32
    %206 = vector.broadcast %cst_163 : f32 to vector<8x16xf32>
    %207 = arith.cmpf oge, %205, %206 : vector<8x16xf32>
    %cst_164 = arith.constant 2.000000e-01 : f32
    %208 = vector.broadcast %cst_164 : f32 to vector<8x16xf32>
    %209 = arith.mulf %208, %205 : vector<8x16xf32>
    %210 = arith.select %207, %205, %209 : vector<8x16xi1>, vector<8x16xf32>
    %211 = arith.truncf %210 : vector<8x16xf32> to vector<8x16xbf16>
    %c0_165 = arith.constant 0 : index
    %c4 = arith.constant 4 : index
    %c0_166 = arith.constant 0 : index
    %c0_167 = arith.constant 0 : index
    %212 = vector.load %arg5[%c0_165, %c4, %c0_166, %c0_167] : memref<1x8x8x16xbf16, #tpu.memory_space<vmem>>, vector<1x1x8x16xbf16>
    %213 = vector.shape_cast %212 : vector<1x1x8x16xbf16> to vector<8x16xbf16>
    %214 = vector.shape_cast %211 : vector<8x16xbf16> to vector<1x1x8x16xbf16>
    tpu.vector_store %arg5[%c0_165, %c4, %c0_166, %c0_167], %214 {strides = array<i32>} : memref<1x8x8x16xbf16, #tpu.memory_space<vmem>>, vector<1x1x8x16xbf16>,
    %c8_i32_168 = arith.constant 8 : i32
    %215 = arith.muli %arg1, %c8_i32_168 : i32
    %c5_i32 = arith.constant 5 : i32
    %216 = arith.addi %215, %c5_i32 : i32
    %cst_169 = arith.constant 0.000000e+00 : f32
    %217 = vector.broadcast %cst_169 : f32 to vector<9x16xf32>
    %cst_170 = arith.constant 0.000000e+00 : f32
    %218 = vector.broadcast %cst_170 : f32 to vector<9x16xf32>
    %c0_i32_171 = arith.constant 0 : i32
    %219 = arith.addi %216, %c0_i32_171 : i32
    %c0_172 = arith.constant 0 : index
    %220 = arith.index_cast %219 : i32 to index
    %c0_173 = arith.constant 0 : index
    %c0_174 = arith.constant 0 : index
    %221 = vector.load %arg2[%c0_172, %220, %c0_173, %c0_174] : memref<1x9x9x4xbf16, #tpu.memory_space<vmem>>, vector<1x1x9x4xbf16>
    %222 = vector.shape_cast %221 : vector<1x1x9x4xbf16> to vector<9x4xbf16>
    %c0_175 = arith.constant 0 : index
    %c0_176 = arith.constant 0 : index
    %c0_177 = arith.constant 0 : index
    %223 = vector.load %arg3[%c0_175, %c0_176, %c0_177] : memref<4x4x16xbf16, #tpu.memory_space<vmem>>, vector<1x4x16xbf16>
    %224 = vector.shape_cast %223 : vector<1x4x16xbf16> to vector<4x16xbf16>
    %cst_178 = arith.constant dense<0.000000e+00> : vector<9x16xf32>
    %225 = tpu.matmul %222, %224, %cst_178 {dimension_numbers = #tpu.dot_dimension_numbers<[1], [0], [0], [1], [0, 0, 1, 1], [], []>} : vector<9x4xbf16>, vector<4x16xbf16>, vector<9x16xf32> -> vector<9x16xf32>
    %226 = arith.addf %217, %225 : vector<9x16xf32>
    %c1_179 = arith.constant 1 : index
    %c0_180 = arith.constant 0 : index
    %c0_181 = arith.constant 0 : index
    %227 = vector.load %arg3[%c1_179, %c0_180, %c0_181] : memref<4x4x16xbf16, #tpu.memory_space<vmem>>, vector<1x4x16xbf16>
    %228 = vector.shape_cast %227 : vector<1x4x16xbf16> to vector<4x16xbf16>
    %cst_182 = arith.constant dense<0.000000e+00> : vector<9x16xf32>
    %229 = tpu.matmul %222, %228, %cst_182 {dimension_numbers = #tpu.dot_dimension_numbers<[1], [0], [0], [1], [0, 0, 1, 1], [], []>} : vector<9x4xbf16>, vector<4x16xbf16>, vector<9x16xf32> -> vector<9x16xf32>
    %230 = arith.addf %218, %229 : vector<9x16xf32>
    %c1_i32_183 = arith.constant 1 : i32
    %231 = arith.addi %216, %c1_i32_183 : i32
    %c0_184 = arith.constant 0 : index
    %232 = arith.index_cast %231 : i32 to index
    %c0_185 = arith.constant 0 : index
    %c0_186 = arith.constant 0 : index
    %233 = vector.load %arg2[%c0_184, %232, %c0_185, %c0_186] : memref<1x9x9x4xbf16, #tpu.memory_space<vmem>>, vector<1x1x9x4xbf16>
    %234 = vector.shape_cast %233 : vector<1x1x9x4xbf16> to vector<9x4xbf16>
    %c2_187 = arith.constant 2 : index
    %c0_188 = arith.constant 0 : index
    %c0_189 = arith.constant 0 : index
    %235 = vector.load %arg3[%c2_187, %c0_188, %c0_189] : memref<4x4x16xbf16, #tpu.memory_space<vmem>>, vector<1x4x16xbf16>
    %236 = vector.shape_cast %235 : vector<1x4x16xbf16> to vector<4x16xbf16>
    %cst_190 = arith.constant dense<0.000000e+00> : vector<9x16xf32>
    %237 = tpu.matmul %234, %236, %cst_190 {dimension_numbers = #tpu.dot_dimension_numbers<[1], [0], [0], [1], [0, 0, 1, 1], [], []>} : vector<9x4xbf16>, vector<4x16xbf16>, vector<9x16xf32> -> vector<9x16xf32>
    %238 = arith.addf %226, %237 : vector<9x16xf32>
    %c3_191 = arith.constant 3 : index
    %c0_192 = arith.constant 0 : index
    %c0_193 = arith.constant 0 : index
    %239 = vector.load %arg3[%c3_191, %c0_192, %c0_193] : memref<4x4x16xbf16, #tpu.memory_space<vmem>>, vector<1x4x16xbf16>
    %240 = vector.shape_cast %239 : vector<1x4x16xbf16> to vector<4x16xbf16>
    %cst_194 = arith.constant dense<0.000000e+00> : vector<9x16xf32>
    %241 = tpu.matmul %234, %240, %cst_194 {dimension_numbers = #tpu.dot_dimension_numbers<[1], [0], [0], [1], [0, 0, 1, 1], [], []>} : vector<9x4xbf16>, vector<4x16xbf16>, vector<9x16xf32> -> vector<9x16xf32>
    %242 = arith.addf %230, %241 : vector<9x16xf32>
    %243 = vector.extract_strided_slice %238 {offsets = [0, 0], sizes = [8, 16], strides = [1, 1]} : vector<9x16xf32> to vector<8x16xf32>
    %244 = vector.extract_strided_slice %242 {offsets = [1, 0], sizes = [8, 16], strides = [1, 1]} : vector<9x16xf32> to vector<8x16xf32>
    %245 = arith.addf %243, %244 : vector<8x16xf32>
    %c0_195 = arith.constant 0 : index
    %c0_196 = arith.constant 0 : index
    %246 = vector.load %arg4[%c0_195, %c0_196] : memref<1x16xf32, #tpu.memory_space<vmem>>, vector<1x16xf32>
    %247 = vector.broadcast %246 : vector<1x16xf32> to vector<8x16xf32>
    %248 = arith.addf %245, %247 : vector<8x16xf32>
    %cst_197 = arith.constant 0.000000e+00 : f32
    %249 = vector.broadcast %cst_197 : f32 to vector<8x16xf32>
    %250 = arith.cmpf oge, %248, %249 : vector<8x16xf32>
    %cst_198 = arith.constant 2.000000e-01 : f32
    %251 = vector.broadcast %cst_198 : f32 to vector<8x16xf32>
    %252 = arith.mulf %251, %248 : vector<8x16xf32>
    %253 = arith.select %250, %248, %252 : vector<8x16xi1>, vector<8x16xf32>
    %254 = arith.truncf %253 : vector<8x16xf32> to vector<8x16xbf16>
    %c0_199 = arith.constant 0 : index
    %c5 = arith.constant 5 : index
    %c0_200 = arith.constant 0 : index
    %c0_201 = arith.constant 0 : index
    %255 = vector.load %arg5[%c0_199, %c5, %c0_200, %c0_201] : memref<1x8x8x16xbf16, #tpu.memory_space<vmem>>, vector<1x1x8x16xbf16>
    %256 = vector.shape_cast %255 : vector<1x1x8x16xbf16> to vector<8x16xbf16>
    %257 = vector.shape_cast %254 : vector<8x16xbf16> to vector<1x1x8x16xbf16>
    tpu.vector_store %arg5[%c0_199, %c5, %c0_200, %c0_201], %257 {strides = array<i32>} : memref<1x8x8x16xbf16, #tpu.memory_space<vmem>>, vector<1x1x8x16xbf16>,
    %c8_i32_202 = arith.constant 8 : i32
    %258 = arith.muli %arg1, %c8_i32_202 : i32
    %c6_i32 = arith.constant 6 : i32
    %259 = arith.addi %258, %c6_i32 : i32
    %cst_203 = arith.constant 0.000000e+00 : f32
    %260 = vector.broadcast %cst_203 : f32 to vector<9x16xf32>
    %cst_204 = arith.constant 0.000000e+00 : f32
    %261 = vector.broadcast %cst_204 : f32 to vector<9x16xf32>
    %c0_i32_205 = arith.constant 0 : i32
    %262 = arith.addi %259, %c0_i32_205 : i32
    %c0_206 = arith.constant 0 : index
    %263 = arith.index_cast %262 : i32 to index
    %c0_207 = arith.constant 0 : index
    %c0_208 = arith.constant 0 : index
    %264 = vector.load %arg2[%c0_206, %263, %c0_207, %c0_208] : memref<1x9x9x4xbf16, #tpu.memory_space<vmem>>, vector<1x1x9x4xbf16>
    %265 = vector.shape_cast %264 : vector<1x1x9x4xbf16> to vector<9x4xbf16>
    %c0_209 = arith.constant 0 : index
    %c0_210 = arith.constant 0 : index
    %c0_211 = arith.constant 0 : index
    %266 = vector.load %arg3[%c0_209, %c0_210, %c0_211] : memref<4x4x16xbf16, #tpu.memory_space<vmem>>, vector<1x4x16xbf16>
    %267 = vector.shape_cast %266 : vector<1x4x16xbf16> to vector<4x16xbf16>
    %cst_212 = arith.constant dense<0.000000e+00> : vector<9x16xf32>
    %268 = tpu.matmul %265, %267, %cst_212 {dimension_numbers = #tpu.dot_dimension_numbers<[1], [0], [0], [1], [0, 0, 1, 1], [], []>} : vector<9x4xbf16>, vector<4x16xbf16>, vector<9x16xf32> -> vector<9x16xf32>
    %269 = arith.addf %260, %268 : vector<9x16xf32>
    %c1_213 = arith.constant 1 : index
    %c0_214 = arith.constant 0 : index
    %c0_215 = arith.constant 0 : index
    %270 = vector.load %arg3[%c1_213, %c0_214, %c0_215] : memref<4x4x16xbf16, #tpu.memory_space<vmem>>, vector<1x4x16xbf16>
    %271 = vector.shape_cast %270 : vector<1x4x16xbf16> to vector<4x16xbf16>
    %cst_216 = arith.constant dense<0.000000e+00> : vector<9x16xf32>
    %272 = tpu.matmul %265, %271, %cst_216 {dimension_numbers = #tpu.dot_dimension_numbers<[1], [0], [0], [1], [0, 0, 1, 1], [], []>} : vector<9x4xbf16>, vector<4x16xbf16>, vector<9x16xf32> -> vector<9x16xf32>
    %273 = arith.addf %261, %272 : vector<9x16xf32>
    %c1_i32_217 = arith.constant 1 : i32
    %274 = arith.addi %259, %c1_i32_217 : i32
    %c0_218 = arith.constant 0 : index
    %275 = arith.index_cast %274 : i32 to index
    %c0_219 = arith.constant 0 : index
    %c0_220 = arith.constant 0 : index
    %276 = vector.load %arg2[%c0_218, %275, %c0_219, %c0_220] : memref<1x9x9x4xbf16, #tpu.memory_space<vmem>>, vector<1x1x9x4xbf16>
    %277 = vector.shape_cast %276 : vector<1x1x9x4xbf16> to vector<9x4xbf16>
    %c2_221 = arith.constant 2 : index
    %c0_222 = arith.constant 0 : index
    %c0_223 = arith.constant 0 : index
    %278 = vector.load %arg3[%c2_221, %c0_222, %c0_223] : memref<4x4x16xbf16, #tpu.memory_space<vmem>>, vector<1x4x16xbf16>
    %279 = vector.shape_cast %278 : vector<1x4x16xbf16> to vector<4x16xbf16>
    %cst_224 = arith.constant dense<0.000000e+00> : vector<9x16xf32>
    %280 = tpu.matmul %277, %279, %cst_224 {dimension_numbers = #tpu.dot_dimension_numbers<[1], [0], [0], [1], [0, 0, 1, 1], [], []>} : vector<9x4xbf16>, vector<4x16xbf16>, vector<9x16xf32> -> vector<9x16xf32>
    %281 = arith.addf %269, %280 : vector<9x16xf32>
    %c3_225 = arith.constant 3 : index
    %c0_226 = arith.constant 0 : index
    %c0_227 = arith.constant 0 : index
    %282 = vector.load %arg3[%c3_225, %c0_226, %c0_227] : memref<4x4x16xbf16, #tpu.memory_space<vmem>>, vector<1x4x16xbf16>
    %283 = vector.shape_cast %282 : vector<1x4x16xbf16> to vector<4x16xbf16>
    %cst_228 = arith.constant dense<0.000000e+00> : vector<9x16xf32>
    %284 = tpu.matmul %277, %283, %cst_228 {dimension_numbers = #tpu.dot_dimension_numbers<[1], [0], [0], [1], [0, 0, 1, 1], [], []>} : vector<9x4xbf16>, vector<4x16xbf16>, vector<9x16xf32> -> vector<9x16xf32>
    %285 = arith.addf %273, %284 : vector<9x16xf32>
    %286 = vector.extract_strided_slice %281 {offsets = [0, 0], sizes = [8, 16], strides = [1, 1]} : vector<9x16xf32> to vector<8x16xf32>
    %287 = vector.extract_strided_slice %285 {offsets = [1, 0], sizes = [8, 16], strides = [1, 1]} : vector<9x16xf32> to vector<8x16xf32>
    %288 = arith.addf %286, %287 : vector<8x16xf32>
    %c0_229 = arith.constant 0 : index
    %c0_230 = arith.constant 0 : index
    %289 = vector.load %arg4[%c0_229, %c0_230] : memref<1x16xf32, #tpu.memory_space<vmem>>, vector<1x16xf32>
    %290 = vector.broadcast %289 : vector<1x16xf32> to vector<8x16xf32>
    %291 = arith.addf %288, %290 : vector<8x16xf32>
    %cst_231 = arith.constant 0.000000e+00 : f32
    %292 = vector.broadcast %cst_231 : f32 to vector<8x16xf32>
    %293 = arith.cmpf oge, %291, %292 : vector<8x16xf32>
    %cst_232 = arith.constant 2.000000e-01 : f32
    %294 = vector.broadcast %cst_232 : f32 to vector<8x16xf32>
    %295 = arith.mulf %294, %291 : vector<8x16xf32>
    %296 = arith.select %293, %291, %295 : vector<8x16xi1>, vector<8x16xf32>
    %297 = arith.truncf %296 : vector<8x16xf32> to vector<8x16xbf16>
    %c0_233 = arith.constant 0 : index
    %c6 = arith.constant 6 : index
    %c0_234 = arith.constant 0 : index
    %c0_235 = arith.constant 0 : index
    %298 = vector.load %arg5[%c0_233, %c6, %c0_234, %c0_235] : memref<1x8x8x16xbf16, #tpu.memory_space<vmem>>, vector<1x1x8x16xbf16>
    %299 = vector.shape_cast %298 : vector<1x1x8x16xbf16> to vector<8x16xbf16>
    %300 = vector.shape_cast %297 : vector<8x16xbf16> to vector<1x1x8x16xbf16>
    tpu.vector_store %arg5[%c0_233, %c6, %c0_234, %c0_235], %300 {strides = array<i32>} : memref<1x8x8x16xbf16, #tpu.memory_space<vmem>>, vector<1x1x8x16xbf16>,
    %c8_i32_236 = arith.constant 8 : i32
    %301 = arith.muli %arg1, %c8_i32_236 : i32
    %c7_i32 = arith.constant 7 : i32
    %302 = arith.addi %301, %c7_i32 : i32
    %cst_237 = arith.constant 0.000000e+00 : f32
    %303 = vector.broadcast %cst_237 : f32 to vector<9x16xf32>
    %cst_238 = arith.constant 0.000000e+00 : f32
    %304 = vector.broadcast %cst_238 : f32 to vector<9x16xf32>
    %c0_i32_239 = arith.constant 0 : i32
    %305 = arith.addi %302, %c0_i32_239 : i32
    %c0_240 = arith.constant 0 : index
    %306 = arith.index_cast %305 : i32 to index
    %c0_241 = arith.constant 0 : index
    %c0_242 = arith.constant 0 : index
    %307 = vector.load %arg2[%c0_240, %306, %c0_241, %c0_242] : memref<1x9x9x4xbf16, #tpu.memory_space<vmem>>, vector<1x1x9x4xbf16>
    %308 = vector.shape_cast %307 : vector<1x1x9x4xbf16> to vector<9x4xbf16>
    %c0_243 = arith.constant 0 : index
    %c0_244 = arith.constant 0 : index
    %c0_245 = arith.constant 0 : index
    %309 = vector.load %arg3[%c0_243, %c0_244, %c0_245] : memref<4x4x16xbf16, #tpu.memory_space<vmem>>, vector<1x4x16xbf16>
    %310 = vector.shape_cast %309 : vector<1x4x16xbf16> to vector<4x16xbf16>
    %cst_246 = arith.constant dense<0.000000e+00> : vector<9x16xf32>
    %311 = tpu.matmul %308, %310, %cst_246 {dimension_numbers = #tpu.dot_dimension_numbers<[1], [0], [0], [1], [0, 0, 1, 1], [], []>} : vector<9x4xbf16>, vector<4x16xbf16>, vector<9x16xf32> -> vector<9x16xf32>
    %312 = arith.addf %303, %311 : vector<9x16xf32>
    %c1_247 = arith.constant 1 : index
    %c0_248 = arith.constant 0 : index
    %c0_249 = arith.constant 0 : index
    %313 = vector.load %arg3[%c1_247, %c0_248, %c0_249] : memref<4x4x16xbf16, #tpu.memory_space<vmem>>, vector<1x4x16xbf16>
    %314 = vector.shape_cast %313 : vector<1x4x16xbf16> to vector<4x16xbf16>
    %cst_250 = arith.constant dense<0.000000e+00> : vector<9x16xf32>
    %315 = tpu.matmul %308, %314, %cst_250 {dimension_numbers = #tpu.dot_dimension_numbers<[1], [0], [0], [1], [0, 0, 1, 1], [], []>} : vector<9x4xbf16>, vector<4x16xbf16>, vector<9x16xf32> -> vector<9x16xf32>
    %316 = arith.addf %304, %315 : vector<9x16xf32>
    %c1_i32_251 = arith.constant 1 : i32
    %317 = arith.addi %302, %c1_i32_251 : i32
    %c0_252 = arith.constant 0 : index
    %318 = arith.index_cast %317 : i32 to index
    %c0_253 = arith.constant 0 : index
    %c0_254 = arith.constant 0 : index
    %319 = vector.load %arg2[%c0_252, %318, %c0_253, %c0_254] : memref<1x9x9x4xbf16, #tpu.memory_space<vmem>>, vector<1x1x9x4xbf16>
    %320 = vector.shape_cast %319 : vector<1x1x9x4xbf16> to vector<9x4xbf16>
    %c2_255 = arith.constant 2 : index
    %c0_256 = arith.constant 0 : index
    %c0_257 = arith.constant 0 : index
    %321 = vector.load %arg3[%c2_255, %c0_256, %c0_257] : memref<4x4x16xbf16, #tpu.memory_space<vmem>>, vector<1x4x16xbf16>
    %322 = vector.shape_cast %321 : vector<1x4x16xbf16> to vector<4x16xbf16>
    %cst_258 = arith.constant dense<0.000000e+00> : vector<9x16xf32>
    %323 = tpu.matmul %320, %322, %cst_258 {dimension_numbers = #tpu.dot_dimension_numbers<[1], [0], [0], [1], [0, 0, 1, 1], [], []>} : vector<9x4xbf16>, vector<4x16xbf16>, vector<9x16xf32> -> vector<9x16xf32>
    %324 = arith.addf %312, %323 : vector<9x16xf32>
    %c3_259 = arith.constant 3 : index
    %c0_260 = arith.constant 0 : index
    %c0_261 = arith.constant 0 : index
    %325 = vector.load %arg3[%c3_259, %c0_260, %c0_261] : memref<4x4x16xbf16, #tpu.memory_space<vmem>>, vector<1x4x16xbf16>
    %326 = vector.shape_cast %325 : vector<1x4x16xbf16> to vector<4x16xbf16>
    %cst_262 = arith.constant dense<0.000000e+00> : vector<9x16xf32>
    %327 = tpu.matmul %320, %326, %cst_262 {dimension_numbers = #tpu.dot_dimension_numbers<[1], [0], [0], [1], [0, 0, 1, 1], [], []>} : vector<9x4xbf16>, vector<4x16xbf16>, vector<9x16xf32> -> vector<9x16xf32>
    %328 = arith.addf %316, %327 : vector<9x16xf32>
    %329 = vector.extract_strided_slice %324 {offsets = [0, 0], sizes = [8, 16], strides = [1, 1]} : vector<9x16xf32> to vector<8x16xf32>
    %330 = vector.extract_strided_slice %328 {offsets = [1, 0], sizes = [8, 16], strides = [1, 1]} : vector<9x16xf32> to vector<8x16xf32>
    %331 = arith.addf %329, %330 : vector<8x16xf32>
    %c0_263 = arith.constant 0 : index
    %c0_264 = arith.constant 0 : index
    %332 = vector.load %arg4[%c0_263, %c0_264] : memref<1x16xf32, #tpu.memory_space<vmem>>, vector<1x16xf32>
    %333 = vector.broadcast %332 : vector<1x16xf32> to vector<8x16xf32>
    %334 = arith.addf %331, %333 : vector<8x16xf32>
    %cst_265 = arith.constant 0.000000e+00 : f32
    %335 = vector.broadcast %cst_265 : f32 to vector<8x16xf32>
    %336 = arith.cmpf oge, %334, %335 : vector<8x16xf32>
    %cst_266 = arith.constant 2.000000e-01 : f32
    %337 = vector.broadcast %cst_266 : f32 to vector<8x16xf32>
    %338 = arith.mulf %337, %334 : vector<8x16xf32>
    %339 = arith.select %336, %334, %338 : vector<8x16xi1>, vector<8x16xf32>
    %340 = arith.truncf %339 : vector<8x16xf32> to vector<8x16xbf16>
    %c0_267 = arith.constant 0 : index
    %c7 = arith.constant 7 : index
    %c0_268 = arith.constant 0 : index
    %c0_269 = arith.constant 0 : index
    %341 = vector.load %arg5[%c0_267, %c7, %c0_268, %c0_269] : memref<1x8x8x16xbf16, #tpu.memory_space<vmem>>, vector<1x1x8x16xbf16>
    %342 = vector.shape_cast %341 : vector<1x1x8x16xbf16> to vector<8x16xbf16>
    %343 = vector.shape_cast %340 : vector<8x16xbf16> to vector<1x1x8x16xbf16>
    tpu.vector_store %arg5[%c0_267, %c7, %c0_268, %c0_269], %343 {strides = array<i32>} : memref<1x8x8x16xbf16, #tpu.memory_space<vmem>>, vector<1x1x8x16xbf16>,
    return
  }
  func.func @transform_0(%arg0: i32, %arg1: i32) -> (i32, i32, i32, i32) {
    %c0_i32 = arith.constant 0 : i32
    %c0_i32_0 = arith.constant 0 : i32
    %c0_i32_1 = arith.constant 0 : i32
    %c0_i32_2 = arith.constant 0 : i32
    return %arg0, %c0_i32, %c0_i32_0, %c0_i32_1 : i32, i32, i32, i32
  }
  func.func @transform_1(%arg0: i32, %arg1: i32) -> (i32, i32, i32) {
    %c0_i32 = arith.constant 0 : i32
    %c0_i32_0 = arith.constant 0 : i32
    %c0_i32_1 = arith.constant 0 : i32
    %c0_i32_2 = arith.constant 0 : i32
    return %c0_i32, %c0_i32_0, %c0_i32_1 : i32, i32, i32
  }
  func.func @transform_2(%arg0: i32, %arg1: i32) -> (i32, i32) {
    %c0_i32 = arith.constant 0 : i32
    %c0_i32_0 = arith.constant 0 : i32
    %c0_i32_1 = arith.constant 0 : i32
    return %c0_i32, %c0_i32_0 : i32, i32
  }
  func.func @transform_3(%arg0: i32, %arg1: i32) -> (i32, i32, i32, i32) {
    %c0_i32 = arith.constant 0 : i32
    %c0_i32_0 = arith.constant 0 : i32
    %c0_i32_1 = arith.constant 0 : i32
    return %arg0, %arg1, %c0_i32, %c0_i32_0 : i32, i32, i32, i32
  }
}

module attributes {stable_mosaic.version = 11 : i64} {
  func.func @_conv_rows_kernel(%arg0: i32, %arg1: i32, %arg2: memref<1x5x5x64xbf16, #tpu.memory_space<vmem>>, %arg3: memref<4x64x32xbf16, #tpu.memory_space<vmem>>, %arg4: memref<1x32xf32, #tpu.memory_space<vmem>>, %arg5: memref<1x4x4x32xbf16, #tpu.memory_space<vmem>>) attributes {dimension_semantics = [#tpu.dimension_semantics<parallel>, #tpu.dimension_semantics<parallel>], iteration_bounds = array<i64: 2, 1>, scalar_prefetch = 0 : i64, scratch_operands = 0 : i64, tpu.core_type = #tpu.core_type<tc>, window_params = [{transform_indices = @transform_0, window_bounds = array<i64: 1, 5, 5, 64>}, {pipeline_mode = #tpu.pipeline_mode<synchronous>, transform_indices = @transform_1, window_bounds = array<i64: 4, 64, 32>}, {pipeline_mode = #tpu.pipeline_mode<synchronous>, transform_indices = @transform_2, window_bounds = array<i64: 1, 32>}, {transform_indices = @transform_3, window_bounds = array<i64: 1, 4, 4, 32>}]} {
    %c4_i32 = arith.constant 4 : i32
    %0 = arith.muli %arg1, %c4_i32 : i32
    %c0_i32 = arith.constant 0 : i32
    %1 = arith.addi %0, %c0_i32 : i32
    %cst = arith.constant 0.000000e+00 : f32
    %2 = vector.broadcast %cst : f32 to vector<5x32xf32>
    %cst_0 = arith.constant 0.000000e+00 : f32
    %3 = vector.broadcast %cst_0 : f32 to vector<5x32xf32>
    %c0_i32_1 = arith.constant 0 : i32
    %4 = arith.addi %1, %c0_i32_1 : i32
    %c0 = arith.constant 0 : index
    %5 = arith.index_cast %4 : i32 to index
    %c0_2 = arith.constant 0 : index
    %c0_3 = arith.constant 0 : index
    %6 = vector.load %arg2[%c0, %5, %c0_2, %c0_3] : memref<1x5x5x64xbf16, #tpu.memory_space<vmem>>, vector<1x1x5x64xbf16>
    %7 = vector.shape_cast %6 : vector<1x1x5x64xbf16> to vector<5x64xbf16>
    %c0_4 = arith.constant 0 : index
    %c0_5 = arith.constant 0 : index
    %c0_6 = arith.constant 0 : index
    %8 = vector.load %arg3[%c0_4, %c0_5, %c0_6] : memref<4x64x32xbf16, #tpu.memory_space<vmem>>, vector<1x64x32xbf16>
    %9 = vector.shape_cast %8 : vector<1x64x32xbf16> to vector<64x32xbf16>
    %cst_7 = arith.constant dense<0.000000e+00> : vector<5x32xf32>
    %10 = tpu.matmul %7, %9, %cst_7 {dimension_numbers = #tpu.dot_dimension_numbers<[1], [0], [0], [1], [0, 0, 1, 1], [], []>} : vector<5x64xbf16>, vector<64x32xbf16>, vector<5x32xf32> -> vector<5x32xf32>
    %11 = arith.addf %2, %10 : vector<5x32xf32>
    %c1 = arith.constant 1 : index
    %c0_8 = arith.constant 0 : index
    %c0_9 = arith.constant 0 : index
    %12 = vector.load %arg3[%c1, %c0_8, %c0_9] : memref<4x64x32xbf16, #tpu.memory_space<vmem>>, vector<1x64x32xbf16>
    %13 = vector.shape_cast %12 : vector<1x64x32xbf16> to vector<64x32xbf16>
    %cst_10 = arith.constant dense<0.000000e+00> : vector<5x32xf32>
    %14 = tpu.matmul %7, %13, %cst_10 {dimension_numbers = #tpu.dot_dimension_numbers<[1], [0], [0], [1], [0, 0, 1, 1], [], []>} : vector<5x64xbf16>, vector<64x32xbf16>, vector<5x32xf32> -> vector<5x32xf32>
    %15 = arith.addf %3, %14 : vector<5x32xf32>
    %c1_i32 = arith.constant 1 : i32
    %16 = arith.addi %1, %c1_i32 : i32
    %c0_11 = arith.constant 0 : index
    %17 = arith.index_cast %16 : i32 to index
    %c0_12 = arith.constant 0 : index
    %c0_13 = arith.constant 0 : index
    %18 = vector.load %arg2[%c0_11, %17, %c0_12, %c0_13] : memref<1x5x5x64xbf16, #tpu.memory_space<vmem>>, vector<1x1x5x64xbf16>
    %19 = vector.shape_cast %18 : vector<1x1x5x64xbf16> to vector<5x64xbf16>
    %c2 = arith.constant 2 : index
    %c0_14 = arith.constant 0 : index
    %c0_15 = arith.constant 0 : index
    %20 = vector.load %arg3[%c2, %c0_14, %c0_15] : memref<4x64x32xbf16, #tpu.memory_space<vmem>>, vector<1x64x32xbf16>
    %21 = vector.shape_cast %20 : vector<1x64x32xbf16> to vector<64x32xbf16>
    %cst_16 = arith.constant dense<0.000000e+00> : vector<5x32xf32>
    %22 = tpu.matmul %19, %21, %cst_16 {dimension_numbers = #tpu.dot_dimension_numbers<[1], [0], [0], [1], [0, 0, 1, 1], [], []>} : vector<5x64xbf16>, vector<64x32xbf16>, vector<5x32xf32> -> vector<5x32xf32>
    %23 = arith.addf %11, %22 : vector<5x32xf32>
    %c3 = arith.constant 3 : index
    %c0_17 = arith.constant 0 : index
    %c0_18 = arith.constant 0 : index
    %24 = vector.load %arg3[%c3, %c0_17, %c0_18] : memref<4x64x32xbf16, #tpu.memory_space<vmem>>, vector<1x64x32xbf16>
    %25 = vector.shape_cast %24 : vector<1x64x32xbf16> to vector<64x32xbf16>
    %cst_19 = arith.constant dense<0.000000e+00> : vector<5x32xf32>
    %26 = tpu.matmul %19, %25, %cst_19 {dimension_numbers = #tpu.dot_dimension_numbers<[1], [0], [0], [1], [0, 0, 1, 1], [], []>} : vector<5x64xbf16>, vector<64x32xbf16>, vector<5x32xf32> -> vector<5x32xf32>
    %27 = arith.addf %15, %26 : vector<5x32xf32>
    %28 = vector.extract_strided_slice %23 {offsets = [0, 0], sizes = [4, 32], strides = [1, 1]} : vector<5x32xf32> to vector<4x32xf32>
    %29 = vector.extract_strided_slice %27 {offsets = [1, 0], sizes = [4, 32], strides = [1, 1]} : vector<5x32xf32> to vector<4x32xf32>
    %30 = arith.addf %28, %29 : vector<4x32xf32>
    %c0_20 = arith.constant 0 : index
    %c0_21 = arith.constant 0 : index
    %31 = vector.load %arg4[%c0_20, %c0_21] : memref<1x32xf32, #tpu.memory_space<vmem>>, vector<1x32xf32>
    %32 = vector.broadcast %31 : vector<1x32xf32> to vector<4x32xf32>
    %33 = arith.addf %30, %32 : vector<4x32xf32>
    %cst_22 = arith.constant 0.000000e+00 : f32
    %34 = vector.broadcast %cst_22 : f32 to vector<4x32xf32>
    %35 = arith.cmpf oge, %33, %34 : vector<4x32xf32>
    %cst_23 = arith.constant 2.000000e-01 : f32
    %36 = vector.broadcast %cst_23 : f32 to vector<4x32xf32>
    %37 = arith.mulf %36, %33 : vector<4x32xf32>
    %38 = arith.select %35, %33, %37 : vector<4x32xi1>, vector<4x32xf32>
    %39 = arith.truncf %38 : vector<4x32xf32> to vector<4x32xbf16>
    %c0_24 = arith.constant 0 : index
    %c0_25 = arith.constant 0 : index
    %c0_26 = arith.constant 0 : index
    %c0_27 = arith.constant 0 : index
    %40 = vector.load %arg5[%c0_24, %c0_25, %c0_26, %c0_27] : memref<1x4x4x32xbf16, #tpu.memory_space<vmem>>, vector<1x1x4x32xbf16>
    %41 = vector.shape_cast %40 : vector<1x1x4x32xbf16> to vector<4x32xbf16>
    %42 = vector.shape_cast %39 : vector<4x32xbf16> to vector<1x1x4x32xbf16>
    tpu.vector_store %arg5[%c0_24, %c0_25, %c0_26, %c0_27], %42 {strides = array<i32>} : memref<1x4x4x32xbf16, #tpu.memory_space<vmem>>, vector<1x1x4x32xbf16>,
    %c4_i32_28 = arith.constant 4 : i32
    %43 = arith.muli %arg1, %c4_i32_28 : i32
    %c1_i32_29 = arith.constant 1 : i32
    %44 = arith.addi %43, %c1_i32_29 : i32
    %cst_30 = arith.constant 0.000000e+00 : f32
    %45 = vector.broadcast %cst_30 : f32 to vector<5x32xf32>
    %cst_31 = arith.constant 0.000000e+00 : f32
    %46 = vector.broadcast %cst_31 : f32 to vector<5x32xf32>
    %c0_i32_32 = arith.constant 0 : i32
    %47 = arith.addi %44, %c0_i32_32 : i32
    %c0_33 = arith.constant 0 : index
    %48 = arith.index_cast %47 : i32 to index
    %c0_34 = arith.constant 0 : index
    %c0_35 = arith.constant 0 : index
    %49 = vector.load %arg2[%c0_33, %48, %c0_34, %c0_35] : memref<1x5x5x64xbf16, #tpu.memory_space<vmem>>, vector<1x1x5x64xbf16>
    %50 = vector.shape_cast %49 : vector<1x1x5x64xbf16> to vector<5x64xbf16>
    %c0_36 = arith.constant 0 : index
    %c0_37 = arith.constant 0 : index
    %c0_38 = arith.constant 0 : index
    %51 = vector.load %arg3[%c0_36, %c0_37, %c0_38] : memref<4x64x32xbf16, #tpu.memory_space<vmem>>, vector<1x64x32xbf16>
    %52 = vector.shape_cast %51 : vector<1x64x32xbf16> to vector<64x32xbf16>
    %cst_39 = arith.constant dense<0.000000e+00> : vector<5x32xf32>
    %53 = tpu.matmul %50, %52, %cst_39 {dimension_numbers = #tpu.dot_dimension_numbers<[1], [0], [0], [1], [0, 0, 1, 1], [], []>} : vector<5x64xbf16>, vector<64x32xbf16>, vector<5x32xf32> -> vector<5x32xf32>
    %54 = arith.addf %45, %53 : vector<5x32xf32>
    %c1_40 = arith.constant 1 : index
    %c0_41 = arith.constant 0 : index
    %c0_42 = arith.constant 0 : index
    %55 = vector.load %arg3[%c1_40, %c0_41, %c0_42] : memref<4x64x32xbf16, #tpu.memory_space<vmem>>, vector<1x64x32xbf16>
    %56 = vector.shape_cast %55 : vector<1x64x32xbf16> to vector<64x32xbf16>
    %cst_43 = arith.constant dense<0.000000e+00> : vector<5x32xf32>
    %57 = tpu.matmul %50, %56, %cst_43 {dimension_numbers = #tpu.dot_dimension_numbers<[1], [0], [0], [1], [0, 0, 1, 1], [], []>} : vector<5x64xbf16>, vector<64x32xbf16>, vector<5x32xf32> -> vector<5x32xf32>
    %58 = arith.addf %46, %57 : vector<5x32xf32>
    %c1_i32_44 = arith.constant 1 : i32
    %59 = arith.addi %44, %c1_i32_44 : i32
    %c0_45 = arith.constant 0 : index
    %60 = arith.index_cast %59 : i32 to index
    %c0_46 = arith.constant 0 : index
    %c0_47 = arith.constant 0 : index
    %61 = vector.load %arg2[%c0_45, %60, %c0_46, %c0_47] : memref<1x5x5x64xbf16, #tpu.memory_space<vmem>>, vector<1x1x5x64xbf16>
    %62 = vector.shape_cast %61 : vector<1x1x5x64xbf16> to vector<5x64xbf16>
    %c2_48 = arith.constant 2 : index
    %c0_49 = arith.constant 0 : index
    %c0_50 = arith.constant 0 : index
    %63 = vector.load %arg3[%c2_48, %c0_49, %c0_50] : memref<4x64x32xbf16, #tpu.memory_space<vmem>>, vector<1x64x32xbf16>
    %64 = vector.shape_cast %63 : vector<1x64x32xbf16> to vector<64x32xbf16>
    %cst_51 = arith.constant dense<0.000000e+00> : vector<5x32xf32>
    %65 = tpu.matmul %62, %64, %cst_51 {dimension_numbers = #tpu.dot_dimension_numbers<[1], [0], [0], [1], [0, 0, 1, 1], [], []>} : vector<5x64xbf16>, vector<64x32xbf16>, vector<5x32xf32> -> vector<5x32xf32>
    %66 = arith.addf %54, %65 : vector<5x32xf32>
    %c3_52 = arith.constant 3 : index
    %c0_53 = arith.constant 0 : index
    %c0_54 = arith.constant 0 : index
    %67 = vector.load %arg3[%c3_52, %c0_53, %c0_54] : memref<4x64x32xbf16, #tpu.memory_space<vmem>>, vector<1x64x32xbf16>
    %68 = vector.shape_cast %67 : vector<1x64x32xbf16> to vector<64x32xbf16>
    %cst_55 = arith.constant dense<0.000000e+00> : vector<5x32xf32>
    %69 = tpu.matmul %62, %68, %cst_55 {dimension_numbers = #tpu.dot_dimension_numbers<[1], [0], [0], [1], [0, 0, 1, 1], [], []>} : vector<5x64xbf16>, vector<64x32xbf16>, vector<5x32xf32> -> vector<5x32xf32>
    %70 = arith.addf %58, %69 : vector<5x32xf32>
    %71 = vector.extract_strided_slice %66 {offsets = [0, 0], sizes = [4, 32], strides = [1, 1]} : vector<5x32xf32> to vector<4x32xf32>
    %72 = vector.extract_strided_slice %70 {offsets = [1, 0], sizes = [4, 32], strides = [1, 1]} : vector<5x32xf32> to vector<4x32xf32>
    %73 = arith.addf %71, %72 : vector<4x32xf32>
    %c0_56 = arith.constant 0 : index
    %c0_57 = arith.constant 0 : index
    %74 = vector.load %arg4[%c0_56, %c0_57] : memref<1x32xf32, #tpu.memory_space<vmem>>, vector<1x32xf32>
    %75 = vector.broadcast %74 : vector<1x32xf32> to vector<4x32xf32>
    %76 = arith.addf %73, %75 : vector<4x32xf32>
    %cst_58 = arith.constant 0.000000e+00 : f32
    %77 = vector.broadcast %cst_58 : f32 to vector<4x32xf32>
    %78 = arith.cmpf oge, %76, %77 : vector<4x32xf32>
    %cst_59 = arith.constant 2.000000e-01 : f32
    %79 = vector.broadcast %cst_59 : f32 to vector<4x32xf32>
    %80 = arith.mulf %79, %76 : vector<4x32xf32>
    %81 = arith.select %78, %76, %80 : vector<4x32xi1>, vector<4x32xf32>
    %82 = arith.truncf %81 : vector<4x32xf32> to vector<4x32xbf16>
    %c0_60 = arith.constant 0 : index
    %c1_61 = arith.constant 1 : index
    %c0_62 = arith.constant 0 : index
    %c0_63 = arith.constant 0 : index
    %83 = vector.load %arg5[%c0_60, %c1_61, %c0_62, %c0_63] : memref<1x4x4x32xbf16, #tpu.memory_space<vmem>>, vector<1x1x4x32xbf16>
    %84 = vector.shape_cast %83 : vector<1x1x4x32xbf16> to vector<4x32xbf16>
    %85 = vector.shape_cast %82 : vector<4x32xbf16> to vector<1x1x4x32xbf16>
    tpu.vector_store %arg5[%c0_60, %c1_61, %c0_62, %c0_63], %85 {strides = array<i32>} : memref<1x4x4x32xbf16, #tpu.memory_space<vmem>>, vector<1x1x4x32xbf16>,
    %c4_i32_64 = arith.constant 4 : i32
    %86 = arith.muli %arg1, %c4_i32_64 : i32
    %c2_i32 = arith.constant 2 : i32
    %87 = arith.addi %86, %c2_i32 : i32
    %cst_65 = arith.constant 0.000000e+00 : f32
    %88 = vector.broadcast %cst_65 : f32 to vector<5x32xf32>
    %cst_66 = arith.constant 0.000000e+00 : f32
    %89 = vector.broadcast %cst_66 : f32 to vector<5x32xf32>
    %c0_i32_67 = arith.constant 0 : i32
    %90 = arith.addi %87, %c0_i32_67 : i32
    %c0_68 = arith.constant 0 : index
    %91 = arith.index_cast %90 : i32 to index
    %c0_69 = arith.constant 0 : index
    %c0_70 = arith.constant 0 : index
    %92 = vector.load %arg2[%c0_68, %91, %c0_69, %c0_70] : memref<1x5x5x64xbf16, #tpu.memory_space<vmem>>, vector<1x1x5x64xbf16>
    %93 = vector.shape_cast %92 : vector<1x1x5x64xbf16> to vector<5x64xbf16>
    %c0_71 = arith.constant 0 : index
    %c0_72 = arith.constant 0 : index
    %c0_73 = arith.constant 0 : index
    %94 = vector.load %arg3[%c0_71, %c0_72, %c0_73] : memref<4x64x32xbf16, #tpu.memory_space<vmem>>, vector<1x64x32xbf16>
    %95 = vector.shape_cast %94 : vector<1x64x32xbf16> to vector<64x32xbf16>
    %cst_74 = arith.constant dense<0.000000e+00> : vector<5x32xf32>
    %96 = tpu.matmul %93, %95, %cst_74 {dimension_numbers = #tpu.dot_dimension_numbers<[1], [0], [0], [1], [0, 0, 1, 1], [], []>} : vector<5x64xbf16>, vector<64x32xbf16>, vector<5x32xf32> -> vector<5x32xf32>
    %97 = arith.addf %88, %96 : vector<5x32xf32>
    %c1_75 = arith.constant 1 : index
    %c0_76 = arith.constant 0 : index
    %c0_77 = arith.constant 0 : index
    %98 = vector.load %arg3[%c1_75, %c0_76, %c0_77] : memref<4x64x32xbf16, #tpu.memory_space<vmem>>, vector<1x64x32xbf16>
    %99 = vector.shape_cast %98 : vector<1x64x32xbf16> to vector<64x32xbf16>
    %cst_78 = arith.constant dense<0.000000e+00> : vector<5x32xf32>
    %100 = tpu.matmul %93, %99, %cst_78 {dimension_numbers = #tpu.dot_dimension_numbers<[1], [0], [0], [1], [0, 0, 1, 1], [], []>} : vector<5x64xbf16>, vector<64x32xbf16>, vector<5x32xf32> -> vector<5x32xf32>
    %101 = arith.addf %89, %100 : vector<5x32xf32>
    %c1_i32_79 = arith.constant 1 : i32
    %102 = arith.addi %87, %c1_i32_79 : i32
    %c0_80 = arith.constant 0 : index
    %103 = arith.index_cast %102 : i32 to index
    %c0_81 = arith.constant 0 : index
    %c0_82 = arith.constant 0 : index
    %104 = vector.load %arg2[%c0_80, %103, %c0_81, %c0_82] : memref<1x5x5x64xbf16, #tpu.memory_space<vmem>>, vector<1x1x5x64xbf16>
    %105 = vector.shape_cast %104 : vector<1x1x5x64xbf16> to vector<5x64xbf16>
    %c2_83 = arith.constant 2 : index
    %c0_84 = arith.constant 0 : index
    %c0_85 = arith.constant 0 : index
    %106 = vector.load %arg3[%c2_83, %c0_84, %c0_85] : memref<4x64x32xbf16, #tpu.memory_space<vmem>>, vector<1x64x32xbf16>
    %107 = vector.shape_cast %106 : vector<1x64x32xbf16> to vector<64x32xbf16>
    %cst_86 = arith.constant dense<0.000000e+00> : vector<5x32xf32>
    %108 = tpu.matmul %105, %107, %cst_86 {dimension_numbers = #tpu.dot_dimension_numbers<[1], [0], [0], [1], [0, 0, 1, 1], [], []>} : vector<5x64xbf16>, vector<64x32xbf16>, vector<5x32xf32> -> vector<5x32xf32>
    %109 = arith.addf %97, %108 : vector<5x32xf32>
    %c3_87 = arith.constant 3 : index
    %c0_88 = arith.constant 0 : index
    %c0_89 = arith.constant 0 : index
    %110 = vector.load %arg3[%c3_87, %c0_88, %c0_89] : memref<4x64x32xbf16, #tpu.memory_space<vmem>>, vector<1x64x32xbf16>
    %111 = vector.shape_cast %110 : vector<1x64x32xbf16> to vector<64x32xbf16>
    %cst_90 = arith.constant dense<0.000000e+00> : vector<5x32xf32>
    %112 = tpu.matmul %105, %111, %cst_90 {dimension_numbers = #tpu.dot_dimension_numbers<[1], [0], [0], [1], [0, 0, 1, 1], [], []>} : vector<5x64xbf16>, vector<64x32xbf16>, vector<5x32xf32> -> vector<5x32xf32>
    %113 = arith.addf %101, %112 : vector<5x32xf32>
    %114 = vector.extract_strided_slice %109 {offsets = [0, 0], sizes = [4, 32], strides = [1, 1]} : vector<5x32xf32> to vector<4x32xf32>
    %115 = vector.extract_strided_slice %113 {offsets = [1, 0], sizes = [4, 32], strides = [1, 1]} : vector<5x32xf32> to vector<4x32xf32>
    %116 = arith.addf %114, %115 : vector<4x32xf32>
    %c0_91 = arith.constant 0 : index
    %c0_92 = arith.constant 0 : index
    %117 = vector.load %arg4[%c0_91, %c0_92] : memref<1x32xf32, #tpu.memory_space<vmem>>, vector<1x32xf32>
    %118 = vector.broadcast %117 : vector<1x32xf32> to vector<4x32xf32>
    %119 = arith.addf %116, %118 : vector<4x32xf32>
    %cst_93 = arith.constant 0.000000e+00 : f32
    %120 = vector.broadcast %cst_93 : f32 to vector<4x32xf32>
    %121 = arith.cmpf oge, %119, %120 : vector<4x32xf32>
    %cst_94 = arith.constant 2.000000e-01 : f32
    %122 = vector.broadcast %cst_94 : f32 to vector<4x32xf32>
    %123 = arith.mulf %122, %119 : vector<4x32xf32>
    %124 = arith.select %121, %119, %123 : vector<4x32xi1>, vector<4x32xf32>
    %125 = arith.truncf %124 : vector<4x32xf32> to vector<4x32xbf16>
    %c0_95 = arith.constant 0 : index
    %c2_96 = arith.constant 2 : index
    %c0_97 = arith.constant 0 : index
    %c0_98 = arith.constant 0 : index
    %126 = vector.load %arg5[%c0_95, %c2_96, %c0_97, %c0_98] : memref<1x4x4x32xbf16, #tpu.memory_space<vmem>>, vector<1x1x4x32xbf16>
    %127 = vector.shape_cast %126 : vector<1x1x4x32xbf16> to vector<4x32xbf16>
    %128 = vector.shape_cast %125 : vector<4x32xbf16> to vector<1x1x4x32xbf16>
    tpu.vector_store %arg5[%c0_95, %c2_96, %c0_97, %c0_98], %128 {strides = array<i32>} : memref<1x4x4x32xbf16, #tpu.memory_space<vmem>>, vector<1x1x4x32xbf16>,
    %c4_i32_99 = arith.constant 4 : i32
    %129 = arith.muli %arg1, %c4_i32_99 : i32
    %c3_i32 = arith.constant 3 : i32
    %130 = arith.addi %129, %c3_i32 : i32
    %cst_100 = arith.constant 0.000000e+00 : f32
    %131 = vector.broadcast %cst_100 : f32 to vector<5x32xf32>
    %cst_101 = arith.constant 0.000000e+00 : f32
    %132 = vector.broadcast %cst_101 : f32 to vector<5x32xf32>
    %c0_i32_102 = arith.constant 0 : i32
    %133 = arith.addi %130, %c0_i32_102 : i32
    %c0_103 = arith.constant 0 : index
    %134 = arith.index_cast %133 : i32 to index
    %c0_104 = arith.constant 0 : index
    %c0_105 = arith.constant 0 : index
    %135 = vector.load %arg2[%c0_103, %134, %c0_104, %c0_105] : memref<1x5x5x64xbf16, #tpu.memory_space<vmem>>, vector<1x1x5x64xbf16>
    %136 = vector.shape_cast %135 : vector<1x1x5x64xbf16> to vector<5x64xbf16>
    %c0_106 = arith.constant 0 : index
    %c0_107 = arith.constant 0 : index
    %c0_108 = arith.constant 0 : index
    %137 = vector.load %arg3[%c0_106, %c0_107, %c0_108] : memref<4x64x32xbf16, #tpu.memory_space<vmem>>, vector<1x64x32xbf16>
    %138 = vector.shape_cast %137 : vector<1x64x32xbf16> to vector<64x32xbf16>
    %cst_109 = arith.constant dense<0.000000e+00> : vector<5x32xf32>
    %139 = tpu.matmul %136, %138, %cst_109 {dimension_numbers = #tpu.dot_dimension_numbers<[1], [0], [0], [1], [0, 0, 1, 1], [], []>} : vector<5x64xbf16>, vector<64x32xbf16>, vector<5x32xf32> -> vector<5x32xf32>
    %140 = arith.addf %131, %139 : vector<5x32xf32>
    %c1_110 = arith.constant 1 : index
    %c0_111 = arith.constant 0 : index
    %c0_112 = arith.constant 0 : index
    %141 = vector.load %arg3[%c1_110, %c0_111, %c0_112] : memref<4x64x32xbf16, #tpu.memory_space<vmem>>, vector<1x64x32xbf16>
    %142 = vector.shape_cast %141 : vector<1x64x32xbf16> to vector<64x32xbf16>
    %cst_113 = arith.constant dense<0.000000e+00> : vector<5x32xf32>
    %143 = tpu.matmul %136, %142, %cst_113 {dimension_numbers = #tpu.dot_dimension_numbers<[1], [0], [0], [1], [0, 0, 1, 1], [], []>} : vector<5x64xbf16>, vector<64x32xbf16>, vector<5x32xf32> -> vector<5x32xf32>
    %144 = arith.addf %132, %143 : vector<5x32xf32>
    %c1_i32_114 = arith.constant 1 : i32
    %145 = arith.addi %130, %c1_i32_114 : i32
    %c0_115 = arith.constant 0 : index
    %146 = arith.index_cast %145 : i32 to index
    %c0_116 = arith.constant 0 : index
    %c0_117 = arith.constant 0 : index
    %147 = vector.load %arg2[%c0_115, %146, %c0_116, %c0_117] : memref<1x5x5x64xbf16, #tpu.memory_space<vmem>>, vector<1x1x5x64xbf16>
    %148 = vector.shape_cast %147 : vector<1x1x5x64xbf16> to vector<5x64xbf16>
    %c2_118 = arith.constant 2 : index
    %c0_119 = arith.constant 0 : index
    %c0_120 = arith.constant 0 : index
    %149 = vector.load %arg3[%c2_118, %c0_119, %c0_120] : memref<4x64x32xbf16, #tpu.memory_space<vmem>>, vector<1x64x32xbf16>
    %150 = vector.shape_cast %149 : vector<1x64x32xbf16> to vector<64x32xbf16>
    %cst_121 = arith.constant dense<0.000000e+00> : vector<5x32xf32>
    %151 = tpu.matmul %148, %150, %cst_121 {dimension_numbers = #tpu.dot_dimension_numbers<[1], [0], [0], [1], [0, 0, 1, 1], [], []>} : vector<5x64xbf16>, vector<64x32xbf16>, vector<5x32xf32> -> vector<5x32xf32>
    %152 = arith.addf %140, %151 : vector<5x32xf32>
    %c3_122 = arith.constant 3 : index
    %c0_123 = arith.constant 0 : index
    %c0_124 = arith.constant 0 : index
    %153 = vector.load %arg3[%c3_122, %c0_123, %c0_124] : memref<4x64x32xbf16, #tpu.memory_space<vmem>>, vector<1x64x32xbf16>
    %154 = vector.shape_cast %153 : vector<1x64x32xbf16> to vector<64x32xbf16>
    %cst_125 = arith.constant dense<0.000000e+00> : vector<5x32xf32>
    %155 = tpu.matmul %148, %154, %cst_125 {dimension_numbers = #tpu.dot_dimension_numbers<[1], [0], [0], [1], [0, 0, 1, 1], [], []>} : vector<5x64xbf16>, vector<64x32xbf16>, vector<5x32xf32> -> vector<5x32xf32>
    %156 = arith.addf %144, %155 : vector<5x32xf32>
    %157 = vector.extract_strided_slice %152 {offsets = [0, 0], sizes = [4, 32], strides = [1, 1]} : vector<5x32xf32> to vector<4x32xf32>
    %158 = vector.extract_strided_slice %156 {offsets = [1, 0], sizes = [4, 32], strides = [1, 1]} : vector<5x32xf32> to vector<4x32xf32>
    %159 = arith.addf %157, %158 : vector<4x32xf32>
    %c0_126 = arith.constant 0 : index
    %c0_127 = arith.constant 0 : index
    %160 = vector.load %arg4[%c0_126, %c0_127] : memref<1x32xf32, #tpu.memory_space<vmem>>, vector<1x32xf32>
    %161 = vector.broadcast %160 : vector<1x32xf32> to vector<4x32xf32>
    %162 = arith.addf %159, %161 : vector<4x32xf32>
    %cst_128 = arith.constant 0.000000e+00 : f32
    %163 = vector.broadcast %cst_128 : f32 to vector<4x32xf32>
    %164 = arith.cmpf oge, %162, %163 : vector<4x32xf32>
    %cst_129 = arith.constant 2.000000e-01 : f32
    %165 = vector.broadcast %cst_129 : f32 to vector<4x32xf32>
    %166 = arith.mulf %165, %162 : vector<4x32xf32>
    %167 = arith.select %164, %162, %166 : vector<4x32xi1>, vector<4x32xf32>
    %168 = arith.truncf %167 : vector<4x32xf32> to vector<4x32xbf16>
    %c0_130 = arith.constant 0 : index
    %c3_131 = arith.constant 3 : index
    %c0_132 = arith.constant 0 : index
    %c0_133 = arith.constant 0 : index
    %169 = vector.load %arg5[%c0_130, %c3_131, %c0_132, %c0_133] : memref<1x4x4x32xbf16, #tpu.memory_space<vmem>>, vector<1x1x4x32xbf16>
    %170 = vector.shape_cast %169 : vector<1x1x4x32xbf16> to vector<4x32xbf16>
    %171 = vector.shape_cast %168 : vector<4x32xbf16> to vector<1x1x4x32xbf16>
    tpu.vector_store %arg5[%c0_130, %c3_131, %c0_132, %c0_133], %171 {strides = array<i32>} : memref<1x4x4x32xbf16, #tpu.memory_space<vmem>>, vector<1x1x4x32xbf16>,
    return
  }
  func.func @transform_0(%arg0: i32, %arg1: i32) -> (i32, i32, i32, i32) {
    %c0_i32 = arith.constant 0 : i32
    %c0_i32_0 = arith.constant 0 : i32
    %c0_i32_1 = arith.constant 0 : i32
    %c0_i32_2 = arith.constant 0 : i32
    return %arg0, %c0_i32, %c0_i32_0, %c0_i32_1 : i32, i32, i32, i32
  }
  func.func @transform_1(%arg0: i32, %arg1: i32) -> (i32, i32, i32) {
    %c0_i32 = arith.constant 0 : i32
    %c0_i32_0 = arith.constant 0 : i32
    %c0_i32_1 = arith.constant 0 : i32
    %c0_i32_2 = arith.constant 0 : i32
    return %c0_i32, %c0_i32_0, %c0_i32_1 : i32, i32, i32
  }
  func.func @transform_2(%arg0: i32, %arg1: i32) -> (i32, i32) {
    %c0_i32 = arith.constant 0 : i32
    %c0_i32_0 = arith.constant 0 : i32
    %c0_i32_1 = arith.constant 0 : i32
    return %c0_i32, %c0_i32_0 : i32, i32
  }
  func.func @transform_3(%arg0: i32, %arg1: i32) -> (i32, i32, i32, i32) {
    %c0_i32 = arith.constant 0 : i32
    %c0_i32_0 = arith.constant 0 : i32
    %c0_i32_1 = arith.constant 0 : i32
    return %arg0, %arg1, %c0_i32, %c0_i32_0 : i32, i32, i32, i32
  }
}

module attributes {stable_mosaic.version = 11 : i64} {
  func.func @_conv_rows_kernel(%arg0: i32, %arg1: i32, %arg2: memref<1x3x3x128xbf16, #tpu.memory_space<vmem>>, %arg3: memref<4x128x64xbf16, #tpu.memory_space<vmem>>, %arg4: memref<1x64xf32, #tpu.memory_space<vmem>>, %arg5: memref<1x2x2x64xbf16, #tpu.memory_space<vmem>>) attributes {dimension_semantics = [#tpu.dimension_semantics<parallel>, #tpu.dimension_semantics<parallel>], iteration_bounds = array<i64: 2, 1>, scalar_prefetch = 0 : i64, scratch_operands = 0 : i64, tpu.core_type = #tpu.core_type<tc>, window_params = [{transform_indices = @transform_0, window_bounds = array<i64: 1, 3, 3, 128>}, {pipeline_mode = #tpu.pipeline_mode<synchronous>, transform_indices = @transform_1, window_bounds = array<i64: 4, 128, 64>}, {pipeline_mode = #tpu.pipeline_mode<synchronous>, transform_indices = @transform_2, window_bounds = array<i64: 1, 64>}, {transform_indices = @transform_3, window_bounds = array<i64: 1, 2, 2, 64>}]} {
    %c2_i32 = arith.constant 2 : i32
    %0 = arith.muli %arg1, %c2_i32 : i32
    %c0_i32 = arith.constant 0 : i32
    %1 = arith.addi %0, %c0_i32 : i32
    %cst = arith.constant 0.000000e+00 : f32
    %2 = vector.broadcast %cst : f32 to vector<3x64xf32>
    %cst_0 = arith.constant 0.000000e+00 : f32
    %3 = vector.broadcast %cst_0 : f32 to vector<3x64xf32>
    %c0_i32_1 = arith.constant 0 : i32
    %4 = arith.addi %1, %c0_i32_1 : i32
    %c0 = arith.constant 0 : index
    %5 = arith.index_cast %4 : i32 to index
    %c0_2 = arith.constant 0 : index
    %c0_3 = arith.constant 0 : index
    %6 = vector.load %arg2[%c0, %5, %c0_2, %c0_3] : memref<1x3x3x128xbf16, #tpu.memory_space<vmem>>, vector<1x1x3x128xbf16>
    %7 = vector.shape_cast %6 : vector<1x1x3x128xbf16> to vector<3x128xbf16>
    %c0_4 = arith.constant 0 : index
    %c0_5 = arith.constant 0 : index
    %c0_6 = arith.constant 0 : index
    %8 = vector.load %arg3[%c0_4, %c0_5, %c0_6] : memref<4x128x64xbf16, #tpu.memory_space<vmem>>, vector<1x128x64xbf16>
    %9 = vector.shape_cast %8 : vector<1x128x64xbf16> to vector<128x64xbf16>
    %cst_7 = arith.constant dense<0.000000e+00> : vector<3x64xf32>
    %10 = tpu.matmul %7, %9, %cst_7 {dimension_numbers = #tpu.dot_dimension_numbers<[1], [0], [0], [1], [0, 0, 1, 1], [], []>} : vector<3x128xbf16>, vector<128x64xbf16>, vector<3x64xf32> -> vector<3x64xf32>
    %11 = arith.addf %2, %10 : vector<3x64xf32>
    %c1 = arith.constant 1 : index
    %c0_8 = arith.constant 0 : index
    %c0_9 = arith.constant 0 : index
    %12 = vector.load %arg3[%c1, %c0_8, %c0_9] : memref<4x128x64xbf16, #tpu.memory_space<vmem>>, vector<1x128x64xbf16>
    %13 = vector.shape_cast %12 : vector<1x128x64xbf16> to vector<128x64xbf16>
    %cst_10 = arith.constant dense<0.000000e+00> : vector<3x64xf32>
    %14 = tpu.matmul %7, %13, %cst_10 {dimension_numbers = #tpu.dot_dimension_numbers<[1], [0], [0], [1], [0, 0, 1, 1], [], []>} : vector<3x128xbf16>, vector<128x64xbf16>, vector<3x64xf32> -> vector<3x64xf32>
    %15 = arith.addf %3, %14 : vector<3x64xf32>
    %c1_i32 = arith.constant 1 : i32
    %16 = arith.addi %1, %c1_i32 : i32
    %c0_11 = arith.constant 0 : index
    %17 = arith.index_cast %16 : i32 to index
    %c0_12 = arith.constant 0 : index
    %c0_13 = arith.constant 0 : index
    %18 = vector.load %arg2[%c0_11, %17, %c0_12, %c0_13] : memref<1x3x3x128xbf16, #tpu.memory_space<vmem>>, vector<1x1x3x128xbf16>
    %19 = vector.shape_cast %18 : vector<1x1x3x128xbf16> to vector<3x128xbf16>
    %c2 = arith.constant 2 : index
    %c0_14 = arith.constant 0 : index
    %c0_15 = arith.constant 0 : index
    %20 = vector.load %arg3[%c2, %c0_14, %c0_15] : memref<4x128x64xbf16, #tpu.memory_space<vmem>>, vector<1x128x64xbf16>
    %21 = vector.shape_cast %20 : vector<1x128x64xbf16> to vector<128x64xbf16>
    %cst_16 = arith.constant dense<0.000000e+00> : vector<3x64xf32>
    %22 = tpu.matmul %19, %21, %cst_16 {dimension_numbers = #tpu.dot_dimension_numbers<[1], [0], [0], [1], [0, 0, 1, 1], [], []>} : vector<3x128xbf16>, vector<128x64xbf16>, vector<3x64xf32> -> vector<3x64xf32>
    %23 = arith.addf %11, %22 : vector<3x64xf32>
    %c3 = arith.constant 3 : index
    %c0_17 = arith.constant 0 : index
    %c0_18 = arith.constant 0 : index
    %24 = vector.load %arg3[%c3, %c0_17, %c0_18] : memref<4x128x64xbf16, #tpu.memory_space<vmem>>, vector<1x128x64xbf16>
    %25 = vector.shape_cast %24 : vector<1x128x64xbf16> to vector<128x64xbf16>
    %cst_19 = arith.constant dense<0.000000e+00> : vector<3x64xf32>
    %26 = tpu.matmul %19, %25, %cst_19 {dimension_numbers = #tpu.dot_dimension_numbers<[1], [0], [0], [1], [0, 0, 1, 1], [], []>} : vector<3x128xbf16>, vector<128x64xbf16>, vector<3x64xf32> -> vector<3x64xf32>
    %27 = arith.addf %15, %26 : vector<3x64xf32>
    %28 = vector.extract_strided_slice %23 {offsets = [0, 0], sizes = [2, 64], strides = [1, 1]} : vector<3x64xf32> to vector<2x64xf32>
    %29 = vector.extract_strided_slice %27 {offsets = [1, 0], sizes = [2, 64], strides = [1, 1]} : vector<3x64xf32> to vector<2x64xf32>
    %30 = arith.addf %28, %29 : vector<2x64xf32>
    %c0_20 = arith.constant 0 : index
    %c0_21 = arith.constant 0 : index
    %31 = vector.load %arg4[%c0_20, %c0_21] : memref<1x64xf32, #tpu.memory_space<vmem>>, vector<1x64xf32>
    %32 = vector.broadcast %31 : vector<1x64xf32> to vector<2x64xf32>
    %33 = arith.addf %30, %32 : vector<2x64xf32>
    %cst_22 = arith.constant 0.000000e+00 : f32
    %34 = vector.broadcast %cst_22 : f32 to vector<2x64xf32>
    %35 = arith.cmpf oge, %33, %34 : vector<2x64xf32>
    %cst_23 = arith.constant 2.000000e-01 : f32
    %36 = vector.broadcast %cst_23 : f32 to vector<2x64xf32>
    %37 = arith.mulf %36, %33 : vector<2x64xf32>
    %38 = arith.select %35, %33, %37 : vector<2x64xi1>, vector<2x64xf32>
    %39 = arith.truncf %38 : vector<2x64xf32> to vector<2x64xbf16>
    %c0_24 = arith.constant 0 : index
    %c0_25 = arith.constant 0 : index
    %c0_26 = arith.constant 0 : index
    %c0_27 = arith.constant 0 : index
    %40 = vector.load %arg5[%c0_24, %c0_25, %c0_26, %c0_27] : memref<1x2x2x64xbf16, #tpu.memory_space<vmem>>, vector<1x1x2x64xbf16>
    %41 = vector.shape_cast %40 : vector<1x1x2x64xbf16> to vector<2x64xbf16>
    %42 = vector.shape_cast %39 : vector<2x64xbf16> to vector<1x1x2x64xbf16>
    tpu.vector_store %arg5[%c0_24, %c0_25, %c0_26, %c0_27], %42 {strides = array<i32>} : memref<1x2x2x64xbf16, #tpu.memory_space<vmem>>, vector<1x1x2x64xbf16>,
    %c2_i32_28 = arith.constant 2 : i32
    %43 = arith.muli %arg1, %c2_i32_28 : i32
    %c1_i32_29 = arith.constant 1 : i32
    %44 = arith.addi %43, %c1_i32_29 : i32
    %cst_30 = arith.constant 0.000000e+00 : f32
    %45 = vector.broadcast %cst_30 : f32 to vector<3x64xf32>
    %cst_31 = arith.constant 0.000000e+00 : f32
    %46 = vector.broadcast %cst_31 : f32 to vector<3x64xf32>
    %c0_i32_32 = arith.constant 0 : i32
    %47 = arith.addi %44, %c0_i32_32 : i32
    %c0_33 = arith.constant 0 : index
    %48 = arith.index_cast %47 : i32 to index
    %c0_34 = arith.constant 0 : index
    %c0_35 = arith.constant 0 : index
    %49 = vector.load %arg2[%c0_33, %48, %c0_34, %c0_35] : memref<1x3x3x128xbf16, #tpu.memory_space<vmem>>, vector<1x1x3x128xbf16>
    %50 = vector.shape_cast %49 : vector<1x1x3x128xbf16> to vector<3x128xbf16>
    %c0_36 = arith.constant 0 : index
    %c0_37 = arith.constant 0 : index
    %c0_38 = arith.constant 0 : index
    %51 = vector.load %arg3[%c0_36, %c0_37, %c0_38] : memref<4x128x64xbf16, #tpu.memory_space<vmem>>, vector<1x128x64xbf16>
    %52 = vector.shape_cast %51 : vector<1x128x64xbf16> to vector<128x64xbf16>
    %cst_39 = arith.constant dense<0.000000e+00> : vector<3x64xf32>
    %53 = tpu.matmul %50, %52, %cst_39 {dimension_numbers = #tpu.dot_dimension_numbers<[1], [0], [0], [1], [0, 0, 1, 1], [], []>} : vector<3x128xbf16>, vector<128x64xbf16>, vector<3x64xf32> -> vector<3x64xf32>
    %54 = arith.addf %45, %53 : vector<3x64xf32>
    %c1_40 = arith.constant 1 : index
    %c0_41 = arith.constant 0 : index
    %c0_42 = arith.constant 0 : index
    %55 = vector.load %arg3[%c1_40, %c0_41, %c0_42] : memref<4x128x64xbf16, #tpu.memory_space<vmem>>, vector<1x128x64xbf16>
    %56 = vector.shape_cast %55 : vector<1x128x64xbf16> to vector<128x64xbf16>
    %cst_43 = arith.constant dense<0.000000e+00> : vector<3x64xf32>
    %57 = tpu.matmul %50, %56, %cst_43 {dimension_numbers = #tpu.dot_dimension_numbers<[1], [0], [0], [1], [0, 0, 1, 1], [], []>} : vector<3x128xbf16>, vector<128x64xbf16>, vector<3x64xf32> -> vector<3x64xf32>
    %58 = arith.addf %46, %57 : vector<3x64xf32>
    %c1_i32_44 = arith.constant 1 : i32
    %59 = arith.addi %44, %c1_i32_44 : i32
    %c0_45 = arith.constant 0 : index
    %60 = arith.index_cast %59 : i32 to index
    %c0_46 = arith.constant 0 : index
    %c0_47 = arith.constant 0 : index
    %61 = vector.load %arg2[%c0_45, %60, %c0_46, %c0_47] : memref<1x3x3x128xbf16, #tpu.memory_space<vmem>>, vector<1x1x3x128xbf16>
    %62 = vector.shape_cast %61 : vector<1x1x3x128xbf16> to vector<3x128xbf16>
    %c2_48 = arith.constant 2 : index
    %c0_49 = arith.constant 0 : index
    %c0_50 = arith.constant 0 : index
    %63 = vector.load %arg3[%c2_48, %c0_49, %c0_50] : memref<4x128x64xbf16, #tpu.memory_space<vmem>>, vector<1x128x64xbf16>
    %64 = vector.shape_cast %63 : vector<1x128x64xbf16> to vector<128x64xbf16>
    %cst_51 = arith.constant dense<0.000000e+00> : vector<3x64xf32>
    %65 = tpu.matmul %62, %64, %cst_51 {dimension_numbers = #tpu.dot_dimension_numbers<[1], [0], [0], [1], [0, 0, 1, 1], [], []>} : vector<3x128xbf16>, vector<128x64xbf16>, vector<3x64xf32> -> vector<3x64xf32>
    %66 = arith.addf %54, %65 : vector<3x64xf32>
    %c3_52 = arith.constant 3 : index
    %c0_53 = arith.constant 0 : index
    %c0_54 = arith.constant 0 : index
    %67 = vector.load %arg3[%c3_52, %c0_53, %c0_54] : memref<4x128x64xbf16, #tpu.memory_space<vmem>>, vector<1x128x64xbf16>
    %68 = vector.shape_cast %67 : vector<1x128x64xbf16> to vector<128x64xbf16>
    %cst_55 = arith.constant dense<0.000000e+00> : vector<3x64xf32>
    %69 = tpu.matmul %62, %68, %cst_55 {dimension_numbers = #tpu.dot_dimension_numbers<[1], [0], [0], [1], [0, 0, 1, 1], [], []>} : vector<3x128xbf16>, vector<128x64xbf16>, vector<3x64xf32> -> vector<3x64xf32>
    %70 = arith.addf %58, %69 : vector<3x64xf32>
    %71 = vector.extract_strided_slice %66 {offsets = [0, 0], sizes = [2, 64], strides = [1, 1]} : vector<3x64xf32> to vector<2x64xf32>
    %72 = vector.extract_strided_slice %70 {offsets = [1, 0], sizes = [2, 64], strides = [1, 1]} : vector<3x64xf32> to vector<2x64xf32>
    %73 = arith.addf %71, %72 : vector<2x64xf32>
    %c0_56 = arith.constant 0 : index
    %c0_57 = arith.constant 0 : index
    %74 = vector.load %arg4[%c0_56, %c0_57] : memref<1x64xf32, #tpu.memory_space<vmem>>, vector<1x64xf32>
    %75 = vector.broadcast %74 : vector<1x64xf32> to vector<2x64xf32>
    %76 = arith.addf %73, %75 : vector<2x64xf32>
    %cst_58 = arith.constant 0.000000e+00 : f32
    %77 = vector.broadcast %cst_58 : f32 to vector<2x64xf32>
    %78 = arith.cmpf oge, %76, %77 : vector<2x64xf32>
    %cst_59 = arith.constant 2.000000e-01 : f32
    %79 = vector.broadcast %cst_59 : f32 to vector<2x64xf32>
    %80 = arith.mulf %79, %76 : vector<2x64xf32>
    %81 = arith.select %78, %76, %80 : vector<2x64xi1>, vector<2x64xf32>
    %82 = arith.truncf %81 : vector<2x64xf32> to vector<2x64xbf16>
    %c0_60 = arith.constant 0 : index
    %c1_61 = arith.constant 1 : index
    %c0_62 = arith.constant 0 : index
    %c0_63 = arith.constant 0 : index
    %83 = vector.load %arg5[%c0_60, %c1_61, %c0_62, %c0_63] : memref<1x2x2x64xbf16, #tpu.memory_space<vmem>>, vector<1x1x2x64xbf16>
    %84 = vector.shape_cast %83 : vector<1x1x2x64xbf16> to vector<2x64xbf16>
    %85 = vector.shape_cast %82 : vector<2x64xbf16> to vector<1x1x2x64xbf16>
    tpu.vector_store %arg5[%c0_60, %c1_61, %c0_62, %c0_63], %85 {strides = array<i32>} : memref<1x2x2x64xbf16, #tpu.memory_space<vmem>>, vector<1x1x2x64xbf16>,
    return
  }
  func.func @transform_0(%arg0: i32, %arg1: i32) -> (i32, i32, i32, i32) {
    %c0_i32 = arith.constant 0 : i32
    %c0_i32_0 = arith.constant 0 : i32
    %c0_i32_1 = arith.constant 0 : i32
    %c0_i32_2 = arith.constant 0 : i32
    return %arg0, %c0_i32, %c0_i32_0, %c0_i32_1 : i32, i32, i32, i32
  }
  func.func @transform_1(%arg0: i32, %arg1: i32) -> (i32, i32, i32) {
    %c0_i32 = arith.constant 0 : i32
    %c0_i32_0 = arith.constant 0 : i32
    %c0_i32_1 = arith.constant 0 : i32
    %c0_i32_2 = arith.constant 0 : i32
    return %c0_i32, %c0_i32_0, %c0_i32_1 : i32, i32, i32
  }
  func.func @transform_2(%arg0: i32, %arg1: i32) -> (i32, i32) {
    %c0_i32 = arith.constant 0 : i32
    %c0_i32_0 = arith.constant 0 : i32
    %c0_i32_1 = arith.constant 0 : i32
    return %c0_i32, %c0_i32_0 : i32, i32
  }
  func.func @transform_3(%arg0: i32, %arg1: i32) -> (i32, i32, i32, i32) {
    %c0_i32 = arith.constant 0 : i32
    %c0_i32_0 = arith.constant 0 : i32
    %c0_i32_1 = arith.constant 0 : i32
    return %arg0, %arg1, %c0_i32, %c0_i32_0 : i32, i32, i32, i32
  }
}

module attributes {stable_mosaic.version = 11 : i64} {
  func.func @_conv_rows_kernel(%arg0: i32, %arg1: i32, %arg2: memref<1x2x2x256xbf16, #tpu.memory_space<vmem>>, %arg3: memref<4x256x128xbf16, #tpu.memory_space<vmem>>, %arg4: memref<1x128xf32, #tpu.memory_space<vmem>>, %arg5: memref<1x1x1x128xbf16, #tpu.memory_space<vmem>>) attributes {dimension_semantics = [#tpu.dimension_semantics<parallel>, #tpu.dimension_semantics<parallel>], iteration_bounds = array<i64: 2, 1>, scalar_prefetch = 0 : i64, scratch_operands = 0 : i64, tpu.core_type = #tpu.core_type<tc>, window_params = [{transform_indices = @transform_0, window_bounds = array<i64: 1, 2, 2, 256>}, {pipeline_mode = #tpu.pipeline_mode<synchronous>, transform_indices = @transform_1, window_bounds = array<i64: 4, 256, 128>}, {pipeline_mode = #tpu.pipeline_mode<synchronous>, transform_indices = @transform_2, window_bounds = array<i64: 1, 128>}, {transform_indices = @transform_3, window_bounds = array<i64: 1, 1, 1, 128>}]} {
    %c1_i32 = arith.constant 1 : i32
    %0 = arith.muli %arg1, %c1_i32 : i32
    %c0_i32 = arith.constant 0 : i32
    %1 = arith.addi %0, %c0_i32 : i32
    %cst = arith.constant 0.000000e+00 : f32
    %2 = vector.broadcast %cst : f32 to vector<2x128xf32>
    %cst_0 = arith.constant 0.000000e+00 : f32
    %3 = vector.broadcast %cst_0 : f32 to vector<2x128xf32>
    %c0_i32_1 = arith.constant 0 : i32
    %4 = arith.addi %1, %c0_i32_1 : i32
    %c0 = arith.constant 0 : index
    %5 = arith.index_cast %4 : i32 to index
    %c0_2 = arith.constant 0 : index
    %c0_3 = arith.constant 0 : index
    %6 = vector.load %arg2[%c0, %5, %c0_2, %c0_3] : memref<1x2x2x256xbf16, #tpu.memory_space<vmem>>, vector<1x1x2x256xbf16>
    %7 = vector.shape_cast %6 : vector<1x1x2x256xbf16> to vector<2x256xbf16>
    %c0_4 = arith.constant 0 : index
    %c0_5 = arith.constant 0 : index
    %c0_6 = arith.constant 0 : index
    %8 = vector.load %arg3[%c0_4, %c0_5, %c0_6] : memref<4x256x128xbf16, #tpu.memory_space<vmem>>, vector<1x256x128xbf16>
    %9 = vector.shape_cast %8 : vector<1x256x128xbf16> to vector<256x128xbf16>
    %cst_7 = arith.constant dense<0.000000e+00> : vector<2x128xf32>
    %10 = tpu.matmul %7, %9, %cst_7 {dimension_numbers = #tpu.dot_dimension_numbers<[1], [0], [0], [1], [0, 0, 1, 1], [], []>} : vector<2x256xbf16>, vector<256x128xbf16>, vector<2x128xf32> -> vector<2x128xf32>
    %11 = arith.addf %2, %10 : vector<2x128xf32>
    %c1 = arith.constant 1 : index
    %c0_8 = arith.constant 0 : index
    %c0_9 = arith.constant 0 : index
    %12 = vector.load %arg3[%c1, %c0_8, %c0_9] : memref<4x256x128xbf16, #tpu.memory_space<vmem>>, vector<1x256x128xbf16>
    %13 = vector.shape_cast %12 : vector<1x256x128xbf16> to vector<256x128xbf16>
    %cst_10 = arith.constant dense<0.000000e+00> : vector<2x128xf32>
    %14 = tpu.matmul %7, %13, %cst_10 {dimension_numbers = #tpu.dot_dimension_numbers<[1], [0], [0], [1], [0, 0, 1, 1], [], []>} : vector<2x256xbf16>, vector<256x128xbf16>, vector<2x128xf32> -> vector<2x128xf32>
    %15 = arith.addf %3, %14 : vector<2x128xf32>
    %c1_i32_11 = arith.constant 1 : i32
    %16 = arith.addi %1, %c1_i32_11 : i32
    %c0_12 = arith.constant 0 : index
    %17 = arith.index_cast %16 : i32 to index
    %c0_13 = arith.constant 0 : index
    %c0_14 = arith.constant 0 : index
    %18 = vector.load %arg2[%c0_12, %17, %c0_13, %c0_14] : memref<1x2x2x256xbf16, #tpu.memory_space<vmem>>, vector<1x1x2x256xbf16>
    %19 = vector.shape_cast %18 : vector<1x1x2x256xbf16> to vector<2x256xbf16>
    %c2 = arith.constant 2 : index
    %c0_15 = arith.constant 0 : index
    %c0_16 = arith.constant 0 : index
    %20 = vector.load %arg3[%c2, %c0_15, %c0_16] : memref<4x256x128xbf16, #tpu.memory_space<vmem>>, vector<1x256x128xbf16>
    %21 = vector.shape_cast %20 : vector<1x256x128xbf16> to vector<256x128xbf16>
    %cst_17 = arith.constant dense<0.000000e+00> : vector<2x128xf32>
    %22 = tpu.matmul %19, %21, %cst_17 {dimension_numbers = #tpu.dot_dimension_numbers<[1], [0], [0], [1], [0, 0, 1, 1], [], []>} : vector<2x256xbf16>, vector<256x128xbf16>, vector<2x128xf32> -> vector<2x128xf32>
    %23 = arith.addf %11, %22 : vector<2x128xf32>
    %c3 = arith.constant 3 : index
    %c0_18 = arith.constant 0 : index
    %c0_19 = arith.constant 0 : index
    %24 = vector.load %arg3[%c3, %c0_18, %c0_19] : memref<4x256x128xbf16, #tpu.memory_space<vmem>>, vector<1x256x128xbf16>
    %25 = vector.shape_cast %24 : vector<1x256x128xbf16> to vector<256x128xbf16>
    %cst_20 = arith.constant dense<0.000000e+00> : vector<2x128xf32>
    %26 = tpu.matmul %19, %25, %cst_20 {dimension_numbers = #tpu.dot_dimension_numbers<[1], [0], [0], [1], [0, 0, 1, 1], [], []>} : vector<2x256xbf16>, vector<256x128xbf16>, vector<2x128xf32> -> vector<2x128xf32>
    %27 = arith.addf %15, %26 : vector<2x128xf32>
    %28 = vector.extract_strided_slice %23 {offsets = [0, 0], sizes = [1, 128], strides = [1, 1]} : vector<2x128xf32> to vector<1x128xf32>
    %29 = vector.extract_strided_slice %27 {offsets = [1, 0], sizes = [1, 128], strides = [1, 1]} : vector<2x128xf32> to vector<1x128xf32>
    %30 = arith.addf %28, %29 : vector<1x128xf32>
    %c0_21 = arith.constant 0 : index
    %c0_22 = arith.constant 0 : index
    %31 = vector.load %arg4[%c0_21, %c0_22] : memref<1x128xf32, #tpu.memory_space<vmem>>, vector<1x128xf32>
    %32 = arith.addf %30, %31 : vector<1x128xf32>
    %33 = arith.negf %32 : vector<1x128xf32>
    %34 = math.exp %33 : vector<1x128xf32>
    %cst_23 = arith.constant 1.000000e+00 : f32
    %35 = vector.broadcast %cst_23 : f32 to vector<1x128xf32>
    %36 = arith.addf %35, %34 : vector<1x128xf32>
    %37 = arith.divf %35, %36 : vector<1x128xf32>
    %38 = arith.truncf %37 : vector<1x128xf32> to vector<1x128xbf16>
    %c0_24 = arith.constant 0 : index
    %c0_25 = arith.constant 0 : index
    %c0_26 = arith.constant 0 : index
    %c0_27 = arith.constant 0 : index
    %39 = vector.load %arg5[%c0_24, %c0_25, %c0_26, %c0_27] : memref<1x1x1x128xbf16, #tpu.memory_space<vmem>>, vector<1x1x1x128xbf16>
    %40 = vector.shape_cast %39 : vector<1x1x1x128xbf16> to vector<1x128xbf16>
    %41 = vector.shape_cast %38 : vector<1x128xbf16> to vector<1x1x1x128xbf16>
    tpu.vector_store %arg5[%c0_24, %c0_25, %c0_26, %c0_27], %41 {strides = array<i32>} : memref<1x1x1x128xbf16, #tpu.memory_space<vmem>>, vector<1x1x1x128xbf16>,
    return
  }
  func.func @transform_0(%arg0: i32, %arg1: i32) -> (i32, i32, i32, i32) {
    %c0_i32 = arith.constant 0 : i32
    %c0_i32_0 = arith.constant 0 : i32
    %c0_i32_1 = arith.constant 0 : i32
    %c0_i32_2 = arith.constant 0 : i32
    return %arg0, %c0_i32, %c0_i32_0, %c0_i32_1 : i32, i32, i32, i32
  }
  func.func @transform_1(%arg0: i32, %arg1: i32) -> (i32, i32, i32) {
    %c0_i32 = arith.constant 0 : i32
    %c0_i32_0 = arith.constant 0 : i32
    %c0_i32_1 = arith.constant 0 : i32
    %c0_i32_2 = arith.constant 0 : i32
    return %c0_i32, %c0_i32_0, %c0_i32_1 : i32, i32, i32
  }
  func.func @transform_2(%arg0: i32, %arg1: i32) -> (i32, i32) {
    %c0_i32 = arith.constant 0 : i32
    %c0_i32_0 = arith.constant 0 : i32
    %c0_i32_1 = arith.constant 0 : i32
    return %c0_i32, %c0_i32_0 : i32, i32
  }
  func.func @transform_3(%arg0: i32, %arg1: i32) -> (i32, i32, i32, i32) {
    %c0_i32 = arith.constant 0 : i32
    %c0_i32_0 = arith.constant 0 : i32
    %c0_i32_1 = arith.constant 0 : i32
    return %arg0, %arg1, %c0_i32, %c0_i32_0 : i32, i32, i32, i32
  }
}

module attributes {stable_mosaic.version = 11 : i64} {
  func.func @_linear_sigmoid_kernel(%arg0: i32, %arg1: memref<2x1x1x128xbf16, #tpu.memory_space<vmem>>, %arg2: memref<1x1x1x128xf32, #tpu.memory_space<vmem>>, %arg3: memref<1x1x1x1xf32, #tpu.memory_space<vmem>>, %arg4: memref<2x1x1x1xf32, #tpu.memory_space<vmem>>) attributes {dimension_semantics = [#tpu.dimension_semantics<arbitrary>], iteration_bounds = array<i64: 1>, scalar_prefetch = 0 : i64, scratch_operands = 0 : i64, tpu.core_type = #tpu.core_type<tc>, window_params = [{pipeline_mode = #tpu.pipeline_mode<synchronous>, transform_indices = @transform_0, window_bounds = array<i64: 2, 1, 1, 128>}, {pipeline_mode = #tpu.pipeline_mode<synchronous>, transform_indices = @transform_1, window_bounds = array<i64: 1, 1, 1, 128>}, {pipeline_mode = #tpu.pipeline_mode<synchronous>, transform_indices = @transform_2, window_bounds = array<i64: 1, 1, 1, 1>}, {pipeline_mode = #tpu.pipeline_mode<synchronous>, transform_indices = @transform_3, window_bounds = array<i64: 2, 1, 1, 1>}]} {
    %c0 = arith.constant 0 : index
    %c0_0 = arith.constant 0 : index
    %c0_1 = arith.constant 0 : index
    %c0_2 = arith.constant 0 : index
    %0 = vector.load %arg1[%c0, %c0_0, %c0_1, %c0_2] : memref<2x1x1x128xbf16, #tpu.memory_space<vmem>>, vector<2x1x1x128xbf16>
    %1 = arith.extf %0 : vector<2x1x1x128xbf16> to vector<2x1x1x128xf32>
    %c0_3 = arith.constant 0 : index
    %c0_4 = arith.constant 0 : index
    %c0_5 = arith.constant 0 : index
    %c0_6 = arith.constant 0 : index
    %2 = vector.load %arg2[%c0_3, %c0_4, %c0_5, %c0_6] : memref<1x1x1x128xf32, #tpu.memory_space<vmem>>, vector<1x1x1x128xf32>
    %3 = vector.broadcast %2 : vector<1x1x1x128xf32> to vector<2x1x1x128xf32>
    %4 = arith.mulf %1, %3 : vector<2x1x1x128xf32>
    %cst = arith.constant dense<0.000000e+00> : vector<2x1x1xf32>
    %5 = vector.multi_reduction <add>, %4, %cst [3] : vector<2x1x1x128xf32> to vector<2x1x1xf32>
    %6 = vector.shape_cast %5 : vector<2x1x1xf32> to vector<2x1x1x1xf32>
    %cst_7 = arith.constant dense<0.000000e+00> : vector<2x1x1xf32>
    %7 = vector.multi_reduction <add>, %6, %cst_7 [2] : vector<2x1x1x1xf32> to vector<2x1x1xf32>
    %8 = vector.shape_cast %7 : vector<2x1x1xf32> to vector<2x1x1x1xf32>
    %cst_8 = arith.constant dense<0.000000e+00> : vector<2x1x1xf32>
    %9 = vector.multi_reduction <add>, %8, %cst_8 [1] : vector<2x1x1x1xf32> to vector<2x1x1xf32>
    %10 = vector.shape_cast %9 : vector<2x1x1xf32> to vector<2x1x1x1xf32>
    %c0_9 = arith.constant 0 : index
    %c0_10 = arith.constant 0 : index
    %c0_11 = arith.constant 0 : index
    %c0_12 = arith.constant 0 : index
    %11 = vector.load %arg3[%c0_9, %c0_10, %c0_11, %c0_12] : memref<1x1x1x1xf32, #tpu.memory_space<vmem>>, vector<1x1x1x1xf32>
    %12 = vector.broadcast %11 : vector<1x1x1x1xf32> to vector<2x1x1x1xf32>
    %13 = arith.addf %10, %12 : vector<2x1x1x1xf32>
    %14 = arith.negf %13 : vector<2x1x1x1xf32>
    %15 = math.exp %14 : vector<2x1x1x1xf32>
    %cst_13 = arith.constant 1.000000e+00 : f32
    %16 = vector.broadcast %cst_13 : f32 to vector<2x1x1x1xf32>
    %17 = arith.addf %16, %15 : vector<2x1x1x1xf32>
    %18 = arith.divf %16, %17 : vector<2x1x1x1xf32>
    %c0_14 = arith.constant 0 : index
    %c0_15 = arith.constant 0 : index
    %c0_16 = arith.constant 0 : index
    %c0_17 = arith.constant 0 : index
    %19 = vector.load %arg4[%c0_14, %c0_15, %c0_16, %c0_17] : memref<2x1x1x1xf32, #tpu.memory_space<vmem>>, vector<2x1x1x1xf32>
    tpu.vector_store %arg4[%c0_14, %c0_15, %c0_16, %c0_17], %18 {strides = array<i32>} : memref<2x1x1x1xf32, #tpu.memory_space<vmem>>, vector<2x1x1x1xf32>,
    return
  }
  func.func @transform_0(%arg0: i32) -> (i32, i32, i32, i32) {
    %c0_i32 = arith.constant 0 : i32
    %c0_i32_0 = arith.constant 0 : i32
    %c0_i32_1 = arith.constant 0 : i32
    %c0_i32_2 = arith.constant 0 : i32
    %c0_i32_3 = arith.constant 0 : i32
    return %c0_i32, %c0_i32_0, %c0_i32_1, %c0_i32_2 : i32, i32, i32, i32
  }
  func.func @transform_1(%arg0: i32) -> (i32, i32, i32, i32) {
    %c0_i32 = arith.constant 0 : i32
    %c0_i32_0 = arith.constant 0 : i32
    %c0_i32_1 = arith.constant 0 : i32
    %c0_i32_2 = arith.constant 0 : i32
    %c0_i32_3 = arith.constant 0 : i32
    return %c0_i32, %c0_i32_0, %c0_i32_1, %c0_i32_2 : i32, i32, i32, i32
  }
  func.func @transform_2(%arg0: i32) -> (i32, i32, i32, i32) {
    %c0_i32 = arith.constant 0 : i32
    %c0_i32_0 = arith.constant 0 : i32
    %c0_i32_1 = arith.constant 0 : i32
    %c0_i32_2 = arith.constant 0 : i32
    %c0_i32_3 = arith.constant 0 : i32
    return %c0_i32, %c0_i32_0, %c0_i32_1, %c0_i32_2 : i32, i32, i32, i32
  }
  func.func @transform_3(%arg0: i32) -> (i32, i32, i32, i32) {
    %c0_i32 = arith.constant 0 : i32
    %c0_i32_0 = arith.constant 0 : i32
    %c0_i32_1 = arith.constant 0 : i32
    %c0_i32_2 = arith.constant 0 : i32
    %c0_i32_3 = arith.constant 0 : i32
    return %c0_i32, %c0_i32_0, %c0_i32_1, %c0_i32_2 : i32, i32, i32, i32
  }
}

</mosaic_0001>

<bundles_post_ra>
// kernel: discriminator_forward.5
= control target key start
LH: loop header
LB: loop body
LE: loop exit
PB: predicated region body
PF: predicated region fallthrough
CT: control target
= control target key end

     0   :  { %s1477_s12 = smov 0   ;;  %s1479_s13 = smov 0   ;;  %s1758_s0 = inlined_call_operand.vmem [shape: bf16[2,9,9,4], index: 0, kind: input, shape index: {}]   ;;  %s1759_s1 = inlined_call_operand.vmem [shape: bf16[4,4,16], index: 1, kind: input, shape index: {}]   ;;  %s1760_s2 = inlined_call_operand.vmem [shape: f32[1,16], index: 2, kind: input, shape index: {}]   ;;  %s1761_s3 = inlined_call_operand.vmem [shape: bf16[2,8,8,16], index: 3, kind: output, shape index: {}]  }
   0x1   :  { %s1481_s14 = smov 0  }
   0x2 LB: > { %s25_s15 = sadd.s32 1, %s1451_s13  ;;  %p1220_p0 = scmp.ge.s32.totalorder %s1455_s14, 1  ;;  %s1455_s14 = sphi %s1481_s14, %s13_s14   ;;  %s1451_s13 = sphi %s1479_s13, %s1763_s13   ;;  %s1447_s12 = sphi %s1477_s12, %s1762_s12  }
   0x3   : > { %p27_p1 = scmp.ge.s32.totalorder %s25_s15, 2  ;;  %p151_p2 = scmp.lt.s32.totalorder %s1455_s14, 3 }
   0x5   : > { %s1765_s15 = smov (%p27_p1, %s25_s15), 0  ;;  %p152_p3 = pnand %p1220_p0, %p151_p2 }
   0x6   : > { %p179_p4 = scmp.lt.s32.totalorder (!%p152_p3), %s1447_s12, 1 }
   0x7   : > { %155 = sbr.rel (%p152_p3) target bundleno = 289 (0x121), region = 32 }
   0xc   : > { %vm221_vm0 = vcmask 1041408   ;;  %v1238_v0 = vld [vmem:[%s1759_s1 + $0x6] sm:$0x3]  ;;  %v1224_v1 = vld [vmem:[%s1759_s1 + $0x2] sm:$0x3]  ;;  %s1767_s12 = smov (!%p179_p4, %s1447_s12), 1 }
   0xd   : > { %v265_v2 = vsel %vm221_vm0, %v1238_v0, 0  ;;  %v282_v3 = vsel %vm221_vm0, %v1224_v1, 0  ;;  %v1257_v4 = vld [vmem:[%s1759_s1 + $0x6] sm:$0x3]  ;;  %v1243_v6 = vld [vmem:[%s1759_s1 + $0x2] sm:$0x3] }
   0xe   : > { %274 = vmatpush.bf16.msra.mxu2 %v265_v2  ;;  %291 = vmatpush.bf16.msra.mxu3 %v282_v3  ;;  %v378_v5 = vsel %vm221_vm0, %v1257_v4, 0  ;;  %v1227_v7 = vld [vmem:[%s1759_s1 + $0x4] sm:$0x3]  ;;  %v395_v8 = vsel %vm221_vm0, %v1243_v6, 0  ;;  %v201_v10 = vld [vmem:[%s1759_s1] sm:$0x3] }
   0xf   : > { %v223_v9 = vsel %vm221_vm0, %v1227_v7, 0  ;;  %s1400_s28 = smul.u32 72, %s1767_s12  ;;  %vm217_vm1 = vcmask 31744   ;;  %v247_v11 = vsel %vm221_vm0, %v201_v10, 0  ;;  %v1277_v12 = vld [vmem:[%s1759_s1 + $0x6] sm:$0x3] }
  0x10   : > { %232 = vmatpush.bf16.msra.mxu0 %v223_v9  ;;  %256 = vmatpush.bf16.msra.mxu1 %v247_v11  ;;  %v1263_v13 = vld [vmem:[%s1759_s1 + $0x2] sm:$0x3]  ;;  %v1246_v14 = vld [vmem:[%s1759_s1 + $0x4] sm:$0x3]  ;;  %v319_v15 = vld [vmem:[%s1759_s1] sm:$0x3] }
  0x11   : > { %s1537_s16 = scalar_lea.vmem %s1758_s0, %s1400_s28  ;;  %v337_v16 = vsel %vm221_vm0, %v1246_v14, 0  ;;  %v361_v17 = vsel %vm221_vm0, %v319_v15, 0  ;;  %v490_v24 = vsel %vm221_vm0, %v1277_v12, 0  ;;  %v507_v25 = vsel %vm221_vm0, %v1263_v13, 0  ;;  %v1266_v26 = vld [vmem:[%s1759_s1 + $0x4] sm:$0x3] }
  0x12   : > { %387 = vmatpush.bf16.msrb.mxu2 %v378_v5  ;;  %404 = vmatpush.bf16.msrb.mxu3 %v395_v8  ;;  %v1230_v18 = vld [vmem:[%s1537_s16 + $0x8] sm:$0xf]  ;;  %v1385_v19 = vld [vmem:[%s1537_s16 + $0x8] sm:$0x10]  ;;  %v1235_v20 = vld [vmem:[%s1537_s16] sm:$0xf] }
  0x13   : > { %v1231_v21 = vor.u32 %v1385_v19, %v1230_v18  ;;  %v1384_v22 = vld [vmem:[%s1537_s16] sm:$0x10]  ;;  %v449_v27 = vsel %vm221_vm0, %v1266_v26, 0  ;;  %v431_v28 = vld [vmem:[%s1759_s1] sm:$0x3]  ;;  %vm300_vm2 = vcmask 1046528  }
  0x14   : > { %346 = vmatpush.bf16.msrb.mxu0 %v337_v16  ;;  %370 = vmatpush.bf16.msrb.mxu1 %v361_v17  ;;  %v1236_v23 = vor.u32 %v1384_v22, %v1235_v20  ;;  %v473_v29 = vsel %vm221_vm0, %v431_v28, 0  ;;  %v1249_v30 = vld [vmem:[%s1537_s16 + $0x10] sm:$0xf]  ;;  %v1387_v31 = vld [vmem:[%s1537_s16 + $0x10] sm:$0x10]  ;;  %s1383_s18 = sshll.u32 %s1767_s12, 5 }
  0x15   : > { %1239 = vmatmul.msk.bf16.vlgmr.msra.gmra.mxu2 %vm217_vm1, %v1231_v21  ;;  %1232 = vmatmul.msk.bf16.vlgmr.msra.gmra.mxu0 %vm217_vm1, %v1231_v21  ;;  %v1254_v32 = vld [vmem:[%s1537_s16 + $0x8] sm:$0xf]  ;;  %v1386_v33 = vld [vmem:[%s1537_s16 + $0x8] sm:$0x10]  ;;  %v1250_v34 = vor.u32 %v1387_v31, %v1249_v30  ;;  %v1297_v35 = vld [vmem:[%s1759_s1 + $0x6] sm:$0x3]  ;;  %s1703_s21 = scalar_lea.vmem %s1761_s3, %s1383_s18 }
  0x16   : > { %1240 = vmatmul.msk.bf16.vlgmr.msra.gmra.mxu3 %vm217_vm1, %v1236_v23  ;;  %1237 = vmatmul.msk.bf16.vlgmr.msra.gmra.mxu1 %vm217_vm1, %v1236_v23  ;;  %v1283_v36 = vld [vmem:[%s1759_s1 + $0x2] sm:$0x3]  ;;  %v1255_v37 = vor.u32 %v1386_v33, %v1254_v32  ;;  %v602_v38 = vsel %vm221_vm0, %v1297_v35, 0  ;;  %v1286_v40 = vld [vmem:[%s1759_s1 + $0x4] sm:$0x3]  ;;  %vm315_vm4 = vcmask 125952  }
  0x17   : > { %499 = vmatpush.bf16.msra.mxu2 %v490_v24  ;;  %516 = vmatpush.bf16.msra.mxu3 %v507_v25  ;;  %v619_v39 = vsel %vm221_vm0, %v1283_v36, 0  ;;  %v561_v41 = vsel %vm221_vm0, %v1286_v40, 0  ;;  %v543_v42 = vld [vmem:[%s1759_s1] sm:$0x3]  ;;  %v1269_v44 = vld [vmem:[%s1537_s16 + $0x18] sm:$0xf] }
  0x18   : > { %458 = vmatpush.bf16.msra.mxu0 %v449_v27  ;;  %482 = vmatpush.bf16.msra.mxu1 %v473_v29  ;;  %v585_v43 = vsel %vm221_vm0, %v543_v42, 0  ;;  %v1389_v45 = vld [vmem:[%s1537_s16 + $0x18] sm:$0x10]  ;;  %v1274_v46 = vld [vmem:[%s1537_s16 + $0x10] sm:$0xf] }
  0x19   : > { %v1388_v47 = vld [vmem:[%s1537_s16 + $0x10] sm:$0x10]  ;;  %v1270_v48 = vor.u32 %v1389_v45, %v1269_v44  ;;  %v1317_v49 = vld [vmem:[%s1759_s1 + $0x6] sm:$0x3]  ;;  %v1303_v50 = vld [vmem:[%s1759_s1 + $0x2] sm:$0x3] }
  0x1a   : > { %v1275_v51 = vor.u32 %v1388_v47, %v1274_v46  ;;  %v714_v52 = vsel %vm221_vm0, %v1317_v49, 0  ;;  %v731_v53 = vsel %vm221_vm0, %v1303_v50, 0  ;;  %v1306_v54 = vld [vmem:[%s1759_s1 + $0x4] sm:$0x3]  ;;  %v655_v56 = vld [vmem:[%s1759_s1] sm:$0x3] }
  0x1b   : > { %v673_v55 = vsel %vm221_vm0, %v1306_v54, 0  ;;  %v697_v57 = vsel %vm221_vm0, %v655_v56, 0  ;;  %v1289_v58 = vld [vmem:[%s1537_s16 + $0x20] sm:$0xf]  ;;  %v1391_v59 = vld [vmem:[%s1537_s16 + $0x20] sm:$0x10] }
  0x1c   : > { %v1294_v60 = vld [vmem:[%s1537_s16 + $0x18] sm:$0xf]  ;;  %v1390_v61 = vld [vmem:[%s1537_s16 + $0x18] sm:$0x10]  ;;  %v1290_v62 = vor.u32 %v1391_v59, %v1289_v58  ;;  %v1337_v63 = vld [vmem:[%s1759_s1 + $0x6] sm:$0x3] }
  0x1d   : > { %v1323_v0 = vld [vmem:[%s1759_s1 + $0x2] sm:$0x3]  ;;  %v1295_v1 = vor.u32 %v1390_v61, %v1294_v60  ;;  %v826_v2 = vsel %vm221_vm0, %v1337_v63, 0  ;;  %v1326_v4 = vld [vmem:[%s1759_s1 + $0x4] sm:$0x3] }
  0x1e   : > { %v843_v3 = vsel %vm221_vm0, %v1323_v0, 0  ;;  %v785_v5 = vsel %vm221_vm0, %v1326_v4, 0  ;;  %v767_v6 = vld [vmem:[%s1759_s1] sm:$0x3]  ;;  %v1309_v8 = vld [vmem:[%s1537_s16 + $0x28] sm:$0xf] }
  0x1f   : > { %v809_v7 = vsel %vm221_vm0, %v767_v6, 0  ;;  %v1393_v9 = vld [vmem:[%s1537_s16 + $0x28] sm:$0x10]  ;;  %v1314_v10 = vld [vmem:[%s1537_s16 + $0x20] sm:$0xf] }
  0x20   : > { %v1392_v11 = vld [vmem:[%s1537_s16 + $0x20] sm:$0x10]  ;;  %v1310_v12 = vor.u32 %v1393_v9, %v1309_v8  ;;  %v1357_v13 = vld [vmem:[%s1759_s1 + $0x6] sm:$0x3]  ;;  %v1343_v14 = vld [vmem:[%s1759_s1 + $0x2] sm:$0x3] }
  0x21   : > { %v1315_v15 = vor.u32 %v1392_v11, %v1314_v10  ;;  %v938_v16 = vsel %vm221_vm0, %v1357_v13, 0  ;;  %v955_v17 = vsel %vm221_vm0, %v1343_v14, 0  ;;  %v1346_v18 = vld [vmem:[%s1759_s1 + $0x4] sm:$0x3]  ;;  %v879_v20 = vld [vmem:[%s1759_s1] sm:$0x3] }
  0x22   : > { %v897_v19 = vsel %vm221_vm0, %v1346_v18, 0  ;;  %v921_v21 = vsel %vm221_vm0, %v879_v20, 0  ;;  %v1329_v22 = vld [vmem:[%s1537_s16 + $0x30] sm:$0xf]  ;;  %v1395_v23 = vld [vmem:[%s1537_s16 + $0x30] sm:$0x10] }
  0x23   : > { %v1334_v24 = vld [vmem:[%s1537_s16 + $0x28] sm:$0xf]  ;;  %v1394_v25 = vld [vmem:[%s1537_s16 + $0x28] sm:$0x10]  ;;  %v1330_v26 = vor.u32 %v1395_v23, %v1329_v22  ;;  %v1377_v27 = vld [vmem:[%s1759_s1 + $0x6] sm:$0x3] }
  0x24   : > { %v1363_v28 = vld [vmem:[%s1759_s1 + $0x2] sm:$0x3]  ;;  %v1335_v29 = vor.u32 %v1394_v25, %v1334_v24  ;;  %v1050_v30 = vsel %vm221_vm0, %v1377_v27, 0  ;;  %v1366_v32 = vld [vmem:[%s1759_s1 + $0x4] sm:$0x3] }
  0x25   : > { %1258 = vmatmul.msk.bf16.vlgmr.msrb.gmra.mxu2 %vm217_vm1, %v1250_v34  ;;  %1251 = vmatmul.msk.bf16.vlgmr.msrb.gmra.mxu0 %vm217_vm1, %v1250_v34  ;;  %v1067_v31 = vsel %vm221_vm0, %v1363_v28, 0  ;;  %v991_v33 = vld [vmem:[%s1759_s1] sm:$0x3]  ;;  %v1009_v34 = vsel %vm221_vm0, %v1366_v32, 0  ;;  %v1349_v36 = vld [vmem:[%s1537_s16 + $0x38] sm:$0xf] }
  0x26   : > { %1259 = vmatmul.msk.bf16.vlgmr.msrb.gmra.mxu3 %vm217_vm1, %v1255_v37  ;;  %1256 = vmatmul.msk.bf16.vlgmr.msrb.gmra.mxu1 %vm217_vm1, %v1255_v37  ;;  %v1033_v35 = vsel %vm221_vm0, %v991_v33, 0  ;;  %v1397_v37 = vld [vmem:[%s1537_s16 + $0x38] sm:$0x10]  ;;  %v1369_v42 = vld [vmem:[%s1537_s16 + $0x40] sm:$0xf] }
  0x27   : > { %611 = vmatpush.bf16.msrb.mxu2 %v602_v38  ;;  %628 = vmatpush.bf16.msrb.mxu3 %v619_v39  ;;  %v1354_v38 = vld [vmem:[%s1537_s16 + $0x30] sm:$0xf]  ;;  %v1396_v39 = vld [vmem:[%s1537_s16 + $0x30] sm:$0x10]  ;;  %v1350_v40 = vor.u32 %v1397_v37, %v1349_v36  ;;  %v1374_v44 = vld [vmem:[%s1537_s16 + $0x38] sm:$0xf] }
  0x28   : > { %570 = vmatpush.bf16.msrb.mxu0 %v561_v41  ;;  %594 = vmatpush.bf16.msrb.mxu1 %v585_v43  ;;  %v1355_v41 = vor.u32 %v1396_v39, %v1354_v38  ;;  %v1399_v43 = vld [vmem:[%s1537_s16 + $0x40] sm:$0x10]  ;;  %v1398_v45 = vld [vmem:[%s1537_s16 + $0x38] sm:$0x10]  ;;  %v1425_v63 = vld [vmem:[%s1760_s2] ss:$0 sm:$0xff] }
  0x29   : > { %v1370_v46 = vor.u32 %v1399_v43, %v1369_v42  ;;  %v1375_v47 = vor.u32 %v1398_v45, %v1374_v44  ;;  %v1427_v39 = vld [vmem:[%s1760_s2] ss:$0 sm:$0xff] }
  0x35   : > { %1278 = vmatmul.msk.bf16.vlgmr.msra.gmra.mxu2 %vm217_vm1, %v1270_v48  ;;  %1271 = vmatmul.msk.bf16.vlgmr.msra.gmra.mxu0 %vm217_vm1, %v1270_v48 }
  0x36   : > { %1279 = vmatmul.msk.bf16.vlgmr.msra.gmra.mxu3 %vm217_vm1, %v1275_v51  ;;  %1276 = vmatmul.msk.bf16.vlgmr.msra.gmra.mxu1 %vm217_vm1, %v1275_v51 }
  0x37   : > { %723 = vmatpush.bf16.msra.mxu2 %v714_v52  ;;  %740 = vmatpush.bf16.msra.mxu3 %v731_v53 }
  0x38   : > { %682 = vmatpush.bf16.msra.mxu0 %v673_v55  ;;  %706 = vmatpush.bf16.msra.mxu1 %v697_v57 }
  0x45   : > { %1298 = vmatmul.msk.bf16.vlgmr.msrb.gmra.mxu2 %vm217_vm1, %v1290_v62  ;;  %1291 = vmatmul.msk.bf16.vlgmr.msrb.gmra.mxu0 %vm217_vm1, %v1290_v62 }
  0x46   : > { %1299 = vmatmul.msk.bf16.vlgmr.msrb.gmra.mxu3 %vm217_vm1, %v1295_v1  ;;  %1296 = vmatmul.msk.bf16.vlgmr.msrb.gmra.mxu1 %vm217_vm1, %v1295_v1 }
  0x47   : > { %835 = vmatpush.bf16.msrb.mxu2 %v826_v2  ;;  %852 = vmatpush.bf16.msrb.mxu3 %v843_v3 }
  0x48   : > { %794 = vmatpush.bf16.msrb.mxu0 %v785_v5  ;;  %818 = vmatpush.bf16.msrb.mxu1 %v809_v7 }
  0x55   : > { %1318 = vmatmul.msk.bf16.vlgmr.msra.gmra.mxu2 %vm217_vm1, %v1310_v12  ;;  %1311 = vmatmul.msk.bf16.vlgmr.msra.gmra.mxu0 %vm217_vm1, %v1310_v12 }
  0x56   : > { %1319 = vmatmul.msk.bf16.vlgmr.msra.gmra.mxu3 %vm217_vm1, %v1315_v15  ;;  %1316 = vmatmul.msk.bf16.vlgmr.msra.gmra.mxu1 %vm217_vm1, %v1315_v15 }
  0x57   : > { %947 = vmatpush.bf16.msra.mxu2 %v938_v16  ;;  %964 = vmatpush.bf16.msra.mxu3 %v955_v17 }
  0x58   : > { %906 = vmatpush.bf16.msra.mxu0 %v897_v19  ;;  %930 = vmatpush.bf16.msra.mxu1 %v921_v21  ;;  %v1426_v19 = vld [vmem:[%s1760_s2] ss:$0 sm:$0xff] }
  0x65   : > { %1338 = vmatmul.msk.bf16.vlgmr.msrb.gmra.mxu2 %vm217_vm1, %v1330_v26  ;;  %1331 = vmatmul.msk.bf16.vlgmr.msrb.gmra.mxu0 %vm217_vm1, %v1330_v26 }
  0x66   : > { %1339 = vmatmul.msk.bf16.vlgmr.msrb.gmra.mxu3 %vm217_vm1, %v1335_v29  ;;  %1336 = vmatmul.msk.bf16.vlgmr.msrb.gmra.mxu1 %vm217_vm1, %v1335_v29 }
  0x67   : > { %1059 = vmatpush.bf16.msrb.mxu2 %v1050_v30  ;;  %1076 = vmatpush.bf16.msrb.mxu3 %v1067_v31 }
  0x68   : > { %1018 = vmatpush.bf16.msrb.mxu0 %v1009_v34  ;;  %1042 = vmatpush.bf16.msrb.mxu1 %v1033_v35 }
  0x75   : > { %1358 = vmatmul.msk.bf16.vlgmr.msra.gmra.mxu2 %vm217_vm1, %v1350_v40  ;;  %1351 = vmatmul.msk.bf16.vlgmr.msra.gmra.mxu0 %vm217_vm1, %v1350_v40 }
  0x76   : > { %1359 = vmatmul.msk.bf16.vlgmr.msra.gmra.mxu3 %vm217_vm1, %v1355_v41  ;;  %1356 = vmatmul.msk.bf16.vlgmr.msra.gmra.mxu1 %vm217_vm1, %v1355_v41 }
  0x85   : > { %1378 = vmatmul.msk.bf16.vlgmr.msrb.gmra.mxu2 %vm217_vm1, %v1370_v46  ;;  %1371 = vmatmul.msk.bf16.vlgmr.msrb.gmra.mxu0 %vm217_vm1, %v1370_v46 }
  0x86   : > { %1379 = vmatmul.msk.bf16.vlgmr.msrb.gmra.mxu3 %vm217_vm1, %v1375_v47  ;;  %1376 = vmatmul.msk.bf16.vlgmr.msrb.gmra.mxu1 %vm217_vm1, %v1375_v47 }
  0x92   : > { %v234_v48 = vpop.f32.mrf.mxu0 }
  0x93   : > { %v258_v49 = vpop.f32.mrf.mxu1 }
  0x94   : > { %v259_v59 = vadd.f32 %v258_v49, %v234_v48 }
  0x98   : > { %v276_v50 = vpop.f32.mrf.mxu2 }
  0x99   : > { %v293_v51 = vpop.f32.mrf.mxu3 }
  0x9a   : > { %v236_v52 = vpop.f32.mrf.mxu0  ;;  %v294_v54 = vadd.f32 %v293_v51, %v276_v50 }
  0x9b   : > { %v260_v53 = vpop.f32.mrf.mxu1 }
  0x9c   : > { %v301_v61 = vrot.slane %v294_v54, 1 }
  0xa0   : > { %v278_v55 = vpop.f32.mrf.mxu2 }
  0xa1   : > { %v295_v56 = vpop.f32.mrf.mxu3 }
  0xa2   : > { %v296_v57 = vadd.f32 %v295_v56, %v278_v55  ;;  %v348_v58 = vpop.f32.mrf.mxu0 }
  0xa3   : > { %v372_v60 = vpop.f32.mrf.mxu1 }
  0xa4   : > { %v302_v62 = vrot.slane %v296_v57, 1  ;;  %v373_v15 = vadd.f32 %v372_v60, %v348_v58 }
  0xa6   : > { %v303_v0 = vsel %vm300_vm2, %v301_v61, %v302_v62 }
  0xa7   : > { %v305_v1 = vadd.f32 %v303_v0, %v259_v59  ;;  %v1428_v59 = vld [vmem:[%s1760_s2] ss:$0 sm:$0xff] }
  0xa8   : > { %v389_v2 = vpop.f32.mrf.mxu2 }
  0xa9   : > { %v310_v3 = vadd.f32 %v1425_v63, %v305_v1  ;;  %v406_v4 = vpop.f32.mrf.mxu3 }
  0xaa   : > { %v350_v5 = vpop.f32.mrf.mxu0  ;;  %v407_v10 = vadd.f32 %v406_v4, %v389_v2 }
  0xab   : > { %vm311_vm3 = vcmp.ge.f32.partialorder %v310_v3, 0.0  ;;  %v312_v6 = vmul.f32 0.2, %v310_v3  ;;  %v374_v7 = vpop.f32.mrf.mxu1 }
  0xac   : > { %v413_v17 = vrot.slane %v407_v10, 1 }
  0xad   : > { %v313_v8 = vsel %vm311_vm3, %v310_v3, %v312_v6 }
  0xae   : > { %v314_v9 = vpack.c.bf16 %v313_v8, %v313_v8 }
  0xb0   : > { %316 = vst.msk [vmem:[%s1703_s21] sm:$0xf] %vm315_vm4, %v314_v9  ;;  %v391_v11 = vpop.f32.mrf.mxu2 }
  0xb1   : > { %v408_v12 = vpop.f32.mrf.mxu3 }
  0xb2   : > { %v409_v13 = vadd.f32 %v408_v12, %v391_v11  ;;  %v460_v14 = vpop.f32.mrf.mxu0 }
  0xb3   : > { %v484_v16 = vpop.f32.mrf.mxu1 }
  0xb4   : > { %v414_v18 = vrot.slane %v409_v13, 1  ;;  %v485_v35 = vadd.f32 %v484_v16, %v460_v14 }
  0xb6   : > { %v415_v20 = vsel %vm300_vm2, %v413_v17, %v414_v18 }
  0xb7   : > { %v417_v21 = vadd.f32 %v415_v20, %v373_v15  ;;  %v1429_v15 = vld [vmem:[%s1760_s2] ss:$0 sm:$0xff] }
  0xb8   : > { %v501_v22 = vpop.f32.mrf.mxu2 }
  0xb9   : > { %v422_v23 = vadd.f32 %v1426_v19, %v417_v21  ;;  %v518_v24 = vpop.f32.mrf.mxu3 }
  0xba   : > { %v462_v25 = vpop.f32.mrf.mxu0  ;;  %v519_v30 = vadd.f32 %v518_v24, %v501_v22 }
  0xbb   : > { %vm423_vm5 = vcmp.ge.f32.partialorder %v422_v23, 0.0  ;;  %v424_v26 = vmul.f32 0.2, %v422_v23  ;;  %v486_v27 = vpop.f32.mrf.mxu1 }
  0xbc   : > { %v525_v37 = vrot.slane %v519_v30, 1 }
  0xbd   : > { %v425_v28 = vsel %vm423_vm5, %v422_v23, %v424_v26 }
  0xbe   : > { %v426_v29 = vpack.c.bf16 %v425_v28, %v425_v28 }
  0xc0   : > { %1260 = vst.msk [vmem:[%s1703_s21 + $0x4] sm:$0xf] %vm315_vm4, %v426_v29  ;;  %v503_v31 = vpop.f32.mrf.mxu2 }
  0xc1   : > { %v520_v32 = vpop.f32.mrf.mxu3 }
  0xc2   : > { %v521_v33 = vadd.f32 %v520_v32, %v503_v31  ;;  %v572_v34 = vpop.f32.mrf.mxu0 }
  0xc3   : > { %v596_v36 = vpop.f32.mrf.mxu1 }
  0xc4   : > { %v526_v38 = vrot.slane %v521_v33, 1  ;;  %v597_v55 = vadd.f32 %v596_v36, %v572_v34 }
  0xc6   : > { %v527_v40 = vsel %vm300_vm2, %v525_v37, %v526_v38 }
  0xc7   : > { %v529_v41 = vadd.f32 %v527_v40, %v485_v35  ;;  %v1430_v35 = vld [vmem:[%s1760_s2] ss:$0 sm:$0xff] }
  0xc8   : > { %v613_v42 = vpop.f32.mrf.mxu2 }
  0xc9   : > { %v534_v43 = vadd.f32 %v1427_v39, %v529_v41  ;;  %v630_v44 = vpop.f32.mrf.mxu3 }
  0xca   : > { %v574_v45 = vpop.f32.mrf.mxu0  ;;  %v631_v50 = vadd.f32 %v630_v44, %v613_v42 }
  0xcb   : > { %vm535_vm6 = vcmp.ge.f32.partialorder %v534_v43, 0.0  ;;  %v536_v46 = vmul.f32 0.2, %v534_v43  ;;  %v598_v47 = vpop.f32.mrf.mxu1 }
  0xcc   : > { %v637_v57 = vrot.slane %v631_v50, 1 }
  0xcd   : > { %v537_v48 = vsel %vm535_vm6, %v534_v43, %v536_v46 }
  0xce   : > { %v538_v49 = vpack.c.bf16 %v537_v48, %v537_v48 }
  0xd0   : > { %1280 = vst.msk [vmem:[%s1703_s21 + $0x8] sm:$0xf] %vm315_vm4, %v538_v49  ;;  %v615_v51 = vpop.f32.mrf.mxu2 }
  0xd1   : > { %v632_v52 = vpop.f32.mrf.mxu3 }
  0xd2   : > { %v633_v53 = vadd.f32 %v632_v52, %v615_v51  ;;  %v684_v54 = vpop.f32.mrf.mxu0 }
  0xd3   : > { %v708_v56 = vpop.f32.mrf.mxu1 }
  0xd4   : > { %v638_v58 = vrot.slane %v633_v53, 1  ;;  %v709_v11 = vadd.f32 %v708_v56, %v684_v54 }
  0xd6   : > { %v639_v60 = vsel %vm300_vm2, %v637_v57, %v638_v58 }
  0xd7   : > { %v641_v61 = vadd.f32 %v639_v60, %v597_v55  ;;  %v1431_v55 = vld [vmem:[%s1760_s2] ss:$0 sm:$0xff] }
  0xd8   : > { %v725_v62 = vpop.f32.mrf.mxu2 }
  0xd9   : > { %v646_v63 = vadd.f32 %v1428_v59, %v641_v61  ;;  %v742_v0 = vpop.f32.mrf.mxu3 }
  0xda   : > { %v686_v1 = vpop.f32.mrf.mxu0  ;;  %v743_v6 = vadd.f32 %v742_v0, %v725_v62 }
  0xdb   : > { %vm647_vm7 = vcmp.ge.f32.partialorder %v646_v63, 0.0  ;;  %v648_v2 = vmul.f32 0.2, %v646_v63  ;;  %v710_v3 = vpop.f32.mrf.mxu1 }
  0xdc   : > { %v749_v13 = vrot.slane %v743_v6, 1 }
  0xdd   : > { %v649_v4 = vsel %vm647_vm7, %v646_v63, %v648_v2 }
  0xde   : > { %v650_v5 = vpack.c.bf16 %v649_v4, %v649_v4 }
  0xe0   : > { %1300 = vst.msk [vmem:[%s1703_s21 + $0xc] sm:$0xf] %vm315_vm4, %v650_v5  ;;  %v727_v7 = vpop.f32.mrf.mxu2 }
  0xe1   : > { %v744_v8 = vpop.f32.mrf.mxu3 }
  0xe2   : > { %v745_v9 = vadd.f32 %v744_v8, %v727_v7  ;;  %v796_v10 = vpop.f32.mrf.mxu0 }
  0xe3   : > { %v820_v12 = vpop.f32.mrf.mxu1 }
  0xe4   : > { %v750_v14 = vrot.slane %v745_v9, 1  ;;  %v821_v31 = vadd.f32 %v820_v12, %v796_v10  ;;  %v1432_v9 = vld [vmem:[%s1760_s2] ss:$0 sm:$0xff] }
  0xe6   : > { %v751_v16 = vsel %vm300_vm2, %v749_v13, %v750_v14 }
  0xe7   : > { %v753_v17 = vadd.f32 %v751_v16, %v709_v11 }
  0xe8   : > { %v837_v18 = vpop.f32.mrf.mxu2 }
  0xe9   : > { %v758_v19 = vadd.f32 %v1429_v15, %v753_v17  ;;  %v854_v20 = vpop.f32.mrf.mxu3 }
  0xea   : > { %v798_v21 = vpop.f32.mrf.mxu0  ;;  %v855_v26 = vadd.f32 %v854_v20, %v837_v18 }
  0xeb   : > { %vm759_vm8 = vcmp.ge.f32.partialorder %v758_v19, 0.0  ;;  %v760_v22 = vmul.f32 0.2, %v758_v19  ;;  %v822_v23 = vpop.f32.mrf.mxu1 }
  0xec   : > { %v861_v33 = vrot.slane %v855_v26, 1 }
  0xed   : > { %v761_v24 = vsel %vm759_vm8, %v758_v19, %v760_v22 }
  0xee   : > { %v762_v25 = vpack.c.bf16 %v761_v24, %v761_v24 }
  0xf0   : > { %1320 = vst.msk [vmem:[%s1703_s21 + $0x10] sm:$0xf] %vm315_vm4, %v762_v25  ;;  %v839_v27 = vpop.f32.mrf.mxu2 }
  0xf1   : > { %v856_v28 = vpop.f32.mrf.mxu3 }
  0xf2   : > { %v857_v29 = vadd.f32 %v856_v28, %v839_v27  ;;  %v908_v30 = vpop.f32.mrf.mxu0 }
  0xf3   : > { %v932_v32 = vpop.f32.mrf.mxu1 }
  0xf4   : > { %v862_v34 = vrot.slane %v857_v29, 1  ;;  %v933_v51 = vadd.f32 %v932_v32, %v908_v30 }
  0xf6   : > { %v863_v36 = vsel %vm300_vm2, %v861_v33, %v862_v34 }
  0xf7   : > { %v865_v37 = vadd.f32 %v863_v36, %v821_v31 }
  0xf8   : > { %v949_v38 = vpop.f32.mrf.mxu2 }
  0xf9   : > { %v870_v39 = vadd.f32 %v1430_v35, %v865_v37  ;;  %v966_v40 = vpop.f32.mrf.mxu3 }
  0xfa   : > { %v910_v41 = vpop.f32.mrf.mxu0  ;;  %v967_v46 = vadd.f32 %v966_v40, %v949_v38 }
  0xfb   : > { %vm871_vm9 = vcmp.ge.f32.partialorder %v870_v39, 0.0  ;;  %v872_v42 = vmul.f32 0.2, %v870_v39  ;;  %v934_v43 = vpop.f32.mrf.mxu1 }
  0xfc   : > { %v973_v53 = vrot.slane %v967_v46, 1 }
  0xfd   : > { %v873_v44 = vsel %vm871_vm9, %v870_v39, %v872_v42 }
  0xfe   : > { %v874_v45 = vpack.c.bf16 %v873_v44, %v873_v44 }
 0x100   : > { %1340 = vst.msk [vmem:[%s1703_s21 + $0x14] sm:$0xf] %vm315_vm4, %v874_v45  ;;  %v951_v47 = vpop.f32.mrf.mxu2 }
 0x101   : > { %v968_v48 = vpop.f32.mrf.mxu3 }
 0x102   : > { %v969_v49 = vadd.f32 %v968_v48, %v951_v47  ;;  %v1020_v50 = vpop.f32.mrf.mxu0 }
 0x103   : > { %v1044_v52 = vpop.f32.mrf.mxu1 }
 0x104   : > { %v974_v54 = vrot.slane %v969_v49, 1  ;;  %v1045_v6 = vadd.f32 %v1044_v52, %v1020_v50 }
 0x106   : > { %v975_v56 = vsel %vm300_vm2, %v973_v53, %v974_v54 }
 0x107   : > { %v977_v57 = vadd.f32 %v975_v56, %v933_v51 }
 0x108   : > { %v1061_v58 = vpop.f32.mrf.mxu2 }
 0x109   : > { %v982_v59 = vadd.f32 %v1431_v55, %v977_v57  ;;  %v1078_v60 = vpop.f32.mrf.mxu3 }
 0x10a   : > { %v1022_v61 = vpop.f32.mrf.mxu0  ;;  %v1079_v2 = vadd.f32 %v1078_v60, %v1061_v58 }
 0x10b   : > { %vm983_vm10 = vcmp.ge.f32.partialorder %v982_v59, 0.0  ;;  %v984_v62 = vmul.f32 0.2, %v982_v59  ;;  %v1046_v63 = vpop.f32.mrf.mxu1 }
 0x10c   : > { %v1085_v7 = vrot.slane %v1079_v2, 1 }
 0x10d   : > { %v985_v0 = vsel %vm983_vm10, %v982_v59, %v984_v62 }
 0x10e   : > { %v986_v1 = vpack.c.bf16 %v985_v0, %v985_v0 }
 0x110   : > { %1360 = vst.msk [vmem:[%s1703_s21 + $0x18] sm:$0xf] %vm315_vm4, %v986_v1  ;;  %v1063_v3 = vpop.f32.mrf.mxu2 }
 0x111   : > { %v1080_v4 = vpop.f32.mrf.mxu3 }
 0x112   : > { %v1081_v5 = vadd.f32 %v1080_v4, %v1063_v3 }
 0x114   : > { %v1086_v8 = vrot.slane %v1081_v5, 1 }
 0x116   : > { %v1087_v10 = vsel %vm300_vm2, %v1085_v7, %v1086_v8 }
 0x117   : > { %v1089_v11 = vadd.f32 %v1087_v10, %v1045_v6 }
 0x119   : > { %v1094_v12 = vadd.f32 %v1432_v9, %v1089_v11 }
 0x11b   : > { %vm1095_vm11 = vcmp.ge.f32.partialorder %v1094_v12, 0.0  ;;  %v1096_v13 = vmul.f32 0.2, %v1094_v12 }
 0x11d   : > { %v1097_v14 = vsel %vm1095_vm11, %v1094_v12, %v1096_v13 }
 0x11e   : > { %v1098_v15 = vpack.c.bf16 %v1097_v14, %v1097_v14 }
 0x120   : > { %1380 = vst.msk [vmem:[%s1703_s21 + $0x1c] sm:$0xf] %vm315_vm4, %v1098_v15 }
 0x121 PF: > { %s13_s14 = sadd.s32 1, %s1455_s14   ;;  %s1762_s12 = smov %s1451_s13 }
 0x122   : > { %p10_p5 = scmp.ge.s32.totalorder %s13_s14, 4   ;;  %s1763_s13 = smov %s1765_s15 }
 0x124   :  { %12 = sbr.rel (!%p10_p5) target bundleno = 2 (0x2), region = 81 }

// kernel: discriminator_forward.6
= control target key start
LH: loop header
LB: loop body
LE: loop exit
PB: predicated region body
PF: predicated region fallthrough
CT: control target
= control target key end

     0   :  { %s1651_s12 = smov 0   ;;  %s1653_s13 = smov 0   ;;  %s1928_s0 = inlined_call_operand.vmem [shape: bf16[2,5,5,64], index: 0, kind: input, shape index: {}]   ;;  %s1929_s1 = inlined_call_operand.vmem [shape: bf16[4,64,32], index: 1, kind: input, shape index: {}]   ;;  %s1930_s2 = inlined_call_operand.vmem [shape: f32[1,32], index: 2, kind: input, shape index: {}]   ;;  %s1931_s3 = inlined_call_operand.vmem [shape: bf16[2,4,4,32], index: 3, kind: output, shape index: {}]  }
   0x1   :  { %s1655_s14 = smov 0  }
   0x2 LB: > { %s25_s15 = sadd.s32 1, %s1625_s13  ;;  %p1129_p0 = scmp.ge.s32.totalorder %s1629_s14, 1  ;;  %s1629_s14 = sphi %s1655_s14, %s13_s14   ;;  %s1625_s13 = sphi %s1653_s13, %s1933_s13   ;;  %s1621_s12 = sphi %s1651_s12, %s1932_s12  }
   0x3   : > { %p27_p1 = scmp.ge.s32.totalorder %s25_s15, 2  ;;  %p151_p2 = scmp.lt.s32.totalorder %s1629_s14, 3 }
   0x5   : > { %s1935_s15 = smov (%p27_p1, %s25_s15), 0  ;;  %p152_p3 = pnand %p1129_p0, %p151_p2 }
   0x6   : > { %p179_p4 = scmp.lt.s32.totalorder (!%p152_p3), %s1621_s12, 1 }
   0x7   : > { %155 = sbr.rel (%p152_p3) target bundleno = 225 (0xe1), region = 32 }
   0xc   : > { %v1525_v0 = vld [vmem:[%s1929_s1 + $0x58] sm:$0xff]  ;;  %v1524_v4 = vld [vmem:[%s1929_s1 + $0x50] sm:$0xff]  ;;  %s1937_s12 = smov (!%p179_p4, %s1621_s12), 1  ;;  %v1523_v8 = vld [vmem:[%s1929_s1 + $0x48] sm:$0xff]  ;;  %vm253_vm0 = vcmask 523264   ;;  %vm406_vm2 = vcmask 254976  }
   0xd   : > { %v1517_v1 = vld [vmem:[%s1929_s1 + $0x18] sm:$0xff]  ;;  %261 = vmatpush.bf16.msra.mxu0 %v1525_v0  ;;  %v1516_v5 = vld [vmem:[%s1929_s1 + $0x10] sm:$0xff]  ;;  %v1515_v9 = vld [vmem:[%s1929_s1 + $0x8] sm:$0xff]  ;;  %s1578_s17 = smul.u32 20, %s1937_s12  ;;  %s1513_s11 = sshll.u32 %s1937_s12, 3 }
   0xe   : > { %v1529_v2 = vld [vmem:[%s1929_s1 + $0x78] sm:$0xff]  ;;  %301 = vmatpush.bf16.msra.mxu1 %v1517_v1  ;;  %v1528_v6 = vld [vmem:[%s1929_s1 + $0x70] sm:$0xff]  ;;  %v1527_v10 = vld [vmem:[%s1929_s1 + $0x68] sm:$0xff]  ;;  %s1900_s18 = scalar_lea.vmem %s1931_s3, %s1513_s11 }
   0xf   : > { %v1521_v3 = vld [vmem:[%s1929_s1 + $0x38] sm:$0xff]  ;;  %347 = vmatpush.bf16.msra.mxu2 %v1529_v2  ;;  %v1520_v7 = vld [vmem:[%s1929_s1 + $0x30] sm:$0xff]  ;;  %v1519_v11 = vld [vmem:[%s1929_s1 + $0x28] sm:$0xff]  ;;  %s1723_s28 = scalar_lea.vmem %s1928_s0, %s1578_s17 }
  0x10   : > { %384 = vmatpush.bf16.msra.mxu3 %v1521_v3  ;;  %v1522_v12 = vld [vmem:[%s1929_s1 + $0x40] sm:$0xff]  ;;  %v1545_v16 = vld [vmem:[%s1929_s1 + $0x78] sm:$0xff]  ;;  %v1544_v22 = vld [vmem:[%s1929_s1 + $0x70] sm:$0xff] }
  0x11   : > { %262 = vmatpush.bf16.msra.mxu0 %v1524_v4  ;;  %v1514_v13 = vld [vmem:[%s1929_s1] sm:$0xff]  ;;  %v1537_v17 = vld [vmem:[%s1929_s1 + $0x38] sm:$0xff]  ;;  %v1536_v23 = vld [vmem:[%s1929_s1 + $0x30] sm:$0xff] }
  0x12   : > { %302 = vmatpush.bf16.msra.mxu1 %v1516_v5  ;;  %v1526_v14 = vld [vmem:[%s1929_s1 + $0x60] sm:$0xff]  ;;  %v1541_v20 = vld [vmem:[%s1929_s1 + $0x58] sm:$0xff]  ;;  %v1540_v24 = vld [vmem:[%s1929_s1 + $0x50] sm:$0xff] }
  0x13   : > { %348 = vmatpush.bf16.msra.mxu2 %v1528_v6  ;;  %v1518_v15 = vld [vmem:[%s1929_s1 + $0x20] sm:$0xff]  ;;  %v1533_v21 = vld [vmem:[%s1929_s1 + $0x18] sm:$0xff]  ;;  %v1532_v25 = vld [vmem:[%s1929_s1 + $0x10] sm:$0xff] }
  0x14   : > { %385 = vmatpush.bf16.msra.mxu3 %v1520_v7  ;;  %v1141_v18 = vld [vmem:[%s1723_s28 + $0x4] sm:$0x7]  ;;  %v198_v19 = vld [vmem:[%s1723_s28] sm:$0x7]  ;;  %v1543_v26 = vld [vmem:[%s1929_s1 + $0x68] sm:$0xff] }
  0x15   : > { %263 = vmatpush.bf16.msra.mxu0 %v1523_v8  ;;  %v1535_v27 = vld [vmem:[%s1929_s1 + $0x28] sm:$0xff]  ;;  %v1542_v30 = vld [vmem:[%s1929_s1 + $0x60] sm:$0xff]  ;;  %v1561_v32 = vld [vmem:[%s1929_s1 + $0x78] sm:$0xff] }
  0x16   : > { %303 = vmatpush.bf16.msra.mxu1 %v1515_v9  ;;  %v1539_v28 = vld [vmem:[%s1929_s1 + $0x48] sm:$0xff]  ;;  %v1534_v31 = vld [vmem:[%s1929_s1 + $0x20] sm:$0xff]  ;;  %v1553_v33 = vld [vmem:[%s1929_s1 + $0x38] sm:$0xff] }
  0x17   : > { %349 = vmatpush.bf16.msra.mxu2 %v1527_v10  ;;  %v1531_v29 = vld [vmem:[%s1929_s1 + $0x8] sm:$0xff]  ;;  %v1538_v34 = vld [vmem:[%s1929_s1 + $0x40] sm:$0xff]  ;;  %v1557_v36 = vld [vmem:[%s1929_s1 + $0x58] sm:$0xff] }
  0x18   : > { %386 = vmatpush.bf16.msra.mxu3 %v1519_v11  ;;  %v1530_v35 = vld [vmem:[%s1929_s1] sm:$0xff]  ;;  %v1549_v37 = vld [vmem:[%s1929_s1 + $0x18] sm:$0xff]  ;;  %v1560_v38 = vld [vmem:[%s1929_s1 + $0x70] sm:$0xff] }
  0x19   : > { %264 = vmatpush.bf16.msra.mxu0 %v1522_v12  ;;  %v1552_v39 = vld [vmem:[%s1929_s1 + $0x30] sm:$0xff]  ;;  %v1235_v40 = vld [vmem:[%s1723_s28 + $0x8] sm:$0x7]  ;;  %v1226_v41 = vld [vmem:[%s1723_s28 + $0x4] sm:$0x7] }
  0x1a   : > { %304 = vmatpush.bf16.msra.mxu1 %v1514_v13  ;;  %v1556_v42 = vld [vmem:[%s1929_s1 + $0x50] sm:$0xff]  ;;  %v1559_v44 = vld [vmem:[%s1929_s1 + $0x68] sm:$0xff]  ;;  %v1558_v48 = vld [vmem:[%s1929_s1 + $0x60] sm:$0xff] }
  0x1b   : > { %350 = vmatpush.bf16.msra.mxu2 %v1526_v14  ;;  %v1548_v43 = vld [vmem:[%s1929_s1 + $0x10] sm:$0xff]  ;;  %v1551_v45 = vld [vmem:[%s1929_s1 + $0x28] sm:$0xff]  ;;  %v1550_v49 = vld [vmem:[%s1929_s1 + $0x20] sm:$0xff] }
  0x1c   : > { %387 = vmatpush.bf16.msra.mxu3 %v1518_v15  ;;  %1166 = vmatmul.msk.bf16.vlgmr.msra.gmra.mxu0 %vm253_vm0, %v1141_v18  ;;  %v1555_v46 = vld [vmem:[%s1929_s1 + $0x48] sm:$0xff]  ;;  %v1577_v50 = vld [vmem:[%s1929_s1 + $0x78] sm:$0xff]  ;;  %v1554_v52 = vld [vmem:[%s1929_s1 + $0x40] sm:$0xff] }
  0x1d   : > { %1183 = vmatmul.msk.bf16.vlgmr.msra.gmra.mxu1 %vm253_vm0, %v198_v19  ;;  %468 = vmatpush.bf16.msrb.mxu0 %v1541_v20  ;;  %v1547_v47 = vld [vmem:[%s1929_s1 + $0x8] sm:$0xff]  ;;  %v1569_v51 = vld [vmem:[%s1929_s1 + $0x38] sm:$0xff]  ;;  %v1546_v53 = vld [vmem:[%s1929_s1] sm:$0xff] }
  0x1e   : > { %1208 = vmatmul.msk.bf16.vlgmr.msra.gmra.mxu2 %vm253_vm0, %v1141_v18  ;;  %508 = vmatpush.bf16.msrb.mxu1 %v1533_v21  ;;  %v1573_v54 = vld [vmem:[%s1929_s1 + $0x58] sm:$0xff]  ;;  %v1576_v56 = vld [vmem:[%s1929_s1 + $0x70] sm:$0xff]  ;;  %v1330_v60 = vld [vmem:[%s1723_s28 + $0xc] sm:$0x7] }
  0x1f   : > { %553 = vmatpush.bf16.msrb.mxu2 %v1545_v16  ;;  %1225 = vmatmul.msk.bf16.vlgmr.msra.gmra.mxu3 %vm253_vm0, %v198_v19  ;;  %v1565_v55 = vld [vmem:[%s1929_s1 + $0x18] sm:$0xff]  ;;  %v1568_v57 = vld [vmem:[%s1929_s1 + $0x30] sm:$0xff]  ;;  %v1321_v61 = vld [vmem:[%s1723_s28 + $0x8] sm:$0x7] }
  0x20   : > { %590 = vmatpush.bf16.msrb.mxu3 %v1537_v17  ;;  %v1572_v58 = vld [vmem:[%s1929_s1 + $0x50] sm:$0xff]  ;;  %v1575_v62 = vld [vmem:[%s1929_s1 + $0x68] sm:$0xff]  ;;  %v1574_v2 = vld [vmem:[%s1929_s1 + $0x60] sm:$0xff] }
  0x21   : > { %469 = vmatpush.bf16.msrb.mxu0 %v1540_v24  ;;  %v1564_v59 = vld [vmem:[%s1929_s1 + $0x10] sm:$0xff]  ;;  %v1567_v63 = vld [vmem:[%s1929_s1 + $0x28] sm:$0xff]  ;;  %v1566_v3 = vld [vmem:[%s1929_s1 + $0x20] sm:$0xff] }
  0x22   : > { %509 = vmatpush.bf16.msrb.mxu1 %v1532_v25  ;;  %v1571_v0 = vld [vmem:[%s1929_s1 + $0x48] sm:$0xff]  ;;  %v1570_v4 = vld [vmem:[%s1929_s1 + $0x40] sm:$0xff]  ;;  %v1425_v6 = vld [vmem:[%s1723_s28 + $0x10] sm:$0x7] }
  0x23   : > { %554 = vmatpush.bf16.msrb.mxu2 %v1544_v22  ;;  %v1563_v1 = vld [vmem:[%s1929_s1 + $0x8] sm:$0xff]  ;;  %v1562_v5 = vld [vmem:[%s1929_s1] sm:$0xff] }
  0x24   : > { %591 = vmatpush.bf16.msrb.mxu3 %v1536_v23  ;;  %v1416_v7 = vld [vmem:[%s1723_s28 + $0xc] sm:$0x7]  ;;  %v1603_v17 = vld [vmem:[%s1930_s2] ss:$0 sm:$0xff] }
  0x25   : > { %470 = vmatpush.bf16.msrb.mxu0 %v1539_v28 }
  0x26   : > { %510 = vmatpush.bf16.msrb.mxu1 %v1531_v29 }
  0x27   : > { %555 = vmatpush.bf16.msrb.mxu2 %v1543_v26 }
  0x28   : > { %592 = vmatpush.bf16.msrb.mxu3 %v1535_v27 }
  0x29   : > { %471 = vmatpush.bf16.msrb.mxu0 %v1538_v34  ;;  %v1604_v34 = vld [vmem:[%s1930_s2] ss:$0 sm:$0xff] }
  0x2a   : > { %511 = vmatpush.bf16.msrb.mxu1 %v1530_v35 }
  0x2b   : > { %556 = vmatpush.bf16.msrb.mxu2 %v1542_v30 }
  0x2c   : > { %593 = vmatpush.bf16.msrb.mxu3 %v1534_v31  ;;  %1260 = vmatmul.msk.bf16.vlgmr.msrb.gmra.mxu0 %vm253_vm0, %v1235_v40 }
  0x2d   : > { %674 = vmatpush.bf16.msra.mxu0 %v1557_v36  ;;  %1277 = vmatmul.msk.bf16.vlgmr.msrb.gmra.mxu1 %vm253_vm0, %v1226_v41 }
  0x2e   : > { %714 = vmatpush.bf16.msra.mxu1 %v1549_v37  ;;  %1302 = vmatmul.msk.bf16.vlgmr.msrb.gmra.mxu2 %vm253_vm0, %v1235_v40 }
  0x2f   : > { %759 = vmatpush.bf16.msra.mxu2 %v1561_v32  ;;  %1319 = vmatmul.msk.bf16.vlgmr.msrb.gmra.mxu3 %vm253_vm0, %v1226_v41 }
  0x30   : > { %796 = vmatpush.bf16.msra.mxu3 %v1553_v33 }
  0x31   : > { %675 = vmatpush.bf16.msra.mxu0 %v1556_v42 }
  0x32   : > { %715 = vmatpush.bf16.msra.mxu1 %v1548_v43 }
  0x33   : > { %760 = vmatpush.bf16.msra.mxu2 %v1560_v38 }
  0x34   : > { %797 = vmatpush.bf16.msra.mxu3 %v1552_v39 }
  0x35   : > { %676 = vmatpush.bf16.msra.mxu0 %v1555_v46 }
  0x36   : > { %716 = vmatpush.bf16.msra.mxu1 %v1547_v47 }
  0x37   : > { %761 = vmatpush.bf16.msra.mxu2 %v1559_v44 }
  0x38   : > { %798 = vmatpush.bf16.msra.mxu3 %v1551_v45 }
  0x39   : > { %677 = vmatpush.bf16.msra.mxu0 %v1554_v52 }
  0x3a   : > { %717 = vmatpush.bf16.msra.mxu1 %v1546_v53 }
  0x3b   : > { %762 = vmatpush.bf16.msra.mxu2 %v1558_v48 }
  0x3c   : > { %799 = vmatpush.bf16.msra.mxu3 %v1550_v49  ;;  %1355 = vmatmul.msk.bf16.vlgmr.msra.gmra.mxu0 %vm253_vm0, %v1330_v60 }
  0x3d   : > { %880 = vmatpush.bf16.msrb.mxu0 %v1573_v54  ;;  %1372 = vmatmul.msk.bf16.vlgmr.msra.gmra.mxu1 %vm253_vm0, %v1321_v61 }
  0x3e   : > { %920 = vmatpush.bf16.msrb.mxu1 %v1565_v55  ;;  %1397 = vmatmul.msk.bf16.vlgmr.msra.gmra.mxu2 %vm253_vm0, %v1330_v60 }
  0x3f   : > { %965 = vmatpush.bf16.msrb.mxu2 %v1577_v50  ;;  %1414 = vmatmul.msk.bf16.vlgmr.msra.gmra.mxu3 %vm253_vm0, %v1321_v61 }
  0x40   : > { %1002 = vmatpush.bf16.msrb.mxu3 %v1569_v51  ;;  %v1605_v51 = vld [vmem:[%s1930_s2] ss:$0 sm:$0xff] }
  0x41   : > { %881 = vmatpush.bf16.msrb.mxu0 %v1572_v58 }
  0x42   : > { %921 = vmatpush.bf16.msrb.mxu1 %v1564_v59 }
  0x43   : > { %966 = vmatpush.bf16.msrb.mxu2 %v1576_v56 }
  0x44   : > { %1003 = vmatpush.bf16.msrb.mxu3 %v1568_v57 }
  0x45   : > { %882 = vmatpush.bf16.msrb.mxu0 %v1571_v0 }
  0x46   : > { %922 = vmatpush.bf16.msrb.mxu1 %v1563_v1 }
  0x47   : > { %967 = vmatpush.bf16.msrb.mxu2 %v1575_v62 }
  0x48   : > { %1004 = vmatpush.bf16.msrb.mxu3 %v1567_v63 }
  0x49   : > { %883 = vmatpush.bf16.msrb.mxu0 %v1570_v4  ;;  %v1606_v4 = vld [vmem:[%s1930_s2] ss:$0 sm:$0xff] }
  0x4a   : > { %923 = vmatpush.bf16.msrb.mxu1 %v1562_v5 }
  0x4b   : > { %968 = vmatpush.bf16.msrb.mxu2 %v1574_v2 }
  0x4c   : > { %1005 = vmatpush.bf16.msrb.mxu3 %v1566_v3  ;;  %1450 = vmatmul.msk.bf16.vlgmr.msrb.gmra.mxu0 %vm253_vm0, %v1425_v6 }
  0x4d   : > { %1467 = vmatmul.msk.bf16.vlgmr.msrb.gmra.mxu1 %vm253_vm0, %v1416_v7 }
  0x4e   : > { %1492 = vmatmul.msk.bf16.vlgmr.msrb.gmra.mxu2 %vm253_vm0, %v1425_v6 }
  0x4f   : > { %1509 = vmatmul.msk.bf16.vlgmr.msrb.gmra.mxu3 %vm253_vm0, %v1416_v7 }
  0x99   : > { %v266_v8 = vpop.f32.mrf.mxu0 }
  0x9a   : > { %v306_v9 = vpop.f32.mrf.mxu1 }
  0x9b   : > { %v307_v12 = vadd.f32 %v306_v9, %v266_v8 }
  0xa1   : > { %v352_v10 = vpop.f32.mrf.mxu2  ;;  %v268_v14 = vpop.f32.mrf.mxu0 }
  0xa2   : > { %v389_v11 = vpop.f32.mrf.mxu3  ;;  %v308_v15 = vpop.f32.mrf.mxu1 }
  0xa3   : > { %v390_v13 = vadd.f32 %v389_v11, %v352_v10 }
  0xa5   : > { %v394_v16 = vrot.slane %v390_v13, 1 }
  0xa7   : > { %v396_v18 = vadd.f32 %v394_v16, %v307_v12 }
  0xa9   : > { %v401_v19 = vadd.f32 %v1603_v17, %v396_v18  ;;  %v354_v20 = vpop.f32.mrf.mxu2  ;;  %v473_v23 = vpop.f32.mrf.mxu0 }
  0xaa   : > { %v391_v21 = vpop.f32.mrf.mxu3  ;;  %v513_v24 = vpop.f32.mrf.mxu1 }
  0xab   : > { %vm402_vm1 = vcmp.ge.f32.partialorder %v401_v19, 0.0  ;;  %v403_v22 = vmul.f32 0.2, %v401_v19  ;;  %v514_v29 = vadd.f32 %v513_v24, %v473_v23 }
  0xad   : > { %v404_v25 = vsel %vm402_vm1, %v401_v19, %v403_v22 }
  0xae   : > { %v405_v26 = vpack.c.bf16 %v404_v25, %v404_v25 }
  0xb0   : > { %407 = vst.msk [vmem:[%s1900_s18] sm:$0x3] %vm406_vm2, %v405_v26 }
  0xb1   : > { %v558_v27 = vpop.f32.mrf.mxu2  ;;  %v475_v31 = vpop.f32.mrf.mxu0 }
  0xb2   : > { %v595_v28 = vpop.f32.mrf.mxu3  ;;  %v515_v32 = vpop.f32.mrf.mxu1 }
  0xb3   : > { %v596_v30 = vadd.f32 %v595_v28, %v558_v27 }
  0xb5   : > { %v600_v33 = vrot.slane %v596_v30, 1 }
  0xb7   : > { %v602_v35 = vadd.f32 %v600_v33, %v514_v29 }
  0xb9   : > { %v607_v36 = vadd.f32 %v1604_v34, %v602_v35  ;;  %v560_v37 = vpop.f32.mrf.mxu2  ;;  %v679_v40 = vpop.f32.mrf.mxu0 }
  0xba   : > { %v597_v38 = vpop.f32.mrf.mxu3  ;;  %v719_v41 = vpop.f32.mrf.mxu1 }
  0xbb   : > { %vm608_vm3 = vcmp.ge.f32.partialorder %v607_v36, 0.0  ;;  %v609_v39 = vmul.f32 0.2, %v607_v36  ;;  %v720_v46 = vadd.f32 %v719_v41, %v679_v40 }
  0xbd   : > { %v610_v42 = vsel %vm608_vm3, %v607_v36, %v609_v39 }
  0xbe   : > { %v611_v43 = vpack.c.bf16 %v610_v42, %v610_v42 }
  0xc0   : > { %1320 = vst.msk [vmem:[%s1900_s18 + $0x2] sm:$0x3] %vm406_vm2, %v611_v43 }
  0xc1   : > { %v764_v44 = vpop.f32.mrf.mxu2  ;;  %v681_v48 = vpop.f32.mrf.mxu0 }
  0xc2   : > { %v801_v45 = vpop.f32.mrf.mxu3  ;;  %v721_v49 = vpop.f32.mrf.mxu1 }
  0xc3   : > { %v802_v47 = vadd.f32 %v801_v45, %v764_v44 }
  0xc5   : > { %v806_v50 = vrot.slane %v802_v47, 1 }
  0xc7   : > { %v808_v52 = vadd.f32 %v806_v50, %v720_v46 }
  0xc9   : > { %v813_v53 = vadd.f32 %v1605_v51, %v808_v52  ;;  %v766_v54 = vpop.f32.mrf.mxu2  ;;  %v885_v57 = vpop.f32.mrf.mxu0 }
  0xca   : > { %v803_v55 = vpop.f32.mrf.mxu3  ;;  %v925_v58 = vpop.f32.mrf.mxu1 }
  0xcb   : > { %vm814_vm4 = vcmp.ge.f32.partialorder %v813_v53, 0.0  ;;  %v815_v56 = vmul.f32 0.2, %v813_v53  ;;  %v926_v63 = vadd.f32 %v925_v58, %v885_v57 }
  0xcd   : > { %v816_v59 = vsel %vm814_vm4, %v813_v53, %v815_v56 }
  0xce   : > { %v817_v60 = vpack.c.bf16 %v816_v59, %v816_v59 }
  0xd0   : > { %1415 = vst.msk [vmem:[%s1900_s18 + $0x4] sm:$0x3] %vm406_vm2, %v817_v60 }
  0xd1   : > { %v970_v61 = vpop.f32.mrf.mxu2  ;;  %v887_v1 = vpop.f32.mrf.mxu0 }
  0xd2   : > { %v1007_v62 = vpop.f32.mrf.mxu3  ;;  %v927_v2 = vpop.f32.mrf.mxu1 }
  0xd3   : > { %v1008_v0 = vadd.f32 %v1007_v62, %v970_v61 }
  0xd5   : > { %v1012_v3 = vrot.slane %v1008_v0, 1 }
  0xd7   : > { %v1014_v5 = vadd.f32 %v1012_v3, %v926_v63 }
  0xd9   : > { %v1019_v6 = vadd.f32 %v1606_v4, %v1014_v5  ;;  %v972_v7 = vpop.f32.mrf.mxu2 }
  0xda   : > { %v1009_v8 = vpop.f32.mrf.mxu3 }
  0xdb   : > { %vm1020_vm5 = vcmp.ge.f32.partialorder %v1019_v6, 0.0  ;;  %v1021_v9 = vmul.f32 0.2, %v1019_v6 }
  0xdd   : > { %v1022_v10 = vsel %vm1020_vm5, %v1019_v6, %v1021_v9 }
  0xde   : > { %v1023_v11 = vpack.c.bf16 %v1022_v10, %v1022_v10 }
  0xe0   : > { %1510 = vst.msk [vmem:[%s1900_s18 + $0x6] sm:$0x3] %vm406_vm2, %v1023_v11 }
  0xe1 PF: > { %s13_s14 = sadd.s32 1, %s1629_s14   ;;  %s1932_s12 = smov %s1625_s13 }
  0xe2   : > { %p10_p5 = scmp.ge.s32.totalorder %s13_s14, 4   ;;  %s1933_s13 = smov %s1935_s15 }
  0xe4   :  { %12 = sbr.rel (!%p10_p5) target bundleno = 2 (0x2), region = 73 }

// kernel: discriminator_forward.7
= control target key start
LH: loop header
LB: loop body
LE: loop exit
PB: predicated region body
PF: predicated region fallthrough
CT: control target
= control target key end

     0   :  { %s1439_s12 = smov 0   ;;  %s1441_s13 = smov 0   ;;  %s1686_s0 = inlined_call_operand.vmem [shape: bf16[2,3,3,128], index: 0, kind: input, shape index: {}]   ;;  %s1687_s1 = inlined_call_operand.vmem [shape: bf16[4,128,64], index: 1, kind: input, shape index: {}]   ;;  %s1688_s2 = inlined_call_operand.vmem [shape: f32[1,64], index: 2, kind: input, shape index: {}]   ;;  %s1689_s3 = inlined_call_operand.vmem [shape: bf16[2,2,2,64], index: 3, kind: output, shape index: {}]  }
   0x1   :  { %s1443_s14 = smov 0  }
   0x2 LB: > { %s25_s15 = sadd.s32 1, %s1413_s13  ;;  %p943_p0 = scmp.ge.s32.totalorder %s1417_s14, 1  ;;  %s1417_s14 = sphi %s1443_s14, %s13_s14   ;;  %s1413_s13 = sphi %s1441_s13, %s1691_s13   ;;  %s1409_s12 = sphi %s1439_s12, %s1690_s12  }
   0x3   : > { %p27_p1 = scmp.ge.s32.totalorder %s25_s15, 2  ;;  %p151_p2 = scmp.lt.s32.totalorder %s1417_s14, 3 }
   0x5   : > { %s1693_s15 = smov (%p27_p1, %s25_s15), 0  ;;  %p152_p3 = pnand %p943_p0, %p151_p2 }
   0x6   : > { %p178_p4 = scmp.lt.s32.totalorder (!%p152_p3), %s1409_s12, 1 }
   0x7   : > { %155 = sbr.rel (%p152_p3) target bundleno = 225 (0xe1), region = 32 }
   0xc   : > { %v1327_v0 = vld [vmem:[%s1687_s1 + $0xb8] sm:$0xff]  ;;  %v1326_v4 = vld [vmem:[%s1687_s1 + $0xb0] sm:$0xff]  ;;  %v1325_v8 = vld [vmem:[%s1687_s1 + $0xa8] sm:$0xff]  ;;  %s1695_s12 = smov (!%p178_p4, %s1409_s12), 1  ;;  %vm524_vm1 = vcmask 516096  }
   0xd   : > { %v1311_v1 = vld [vmem:[%s1687_s1 + $0x38] sm:$0xff]  ;;  %298 = vmatpush.bf16.msra.mxu0 %v1327_v0  ;;  %v1310_v5 = vld [vmem:[%s1687_s1 + $0x30] sm:$0xff]  ;;  %v1309_v9 = vld [vmem:[%s1687_s1 + $0x28] sm:$0xff]  ;;  %s1368_s26 = smul.u32 6, %s1695_s12 }
   0xe   : > { %v1335_v2 = vld [vmem:[%s1687_s1 + $0xf8] sm:$0xff]  ;;  %359 = vmatpush.bf16.msra.mxu1 %v1311_v1  ;;  %v1334_v6 = vld [vmem:[%s1687_s1 + $0xf0] sm:$0xff]  ;;  %v1333_v10 = vld [vmem:[%s1687_s1 + $0xe8] sm:$0xff] }
   0xf   : > { %v1319_v3 = vld [vmem:[%s1687_s1 + $0x78] sm:$0xff]  ;;  %437 = vmatpush.bf16.msra.mxu2 %v1335_v2  ;;  %v1318_v7 = vld [vmem:[%s1687_s1 + $0x70] sm:$0xff]  ;;  %v1317_v11 = vld [vmem:[%s1687_s1 + $0x68] sm:$0xff]  ;;  %s1569_s18 = scalar_lea.vmem %s1686_s0, %s1368_s26 }
  0x10   : > { %498 = vmatpush.bf16.msra.mxu3 %v1319_v3  ;;  %v1324_v12 = vld [vmem:[%s1687_s1 + $0xa0] sm:$0xff]  ;;  %v1323_v16 = vld [vmem:[%s1687_s1 + $0x98] sm:$0xff]  ;;  %v1322_v20 = vld [vmem:[%s1687_s1 + $0x90] sm:$0xff] }
  0x11   : > { %299 = vmatpush.bf16.msra.mxu0 %v1326_v4  ;;  %v1308_v13 = vld [vmem:[%s1687_s1 + $0x20] sm:$0xff]  ;;  %v1307_v17 = vld [vmem:[%s1687_s1 + $0x18] sm:$0xff]  ;;  %v1306_v21 = vld [vmem:[%s1687_s1 + $0x10] sm:$0xff] }
  0x12   : > { %360 = vmatpush.bf16.msra.mxu1 %v1310_v5  ;;  %v1332_v14 = vld [vmem:[%s1687_s1 + $0xe0] sm:$0xff]  ;;  %v1331_v18 = vld [vmem:[%s1687_s1 + $0xd8] sm:$0xff]  ;;  %v1330_v22 = vld [vmem:[%s1687_s1 + $0xd0] sm:$0xff] }
  0x13   : > { %438 = vmatpush.bf16.msra.mxu2 %v1334_v6  ;;  %v1316_v15 = vld [vmem:[%s1687_s1 + $0x60] sm:$0xff]  ;;  %v1315_v19 = vld [vmem:[%s1687_s1 + $0x58] sm:$0xff]  ;;  %v1314_v23 = vld [vmem:[%s1687_s1 + $0x50] sm:$0xff] }
  0x14   : > { %499 = vmatpush.bf16.msra.mxu3 %v1318_v7  ;;  %v1321_v24 = vld [vmem:[%s1687_s1 + $0x88] sm:$0xff]  ;;  %v1320_v28 = vld [vmem:[%s1687_s1 + $0x80] sm:$0xff]  ;;  %v1359_v32 = vld [vmem:[%s1687_s1 + $0xb8] sm:$0xff] }
  0x15   : > { %300 = vmatpush.bf16.msra.mxu0 %v1325_v8  ;;  %v1305_v25 = vld [vmem:[%s1687_s1 + $0x8] sm:$0xff]  ;;  %v1304_v29 = vld [vmem:[%s1687_s1] sm:$0xff]  ;;  %v1343_v33 = vld [vmem:[%s1687_s1 + $0x38] sm:$0xff] }
  0x16   : > { %361 = vmatpush.bf16.msra.mxu1 %v1309_v9  ;;  %v1329_v26 = vld [vmem:[%s1687_s1 + $0xc8] sm:$0xff]  ;;  %v1328_v30 = vld [vmem:[%s1687_s1 + $0xc0] sm:$0xff]  ;;  %v1367_v34 = vld [vmem:[%s1687_s1 + $0xf8] sm:$0xff] }
  0x17   : > { %439 = vmatpush.bf16.msra.mxu2 %v1333_v10  ;;  %v1313_v27 = vld [vmem:[%s1687_s1 + $0x48] sm:$0xff]  ;;  %v1312_v31 = vld [vmem:[%s1687_s1 + $0x40] sm:$0xff]  ;;  %v1351_v35 = vld [vmem:[%s1687_s1 + $0x78] sm:$0xff] }
  0x18   : > { %500 = vmatpush.bf16.msra.mxu3 %v1317_v11  ;;  %v962_v36 = vld [vmem:[%s1569_s18 + $0x2] sm:$0x3]  ;;  %v195_v37 = vld [vmem:[%s1569_s18] sm:$0x3]  ;;  %v1358_v38 = vld [vmem:[%s1687_s1 + $0xb0] sm:$0xff] }
  0x19   : > { %301 = vmatpush.bf16.msra.mxu0 %v1324_v12  ;;  %v1342_v39 = vld [vmem:[%s1687_s1 + $0x30] sm:$0xff]  ;;  %v1357_v42 = vld [vmem:[%s1687_s1 + $0xa8] sm:$0xff]  ;;  %v1356_v46 = vld [vmem:[%s1687_s1 + $0xa0] sm:$0xff] }
  0x1a   : > { %362 = vmatpush.bf16.msra.mxu1 %v1308_v13  ;;  %v1366_v40 = vld [vmem:[%s1687_s1 + $0xf0] sm:$0xff]  ;;  %v1341_v43 = vld [vmem:[%s1687_s1 + $0x28] sm:$0xff]  ;;  %v1340_v47 = vld [vmem:[%s1687_s1 + $0x20] sm:$0xff] }
  0x1b   : > { %440 = vmatpush.bf16.msra.mxu2 %v1332_v14  ;;  %v1350_v41 = vld [vmem:[%s1687_s1 + $0x70] sm:$0xff]  ;;  %v1365_v44 = vld [vmem:[%s1687_s1 + $0xe8] sm:$0xff]  ;;  %v1364_v48 = vld [vmem:[%s1687_s1 + $0xe0] sm:$0xff] }
  0x1c   : > { %501 = vmatpush.bf16.msra.mxu3 %v1316_v15  ;;  %v1349_v45 = vld [vmem:[%s1687_s1 + $0x68] sm:$0xff]  ;;  %v1348_v49 = vld [vmem:[%s1687_s1 + $0x60] sm:$0xff]  ;;  %v1355_v50 = vld [vmem:[%s1687_s1 + $0x98] sm:$0xff] }
  0x1d   : > { %302 = vmatpush.bf16.msra.mxu0 %v1323_v16  ;;  %v1339_v51 = vld [vmem:[%s1687_s1 + $0x18] sm:$0xff]  ;;  %v1354_v54 = vld [vmem:[%s1687_s1 + $0x90] sm:$0xff]  ;;  %v1353_v58 = vld [vmem:[%s1687_s1 + $0x88] sm:$0xff] }
  0x1e   : > { %363 = vmatpush.bf16.msra.mxu1 %v1307_v17  ;;  %v1363_v52 = vld [vmem:[%s1687_s1 + $0xd8] sm:$0xff]  ;;  %v1338_v55 = vld [vmem:[%s1687_s1 + $0x10] sm:$0xff]  ;;  %v1337_v59 = vld [vmem:[%s1687_s1 + $0x8] sm:$0xff] }
  0x1f   : > { %441 = vmatpush.bf16.msra.mxu2 %v1331_v18  ;;  %v1347_v53 = vld [vmem:[%s1687_s1 + $0x58] sm:$0xff]  ;;  %v1362_v56 = vld [vmem:[%s1687_s1 + $0xd0] sm:$0xff]  ;;  %v1361_v60 = vld [vmem:[%s1687_s1 + $0xc8] sm:$0xff] }
  0x20   : > { %502 = vmatpush.bf16.msra.mxu3 %v1315_v19  ;;  %v1346_v57 = vld [vmem:[%s1687_s1 + $0x50] sm:$0xff]  ;;  %v1345_v61 = vld [vmem:[%s1687_s1 + $0x48] sm:$0xff]  ;;  %v1352_v62 = vld [vmem:[%s1687_s1 + $0x80] sm:$0xff] }
  0x21   : > { %303 = vmatpush.bf16.msra.mxu0 %v1322_v20  ;;  %v1336_v63 = vld [vmem:[%s1687_s1] sm:$0xff] }
  0x22   : > { %364 = vmatpush.bf16.msra.mxu1 %v1306_v21  ;;  %v1360_v0 = vld [vmem:[%s1687_s1 + $0xc0] sm:$0xff] }
  0x23   : > { %442 = vmatpush.bf16.msra.mxu2 %v1330_v22  ;;  %v1344_v1 = vld [vmem:[%s1687_s1 + $0x40] sm:$0xff] }
  0x24   : > { %503 = vmatpush.bf16.msra.mxu3 %v1314_v23  ;;  %v1140_v2 = vld [vmem:[%s1569_s18 + $0x4] sm:$0x3]  ;;  %v1123_v3 = vld [vmem:[%s1569_s18 + $0x2] sm:$0x3]  ;;  %v1393_v11 = vld [vmem:[%s1688_s2] ss:$0 sm:$0xff] }
  0x25   : > { %304 = vmatpush.bf16.msra.mxu0 %v1321_v24  ;;  %s945_s18 = sshll.u32 %s1695_s12, 1 }
  0x26   : > { %365 = vmatpush.bf16.msra.mxu1 %v1305_v25  ;;  %s190_s16 = scalar_lea.vmem %s1689_s3, %s945_s18 }
  0x27   : > { %443 = vmatpush.bf16.msra.mxu2 %v1329_v26 }
  0x28   : > { %504 = vmatpush.bf16.msra.mxu3 %v1313_v27 }
  0x29   : > { %305 = vmatpush.bf16.msra.mxu0 %v1320_v28 }
  0x2a   : > { %366 = vmatpush.bf16.msra.mxu1 %v1304_v29 }
  0x2b   : > { %444 = vmatpush.bf16.msra.mxu2 %v1328_v30  ;;  %v1394_v30 = vld [vmem:[%s1688_s2] ss:$0 sm:$0xff] }
  0x2c   : > { %505 = vmatpush.bf16.msra.mxu3 %v1312_v31  ;;  %306 = vmatmul.bf16.vlgmr.msra.gmra.mxu0 %v962_v36 }
  0x2d   : > { %627 = vmatpush.bf16.msrb.mxu0 %v1359_v32  ;;  %367 = vmatmul.bf16.vlgmr.msra.gmra.mxu1 %v195_v37 }
  0x2e   : > { %688 = vmatpush.bf16.msrb.mxu1 %v1343_v33  ;;  %445 = vmatmul.bf16.vlgmr.msra.gmra.mxu2 %v962_v36 }
  0x2f   : > { %765 = vmatpush.bf16.msrb.mxu2 %v1367_v34  ;;  %506 = vmatmul.bf16.vlgmr.msra.gmra.mxu3 %v195_v37 }
  0x30   : > { %826 = vmatpush.bf16.msrb.mxu3 %v1351_v35 }
  0x31   : > { %628 = vmatpush.bf16.msrb.mxu0 %v1358_v38 }
  0x32   : > { %689 = vmatpush.bf16.msrb.mxu1 %v1342_v39 }
  0x33   : > { %766 = vmatpush.bf16.msrb.mxu2 %v1366_v40 }
  0x34   : > { %827 = vmatpush.bf16.msrb.mxu3 %v1350_v41 }
  0x35   : > { %629 = vmatpush.bf16.msrb.mxu0 %v1357_v42 }
  0x36   : > { %690 = vmatpush.bf16.msrb.mxu1 %v1341_v43 }
  0x37   : > { %767 = vmatpush.bf16.msrb.mxu2 %v1365_v44 }
  0x38   : > { %828 = vmatpush.bf16.msrb.mxu3 %v1349_v45 }
  0x39   : > { %630 = vmatpush.bf16.msrb.mxu0 %v1356_v46 }
  0x3a   : > { %691 = vmatpush.bf16.msrb.mxu1 %v1340_v47 }
  0x3b   : > { %768 = vmatpush.bf16.msrb.mxu2 %v1364_v48 }
  0x3c   : > { %829 = vmatpush.bf16.msrb.mxu3 %v1348_v49 }
  0x3d   : > { %631 = vmatpush.bf16.msrb.mxu0 %v1355_v50 }
  0x3e   : > { %692 = vmatpush.bf16.msrb.mxu1 %v1339_v51 }
  0x3f   : > { %769 = vmatpush.bf16.msrb.mxu2 %v1363_v52 }
  0x40   : > { %830 = vmatpush.bf16.msrb.mxu3 %v1347_v53 }
  0x41   : > { %632 = vmatpush.bf16.msrb.mxu0 %v1354_v54 }
  0x42   : > { %693 = vmatpush.bf16.msrb.mxu1 %v1338_v55 }
  0x43   : > { %770 = vmatpush.bf16.msrb.mxu2 %v1362_v56 }
  0x44   : > { %831 = vmatpush.bf16.msrb.mxu3 %v1346_v57 }
  0x45   : > { %633 = vmatpush.bf16.msrb.mxu0 %v1353_v58 }
  0x46   : > { %694 = vmatpush.bf16.msrb.mxu1 %v1337_v59 }
  0x47   : > { %771 = vmatpush.bf16.msrb.mxu2 %v1361_v60 }
  0x48   : > { %832 = vmatpush.bf16.msrb.mxu3 %v1345_v61 }
  0x49   : > { %634 = vmatpush.bf16.msrb.mxu0 %v1352_v62 }
  0x4a   : > { %695 = vmatpush.bf16.msrb.mxu1 %v1336_v63 }
  0x4b   : > { %772 = vmatpush.bf16.msrb.mxu2 %v1360_v0 }
  0x4c   : > { %833 = vmatpush.bf16.msrb.mxu3 %v1344_v1  ;;  %635 = vmatmul.bf16.vlgmr.msrb.gmra.mxu0 %v1140_v2 }
  0x4d   : > { %696 = vmatmul.bf16.vlgmr.msrb.gmra.mxu1 %v1123_v3 }
  0x4e   : > { %773 = vmatmul.bf16.vlgmr.msrb.gmra.mxu2 %v1140_v2 }
  0x4f   : > { %834 = vmatmul.bf16.vlgmr.msrb.gmra.mxu3 %v1123_v3 }
  0xa9   : > { %v307_v4 = vpop.f32.mrf.mxu0 }
  0xaa   : > { %v368_v5 = vpop.f32.mrf.mxu1 }
  0xab   : > { %v369_v9 = vadd.f32 %v368_v5, %v307_v4 }
  0xb1   : > { %v446_v6 = vpop.f32.mrf.mxu2  ;;  %v309_v12 = vpop.f32.mrf.mxu0 }
  0xb2   : > { %v507_v7 = vpop.f32.mrf.mxu3  ;;  %v370_v13 = vpop.f32.mrf.mxu1 }
  0xb3   : > { %v508_v8 = vadd.f32 %v507_v7, %v446_v6 }
  0xb5   : > { %v512_v10 = vrot.slane %v508_v8, 1 }
  0xb7   : > { %v514_v14 = vadd.f32 %v512_v10, %v369_v9 }
  0xb9   : > { %v519_v15 = vadd.f32 %v1393_v11, %v514_v14  ;;  %v448_v16 = vpop.f32.mrf.mxu2 }
  0xba   : > { %v509_v17 = vpop.f32.mrf.mxu3 }
  0xbb   : > { %vm520_vm0 = vcmp.ge.f32.partialorder %v519_v15, 0.0  ;;  %v521_v18 = vmul.f32 0.2, %v519_v15 }
  0xbd   : > { %v522_v19 = vsel %vm520_vm0, %v519_v15, %v521_v18 }
  0xbe   : > { %v523_v20 = vpack.c.bf16 %v522_v19, %v522_v19 }
  0xc0   : > { %525 = vst.msk [vmem:[%s190_s16] sm:$0x1] %vm524_vm1, %v523_v20 }
  0xc9   : > { %v636_v21 = vpop.f32.mrf.mxu0 }
  0xca   : > { %v697_v22 = vpop.f32.mrf.mxu1 }
  0xcb   : > { %v698_v25 = vadd.f32 %v697_v22, %v636_v21 }
  0xd1   : > { %v774_v23 = vpop.f32.mrf.mxu2  ;;  %v638_v27 = vpop.f32.mrf.mxu0 }
  0xd2   : > { %v835_v24 = vpop.f32.mrf.mxu3  ;;  %v699_v28 = vpop.f32.mrf.mxu1 }
  0xd3   : > { %v836_v26 = vadd.f32 %v835_v24, %v774_v23 }
  0xd5   : > { %v840_v29 = vrot.slane %v836_v26, 1 }
  0xd7   : > { %v842_v31 = vadd.f32 %v840_v29, %v698_v25 }
  0xd9   : > { %v847_v32 = vadd.f32 %v1394_v30, %v842_v31  ;;  %v776_v33 = vpop.f32.mrf.mxu2 }
  0xda   : > { %v837_v34 = vpop.f32.mrf.mxu3 }
  0xdb   : > { %vm848_vm2 = vcmp.ge.f32.partialorder %v847_v32, 0.0  ;;  %v849_v35 = vmul.f32 0.2, %v847_v32 }
  0xdd   : > { %v850_v36 = vsel %vm848_vm2, %v847_v32, %v849_v35 }
  0xde   : > { %v851_v37 = vpack.c.bf16 %v850_v36, %v850_v36 }
  0xe0   : > { %1301 = vst.msk [vmem:[%s190_s16 + $0x1] sm:$0x1] %vm524_vm1, %v851_v37 }
  0xe1 PF: > { %s13_s14 = sadd.s32 1, %s1417_s14   ;;  %s1690_s12 = smov %s1413_s13 }
  0xe2   : > { %p10_p5 = scmp.ge.s32.totalorder %s13_s14, 4   ;;  %s1691_s13 = smov %s1693_s15 }
  0xe4   :  { %12 = sbr.rel (!%p10_p5) target bundleno = 2 (0x2), region = 69 }

// kernel: discriminator_forward.9
= control target key start
LH: loop header
LB: loop body
LE: loop exit
PB: predicated region body
PF: predicated region fallthrough
CT: control target
= control target key end

     0   :  { %vm23_vm0 = vcmask 1040384   ;;  %vm75_vm3 = vcmask 0   ;;  %s132_s0 = inlined_call_operand.vmem [shape: bf16[2,1,1,128], index: 0, kind: input, shape index: {}]   ;;  %s133_s1 = inlined_call_operand.vmem [shape: f32[1,1,1,128], index: 1, kind: input, shape index: {}]   ;;  %s134_s2 = inlined_call_operand.<no memory space> [shape: f32[1,1,1,1], index: 2, kind: input, shape index: {}]   ;;  %s135_s3 = inlined_call_operand.vmem [shape: f32[2,1,1,1], index: 3, kind: output, shape index: {}]  }
   0x1   :  { %v16_v0 = vld [vmem:[%s132_s0] sm:$0x1]  ;;  %v17_v2 = vld [vmem:[%s132_s0 + $0x1] sm:$0x1]  ;;  %v8_v3 = vstv %s134_s2 }
   0x2   :  { %v20_v1 = vld [vmem:[%s133_s1] sm:$0x1]  ;;  %v18_v4 = vunpack.c.l.bf16 %v16_v0  ;;  %9 = vst [vmem:[#allocation2] sm:$0x1] %v8_v3  ;;  %v19_v6 = vunpack.c.l.bf16 %v17_v2 }
   0x4   :  { %v21_v5 = vmul.f32 %v20_v1, %v18_v4  ;;  %v22_v8 = vmul.f32 %v20_v1, %v19_v6 }
   0x6   :  { %v24_v7 = vsel %vm23_vm0, %v21_v5, 0.0  ;;  %v27_v9 = vsel %vm23_vm0, %v22_v8, 0.0 }
   0x7   :  { %25 = vadd.xlane.f32.xlu0 %v24_v7 }
   0x9   :  { %v34_v10 = vld [vmem:[#allocation2] sm:$0x1] }
   0xf   :  { %28 = vadd.xlane.f32.xlu0 %v27_v9 }
  0x7a   :  { %v26_v11 = vpop.xlane.xlu0 %25 }
  0x7b   :  { %v35_v12 = vadd.f32 %v34_v10, %v26_v11 }
  0x7d   :  { %v82_v13 = vmul.f32 -1.442695, %v35_v12 }
  0x7f   :  { %84 = vpow2.f32 %v82_v13 }
  0x82   :  { %v29_v14 = vpop.xlane.xlu0 %28 }
  0x83   :  { %v36_v15 = vadd.f32 %v34_v10, %v29_v14 }
  0x85   :  { %v85_v16 = vpop.eup %84  ;;  %v83_v17 = vmul.f32 -1.442695, %v36_v15 }
  0x86   :  { %v43_v18 = vadd.f32 1.0, %v85_v16 }
  0x87   :  { %86 = vpow2.f32 %v83_v17 }
  0x88   :  { %88 = vrcp.f32 %v43_v18  ;;  %v56_v24 = vand.u32 2147483648, %v43_v18  ;;  %v54_v26 = vand.u32 2147483647, %v43_v18  ;;  %vm50_vm2 = vweird.f32 %v43_v18 }
  0x8a   :  { %v57_v29 = vor.u32 1.1754944e-38, %v56_v24  ;;  %vm55_vm5 = vcmp.eq.f32.partialorder %v54_v26, 8.507059e+37 }
  0x8d   :  { %v87_v19 = vpop.eup %86 }
  0x8e   :  { %v89_v20 = vpop.eup %88  ;;  %v44_v21 = vadd.f32 1.0, %v87_v19 }
  0x8f   :  { %v46_v22 = vmul.f32 %v89_v20, %v43_v18  ;;  %vm51_vm1 = vweird.f32 %v89_v20 }
  0x90   :  { %90 = vrcp.f32 %v44_v21  ;;  %vm52_vm4 = vmor %vm50_vm2, %vm51_vm1  ;;  %v71_v34 = vand.u32 2147483648, %v44_v21  ;;  %v69_v36 = vand.u32 2147483647, %v44_v21  ;;  %vm65_vm7 = vweird.f32 %v44_v21 }
  0x91   :  { %v47_v23 = vsub.f32 1.0, %v46_v22 }
  0x92   :  { %v72_v38 = vor.u32 1.1754944e-38, %v71_v34  ;;  %vm70_vm9 = vcmp.eq.f32.partialorder %v69_v36, 8.507059e+37 }
  0x93   :  { %v48_v25 = vmul.f32 %v89_v20, %v47_v23 }
  0x95   :  { %v49_v27 = vadd.f32 %v89_v20, %v48_v25 }
  0x96   :  { %v91_v28 = vpop.eup %90 }
  0x97   :  { %v53_v30 = vsel %vm52_vm4, %v89_v20, %v49_v27  ;;  %v61_v31 = vmul.f32 %v91_v28, %v44_v21  ;;  %vm66_vm6 = vweird.f32 %v91_v28 }
  0x98   :  { %v58_v32 = vsel %vm55_vm5, %v57_v29, %v53_v30  ;;  %vm67_vm8 = vmor %vm65_vm7, %vm66_vm6 }
  0x99   :  { %76 = vst.msk [vmem:[%s135_s3] sm:$0x1] %vm75_vm3, %v58_v32  ;;  %v62_v33 = vsub.f32 1.0, %v61_v31 }
  0x9b   :  { %v63_v35 = vmul.f32 %v91_v28, %v62_v33 }
  0x9d   :  { %v64_v37 = vadd.f32 %v91_v28, %v63_v35 }
  0x9f   :  { %v68_v39 = vsel %vm67_vm8, %v91_v28, %v64_v37 }
  0xa0   :  { %v73_v40 = vsel %vm70_vm9, %v72_v38, %v68_v39 }
  0xa1   :  { %77 = vst.msk [vmem:[%s135_s3 + $0x1] sm:$0x1] %vm75_vm3, %v73_v40 }

// kernel: discriminator_forward.8
= control target key start
LH: loop header
LB: loop body
LE: loop exit
PB: predicated region body
PF: predicated region fallthrough
CT: control target
= control target key end

     0   :  { %s1432_s12 = smov 0   ;;  %s1434_s13 = smov 0   ;;  %s1664_s0 = inlined_call_operand.vmem [shape: bf16[2,2,2,256], index: 0, kind: input, shape index: {}]   ;;  %s1665_s1 = inlined_call_operand.vmem [shape: bf16[4,256,128], index: 1, kind: input, shape index: {}]   ;;  %s1666_s2 = inlined_call_operand.vmem [shape: f32[1,128], index: 2, kind: input, shape index: {}]   ;;  %s1667_s3 = inlined_call_operand.vmem [shape: bf16[2,1,1,128], index: 3, kind: output, shape index: {}]  }
   0x1   :  { %s1436_s14 = smov 0  }
   0x2 LB: > { %s25_s15 = sadd.s32 1, %s1406_s13  ;;  %p938_p0 = scmp.ge.s32.totalorder %s1410_s14, 1  ;;  %s1410_s14 = sphi %s1436_s14, %s13_s14   ;;  %s1406_s13 = sphi %s1434_s13, %s1669_s13   ;;  %s1402_s12 = sphi %s1432_s12, %s1668_s12  }
   0x3   : > { %p27_p1 = scmp.ge.s32.totalorder %s25_s15, 2  ;;  %p150_p2 = scmp.lt.s32.totalorder %s1410_s14, 3 }
   0x5   : > { %s1671_s15 = smov (%p27_p1, %s25_s15), 0  ;;  %p151_p3 = pnand %p938_p0, %p150_p2 }
   0x6   : > { %p174_p4 = scmp.lt.s32.totalorder (!%p151_p3), %s1402_s12, 1 }
   0x7   : > { %154 = sbr.rel (%p151_p3) target bundleno = 252 (0xfc), region = 32 }
   0xc   : > { %v1335_v0 = vld [vmem:[%s1665_s1 + $0x138] sm:$0xff]  ;;  %v1334_v4 = vld [vmem:[%s1665_s1 + $0x130] sm:$0xff]  ;;  %s1673_s12 = smov (!%p174_p4, %s1402_s12), 1  ;;  %v1333_v8 = vld [vmem:[%s1665_s1 + $0x128] sm:$0xff]  ;;  %vm858_vm2 = vcmask 1040384  }
   0xd   : > { %v1343_v1 = vld [vmem:[%s1665_s1 + $0x178] sm:$0xff]  ;;  %391 = vmatpush.bf16.msra.mxu0 %v1335_v0  ;;  %v1342_v5 = vld [vmem:[%s1665_s1 + $0x170] sm:$0xff]  ;;  %v1341_v9 = vld [vmem:[%s1665_s1 + $0x168] sm:$0xff]  ;;  %s939_s17 = sshll.u32 %s1673_s12, 2  ;;  %s183_s10 = scalar_lea.vmem %s1667_s3, %s1673_s12  ;;  %vm859_vm3 = vsmask.f32 256 }
   0xe   : > { %v1303_v2 = vld [vmem:[%s1665_s1 + $0x38] sm:$0xff]  ;;  %404 = vmatpush.bf16.msra.mxu1 %v1343_v1  ;;  %v1302_v6 = vld [vmem:[%s1665_s1 + $0x30] sm:$0xff]  ;;  %v1301_v10 = vld [vmem:[%s1665_s1 + $0x28] sm:$0xff]  ;;  %s177_s24 = scalar_lea.vmem %s1664_s0, %s939_s17 }
   0xf   : > { %v1311_v3 = vld [vmem:[%s1665_s1 + $0x78] sm:$0xff]  ;;  %519 = vmatpush.bf16.msra.mxu2 %v1303_v2  ;;  %v1310_v7 = vld [vmem:[%s1665_s1 + $0x70] sm:$0xff]  ;;  %v1309_v11 = vld [vmem:[%s1665_s1 + $0x68] sm:$0xff] }
  0x10   : > { %532 = vmatpush.bf16.msra.mxu3 %v1311_v3  ;;  %v1332_v12 = vld [vmem:[%s1665_s1 + $0x120] sm:$0xff]  ;;  %v1331_v17 = vld [vmem:[%s1665_s1 + $0x118] sm:$0xff]  ;;  %v1330_v21 = vld [vmem:[%s1665_s1 + $0x110] sm:$0xff] }
  0x11   : > { %392 = vmatpush.bf16.msra.mxu0 %v1334_v4  ;;  %v1340_v13 = vld [vmem:[%s1665_s1 + $0x160] sm:$0xff]  ;;  %v1339_v18 = vld [vmem:[%s1665_s1 + $0x158] sm:$0xff]  ;;  %v1338_v22 = vld [vmem:[%s1665_s1 + $0x150] sm:$0xff] }
  0x12   : > { %405 = vmatpush.bf16.msra.mxu1 %v1342_v5  ;;  %v1300_v14 = vld [vmem:[%s1665_s1 + $0x20] sm:$0xff]  ;;  %v1299_v19 = vld [vmem:[%s1665_s1 + $0x18] sm:$0xff]  ;;  %v1298_v23 = vld [vmem:[%s1665_s1 + $0x10] sm:$0xff] }
  0x13   : > { %520 = vmatpush.bf16.msra.mxu2 %v1302_v6  ;;  %v1308_v15 = vld [vmem:[%s1665_s1 + $0x60] sm:$0xff]  ;;  %v1307_v20 = vld [vmem:[%s1665_s1 + $0x58] sm:$0xff]  ;;  %v1306_v24 = vld [vmem:[%s1665_s1 + $0x50] sm:$0xff] }
  0x14   : > { %533 = vmatpush.bf16.msra.mxu3 %v1310_v7  ;;  %v972_v16 = vld [vmem:[%s177_s24 + $0x2] sm:$0x3]  ;;  %v186_v25 = vld [vmem:[%s177_s24] sm:$0x3]  ;;  %v1329_v28 = vld [vmem:[%s1665_s1 + $0x108] sm:$0xff] }
  0x15   : > { %393 = vmatpush.bf16.msra.mxu0 %v1333_v8  ;;  %290 = vst [vmem:[#allocation1] ss:$9 sm:$0xff] %v972_v16  ;;  %v1337_v29 = vld [vmem:[%s1665_s1 + $0x148] sm:$0xff]  ;;  %v1328_v32 = vld [vmem:[%s1665_s1 + $0x100] sm:$0xff]  ;;  %v1351_v36 = vld [vmem:[%s1665_s1 + $0x1b8] sm:$0xff] }
  0x16   : > { %406 = vmatpush.bf16.msra.mxu1 %v1341_v9  ;;  %v1297_v30 = vld [vmem:[%s1665_s1 + $0x8] sm:$0xff]  ;;  %v1336_v33 = vld [vmem:[%s1665_s1 + $0x140] sm:$0xff]  ;;  %v1359_v37 = vld [vmem:[%s1665_s1 + $0x1f8] sm:$0xff] }
  0x17   : > { %521 = vmatpush.bf16.msra.mxu2 %v1301_v10  ;;  %v1305_v31 = vld [vmem:[%s1665_s1 + $0x48] sm:$0xff]  ;;  %v1296_v34 = vld [vmem:[%s1665_s1] sm:$0xff]  ;;  %v1319_v38 = vld [vmem:[%s1665_s1 + $0xb8] sm:$0xff] }
  0x18   : > { %534 = vmatpush.bf16.msra.mxu3 %v1309_v11  ;;  %v1304_v35 = vld [vmem:[%s1665_s1 + $0x40] sm:$0xff]  ;;  %v1327_v39 = vld [vmem:[%s1665_s1 + $0xf8] sm:$0xff]  ;;  %v1350_v42 = vld [vmem:[%s1665_s1 + $0x1b0] sm:$0xff] }
  0x19   : > { %394 = vmatpush.bf16.msra.mxu0 %v1332_v12  ;;  %v1358_v43 = vld [vmem:[%s1665_s1 + $0x1f0] sm:$0xff]  ;;  %v1349_v46 = vld [vmem:[%s1665_s1 + $0x1a8] sm:$0xff]  ;;  %v1348_v52 = vld [vmem:[%s1665_s1 + $0x1a0] sm:$0xff] }
  0x1a   : > { %407 = vmatpush.bf16.msra.mxu1 %v1340_v13  ;;  %v1318_v44 = vld [vmem:[%s1665_s1 + $0xb0] sm:$0xff]  ;;  %v1357_v47 = vld [vmem:[%s1665_s1 + $0x1e8] sm:$0xff]  ;;  %v1356_v53 = vld [vmem:[%s1665_s1 + $0x1e0] sm:$0xff] }
  0x1b   : > { %522 = vmatpush.bf16.msra.mxu2 %v1300_v14  ;;  %v1326_v45 = vld [vmem:[%s1665_s1 + $0xf0] sm:$0xff]  ;;  %v1317_v48 = vld [vmem:[%s1665_s1 + $0xa8] sm:$0xff]  ;;  %v1316_v54 = vld [vmem:[%s1665_s1 + $0xa0] sm:$0xff] }
  0x1c   : > { %535 = vmatpush.bf16.msra.mxu3 %v1308_v15  ;;  %v291_v26 = vld [vmem:[#allocation1] sm:$0xff]  ;;  %v292_v27 = vld [vmem:[#allocation1 + $0x9] sm:$0xff]  ;;  %v1347_v56 = vld [vmem:[%s1665_s1 + $0x198] sm:$0xff] }
  0x1d   : > { %395 = vmatpush.bf16.msra.mxu0 %v1331_v17  ;;  %418 = vst [vmem:[#allocation1] ss:$9 sm:$0xff] %v186_v25  ;;  %v1325_v49 = vld [vmem:[%s1665_s1 + $0xe8] sm:$0xff]  ;;  %v1324_v55 = vld [vmem:[%s1665_s1 + $0xe0] sm:$0xff]  ;;  %v1355_v57 = vld [vmem:[%s1665_s1 + $0x1d8] sm:$0xff] }
  0x1e   : > { %408 = vmatpush.bf16.msra.mxu1 %v1339_v18  ;;  %v1315_v58 = vld [vmem:[%s1665_s1 + $0x98] sm:$0xff]  ;;  %v1346_v60 = vld [vmem:[%s1665_s1 + $0x190] sm:$0xff]  ;;  %v1345_v0 = vld [vmem:[%s1665_s1 + $0x188] sm:$0xff] }
  0x1f   : > { %523 = vmatpush.bf16.msra.mxu2 %v1299_v19  ;;  %v1323_v59 = vld [vmem:[%s1665_s1 + $0xd8] sm:$0xff]  ;;  %v1354_v61 = vld [vmem:[%s1665_s1 + $0x1d0] sm:$0xff]  ;;  %v1353_v1 = vld [vmem:[%s1665_s1 + $0x1c8] sm:$0xff] }
  0x20   : > { %536 = vmatpush.bf16.msra.mxu3 %v1307_v20  ;;  %v1314_v62 = vld [vmem:[%s1665_s1 + $0x90] sm:$0xff]  ;;  %v1313_v2 = vld [vmem:[%s1665_s1 + $0x88] sm:$0xff]  ;;  %v1344_v4 = vld [vmem:[%s1665_s1 + $0x180] sm:$0xff] }
  0x21   : > { %396 = vmatpush.bf16.msra.mxu0 %v1330_v21  ;;  %v1322_v63 = vld [vmem:[%s1665_s1 + $0xd0] sm:$0xff]  ;;  %v1321_v3 = vld [vmem:[%s1665_s1 + $0xc8] sm:$0xff]  ;;  %v1352_v5 = vld [vmem:[%s1665_s1 + $0x1c0] sm:$0xff] }
  0x22   : > { %409 = vmatpush.bf16.msra.mxu1 %v1338_v22  ;;  %v1312_v6 = vld [vmem:[%s1665_s1 + $0x80] sm:$0xff]  ;;  %vm860_vm6 = vmand %vm858_vm2, %vm859_vm3 }
  0x23   : > { %524 = vmatpush.bf16.msra.mxu2 %v1298_v23  ;;  %v1320_v7 = vld [vmem:[%s1665_s1 + $0xc0] sm:$0xff] }
  0x24   : > { %537 = vmatpush.bf16.msra.mxu3 %v1306_v24  ;;  %v419_v40 = vld [vmem:[#allocation1] sm:$0xff]  ;;  %v420_v41 = vld [vmem:[#allocation1 + $0x9] sm:$0xff] }
  0x25   : > { %397 = vmatpush.bf16.msra.mxu0 %v1329_v28  ;;  %578 = vst [vmem:[#allocation1] ss:$9 sm:$0xff] %v972_v16 }
  0x26   : > { %410 = vmatpush.bf16.msra.mxu1 %v1337_v29 }
  0x27   : > { %525 = vmatpush.bf16.msra.mxu2 %v1297_v30 }
  0x28   : > { %538 = vmatpush.bf16.msra.mxu3 %v1305_v31  ;;  %v836_v31 = vld [vmem:[%s1666_s2] sm:$0x1] }
  0x29   : > { %398 = vmatpush.bf16.msra.mxu0 %v1328_v32 }
  0x2a   : > { %411 = vmatpush.bf16.msra.mxu1 %v1336_v33 }
  0x2b   : > { %526 = vmatpush.bf16.msra.mxu2 %v1296_v34 }
  0x2c   : > { %539 = vmatpush.bf16.msra.mxu3 %v1304_v35  ;;  %399 = vmatmul.bf16.vlgmr.msra.gmra.mxu0 %v291_v26  ;;  %v579_v50 = vld [vmem:[#allocation1] sm:$0xff]  ;;  %v580_v51 = vld [vmem:[#allocation1 + $0x9] sm:$0xff] }
  0x2d   : > { %679 = vmatpush.bf16.msrb.mxu0 %v1351_v36  ;;  %412 = vmatmul.bf16.vlgmr.msra.gmra.mxu1 %v292_v27  ;;  %705 = vst [vmem:[#allocation1] ss:$9 sm:$0xff] %v186_v25 }
  0x2e   : > { %692 = vmatpush.bf16.msrb.mxu1 %v1359_v37  ;;  %527 = vmatmul.bf16.vlgmr.msra.gmra.mxu2 %v419_v40 }
  0x2f   : > { %806 = vmatpush.bf16.msrb.mxu2 %v1319_v38  ;;  %540 = vmatmul.bf16.vlgmr.msra.gmra.mxu3 %v420_v41 }
  0x30   : > { %819 = vmatpush.bf16.msrb.mxu3 %v1327_v39 }
  0x31   : > { %680 = vmatpush.bf16.msrb.mxu0 %v1350_v42 }
  0x32   : > { %693 = vmatpush.bf16.msrb.mxu1 %v1358_v43 }
  0x33   : > { %807 = vmatpush.bf16.msrb.mxu2 %v1318_v44 }
  0x34   : > { %820 = vmatpush.bf16.msrb.mxu3 %v1326_v45  ;;  %v706_v8 = vld [vmem:[#allocation1] sm:$0xff]  ;;  %v707_v9 = vld [vmem:[#allocation1 + $0x9] sm:$0xff] }
  0x35   : > { %681 = vmatpush.bf16.msrb.mxu0 %v1349_v46 }
  0x36   : > { %694 = vmatpush.bf16.msrb.mxu1 %v1357_v47 }
  0x37   : > { %808 = vmatpush.bf16.msrb.mxu2 %v1317_v48 }
  0x38   : > { %821 = vmatpush.bf16.msrb.mxu3 %v1325_v49  ;;  %v861_v49 = vld [vmem:[%s183_s10] sm:$0x1] }
  0x39   : > { %682 = vmatpush.bf16.msrb.mxu0 %v1348_v52 }
  0x3a   : > { %695 = vmatpush.bf16.msrb.mxu1 %v1356_v53 }
  0x3b   : > { %809 = vmatpush.bf16.msrb.mxu2 %v1316_v54 }
  0x3c   : > { %822 = vmatpush.bf16.msrb.mxu3 %v1324_v55 }
  0x3d   : > { %683 = vmatpush.bf16.msrb.mxu0 %v1347_v56 }
  0x3e   : > { %696 = vmatpush.bf16.msrb.mxu1 %v1355_v57 }
  0x3f   : > { %810 = vmatpush.bf16.msrb.mxu2 %v1315_v58 }
  0x40   : > { %823 = vmatpush.bf16.msrb.mxu3 %v1323_v59 }
  0x41   : > { %684 = vmatpush.bf16.msrb.mxu0 %v1346_v60 }
  0x42   : > { %697 = vmatpush.bf16.msrb.mxu1 %v1354_v61 }
  0x43   : > { %811 = vmatpush.bf16.msrb.mxu2 %v1314_v62 }
  0x44   : > { %824 = vmatpush.bf16.msrb.mxu3 %v1322_v63 }
  0x45   : > { %685 = vmatpush.bf16.msrb.mxu0 %v1345_v0 }
  0x46   : > { %698 = vmatpush.bf16.msrb.mxu1 %v1353_v1 }
  0x47   : > { %812 = vmatpush.bf16.msrb.mxu2 %v1313_v2 }
  0x48   : > { %825 = vmatpush.bf16.msrb.mxu3 %v1321_v3 }
  0x49   : > { %686 = vmatpush.bf16.msrb.mxu0 %v1344_v4 }
  0x4a   : > { %699 = vmatpush.bf16.msrb.mxu1 %v1352_v5 }
  0x4b   : > { %813 = vmatpush.bf16.msrb.mxu2 %v1312_v6 }
  0x4c   : > { %826 = vmatpush.bf16.msrb.mxu3 %v1320_v7  ;;  %687 = vmatmul.bf16.vlgmr.msrb.gmra.mxu0 %v579_v50 }
  0x4d   : > { %700 = vmatmul.bf16.vlgmr.msrb.gmra.mxu1 %v580_v51 }
  0x4e   : > { %814 = vmatmul.bf16.vlgmr.msrb.gmra.mxu2 %v706_v8 }
  0x4f   : > { %827 = vmatmul.bf16.vlgmr.msrb.gmra.mxu3 %v707_v9 }
  0xa9   : > { %v400_v10 = vpop.f32.mrf.mxu0 }
  0xaa   : > { %v413_v11 = vpop.f32.mrf.mxu1 }
  0xab   : > { %v414_v20 = vadd.f32 %v413_v11, %v400_v10 }
  0xb1   : > { %v528_v12 = vpop.f32.mrf.mxu2  ;;  %v402_v14 = vpop.f32.mrf.mxu0 }
  0xb2   : > { %v541_v13 = vpop.f32.mrf.mxu3  ;;  %v415_v15 = vpop.f32.mrf.mxu1  ;;  %v529_v24 = vadd.f32 %v528_v12, %v414_v20 }
  0xb4   : > { %v542_v29 = vadd.f32 %v541_v13, %v529_v24 }
  0xb9   : > { %v530_v16 = vpop.f32.mrf.mxu2 }
  0xba   : > { %v543_v17 = vpop.f32.mrf.mxu3 }
  0xc9   : > { %v688_v18 = vpop.f32.mrf.mxu0 }
  0xca   : > { %v701_v19 = vpop.f32.mrf.mxu1 }
  0xcb   : > { %v702_v21 = vadd.f32 %v701_v19, %v688_v18 }
  0xd1   : > { %v815_v22 = vpop.f32.mrf.mxu2  ;;  %v690_v26 = vpop.f32.mrf.mxu0 }
  0xd2   : > { %v828_v23 = vpop.f32.mrf.mxu3  ;;  %v816_v25 = vadd.f32 %v815_v22, %v702_v21  ;;  %v703_v27 = vpop.f32.mrf.mxu1 }
  0xd4   : > { %v829_v28 = vadd.f32 %v828_v23, %v816_v25 }
  0xd6   : > { %v833_v30 = vrot.slane %v829_v28, 1 }
  0xd8   : > { %v835_v32 = vadd.f32 %v833_v30, %v542_v29 }
  0xd9   : > { %v817_v33 = vpop.f32.mrf.mxu2 }
  0xda   : > { %v830_v34 = vpop.f32.mrf.mxu3  ;;  %v837_v35 = vadd.f32 %v836_v31, %v835_v32 }
  0xdc   : > { %v1293_v36 = vmul.f32 -1.442695, %v837_v35 }
  0xde   : > { %1384 = vpow2.f32 %v1293_v36 }
  0xe4   : > { %v1385_v37 = vpop.eup %1384 }
  0xe5   : > { %v841_v38 = vadd.f32 1.0, %v1385_v37 }
  0xe7   : > { %1386 = vrcp.f32 %v841_v38  ;;  %v853_v42 = vand.u32 2147483648, %v841_v38  ;;  %v851_v44 = vand.u32 2147483647, %v841_v38  ;;  %vm847_vm1 = vweird.f32 %v841_v38 }
  0xe9   : > { %v854_v46 = vor.u32 1.1754944e-38, %v853_v42  ;;  %vm852_vm5 = vcmp.eq.f32.partialorder %v851_v44, 8.507059e+37 }
  0xed   : > { %v1387_v39 = vpop.eup %1386 }
  0xee   : > { %v843_v40 = vmul.f32 %v1387_v39, %v841_v38  ;;  %vm848_vm0 = vweird.f32 %v1387_v39 }
  0xef   : > { %vm849_vm4 = vmor %vm847_vm1, %vm848_vm0 }
  0xf0   : > { %v844_v41 = vsub.f32 1.0, %v843_v40 }
  0xf2   : > { %v845_v43 = vmul.f32 %v1387_v39, %v844_v41 }
  0xf4   : > { %v846_v45 = vadd.f32 %v1387_v39, %v845_v43 }
  0xf6   : > { %v850_v47 = vsel %vm849_vm4, %v1387_v39, %v846_v45 }
  0xf7   : > { %v855_v48 = vsel %vm852_vm5, %v854_v46, %v850_v47 }
  0xf8   : > { %v857_v50 = vpack.c.bf16 %v855_v48, %v855_v48 }
  0xfa   : > { %v862_v51 = vsel %vm860_vm6, %v857_v50, %v861_v49 }
  0xfb   : > { %863 = vst [vmem:[%s183_s10] sm:$0x1] %v862_v51 }
  0xfc PF: > { %s13_s14 = sadd.s32 1, %s1410_s14   ;;  %s1668_s12 = smov %s1406_s13 }
  0xfd   : > { %p10_p5 = scmp.ge.s32.totalorder %s13_s14, 4   ;;  %s1669_s13 = smov %s1671_s15 }
  0xff   :  { %12 = sbr.rel (!%p10_p5) target bundleno = 2 (0x2), region = 67 }

</bundles_post_ra>
